<compile_context>
chip_gen: v7x
topology: tpu7x:2x2x1
jax: 0.10.0
libtpu: 0.0.40
codegen_flags: <defaults>
</compile_context>

<pallas_src>
import functools
import numpy as np

import jax
import jax.numpy as jnp
from jax.experimental import pallas as pl
from jax.experimental.pallas import tpu as pltpu

# -------------------- configuration (small synthetic shapes) ----------------
B, C, H_IMG, W_IMG = 2, 3, 32, 32
PATCH = 16
N_CLS = 3                       # dataset n_cls
REGRESS = True                  # config['special']['regress']
N_CLS_DEC = 3 * N_CLS if REGRESS else N_CLS
D_ENC = 32                      # encoder d_model
D_DEC = 32                      # decoder d_model (== encoder d_model)
N_HEADS_ENC = 2
N_HEADS_DEC = 2                 # original uses d_model//64; fixed to 2 for tiny d_model
N_LAYERS_ENC = 2
N_LAYERS_DEC = 1
D_FF_ENC = 4 * D_ENC
D_FF_DEC = 4 * D_DEC

# Matmul operand dtype. Set to jnp.bfloat16 on v6e/v7x for MXU peak (accumulation
# stays f32 via preferred_element_type); f32 keeps exact parity with PyTorch.
MM_DTYPE = jnp.float32


# ----------------------------- in-kernel math helpers ------------------------
def _mm(a, b):
    """a @ b with f32 accumulation (operands optionally cast to MM_DTYPE)."""
    return jnp.dot(a.astype(MM_DTYPE), b.astype(MM_DTYPE),
                   preferred_element_type=jnp.float32)


def _mm_t(a, b):
    """a @ b.T without materializing a transpose (contract last dims)."""
    return jax.lax.dot_general(a.astype(MM_DTYPE), b.astype(MM_DTYPE),
                               (((1,), (1,)), ((), ())),
                               preferred_element_type=jnp.float32)


def _ln(x, g, b, eps=1e-5):
    mu = jnp.mean(x, axis=-1, keepdims=True)
    xc = x - mu
    var = jnp.mean(xc * xc, axis=-1, keepdims=True)
    return xc * jax.lax.rsqrt(var + eps) * g + b


# ----------------------------- Pallas kernels --------------------------------
def _embed_kernel(p_ref, w_ref, b_ref, cls_ref, pos_ref, o_ref):
    # patch-embed matmul + bias + cls-token prepend + positional embedding
    p = p_ref[0]                                                    # (N, C*P*P)
    x = _mm(p, w_ref[...]) + b_ref[...]                             # (N, D)
    o_ref[0, 0:1, :] = (cls_ref[...] + pos_ref[0:1, :]).astype(o_ref.dtype)
    o_ref[0, 1:, :] = (x + pos_ref[1:, :]).astype(o_ref.dtype)


def _block_kernel(x_ref, ln1_g, ln1_b, qkv_w, qkv_b, proj_w, proj_b,
                  ln2_g, ln2_b, fc1_w, fc1_b, fc2_w, fc2_b, o_ref,
                  *, n_heads, scale):
    # Whole transformer block fused; everything stays in VMEM/vregs.
    x = x_ref[0]                                                    # (T, D)
    D = x.shape[-1]
    Dh = D // n_heads

    # ---- attention branch: LN1 -> QKV -> per-head softmax(QK^T)V -> proj ----
    h = _ln(x, ln1_g[...], ln1_b[...])
    qkv = _mm(h, qkv_w[...]) + qkv_b[...]                           # (T, 3D)
    pw = proj_w[...]
    o = jnp.broadcast_to(proj_b[...], (x.shape[0], D))
    for hd in range(n_heads):                                       # static unroll
        q = qkv[:, hd * Dh:(hd + 1) * Dh]
        k = qkv[:, D + hd * Dh:D + (hd + 1) * Dh]
        v = qkv[:, 2 * D + hd * Dh:2 * D + (hd + 1) * Dh]
        s = _mm_t(q, k) * scale                                     # (T, T)
        s = s - jnp.max(s, axis=-1, keepdims=True)
        prob = jnp.exp(s)
        prob = prob * pl.reciprocal(jnp.sum(prob, axis=-1, keepdims=True),
                                    approx=True)
        head_out = _mm(prob, v)                                     # (T, Dh)
        # per-head slice of the output projection == block-matmul accumulation
        o = o + _mm(head_out, pw[hd * Dh:(hd + 1) * Dh, :])
    x = x + o                                                       # residual 1

    # ---- MLP branch: LN2 -> fc1 + GELU -> fc2 ----
    h = _ln(x, ln2_g[...], ln2_b[...])
    # TODO(synk): PyTorch nn.GELU is exact erf; tanh approximation used here.
    h = jax.nn.gelu(_mm(h, fc1_w[...]) + fc1_b[...], approximate=True)
    h = _mm(h, fc2_w[...]) + fc2_b[...]
    o_ref[0] = (x + h).astype(o_ref.dtype)                          # residual 2


def _dec_embed_kernel(x_ref, ng_ref, nb_ref, w_ref, b_ref, cls_ref, o_ref,
                      *, n_extra):
    # encoder final LN (fused) + drop extra tokens + proj_dec + cls_emb concat
    x = x_ref[0][n_extra:, :]                                       # (N, D_enc)
    x = _ln(x, ng_ref[...], nb_ref[...])
    y = _mm(x, w_ref[...]) + b_ref[...]                             # (N, D_dec)
    n = y.shape[0]
    o_ref[0, :n, :] = y.astype(o_ref.dtype)
    o_ref[0, n:, :] = cls_ref[...].astype(o_ref.dtype)


def _mask_tail_kernel(x_ref, ng_ref, nb_ref, pw_ref, cw_ref, mg_ref, mb_ref,
                      o_ref, *, n_cls):
    # decoder final LN + split + proj_patch/proj_classes + L2-normalize +
    # cosine-similarity masks + mask LayerNorm — one kernel, no HBM round-trips
    x = _ln(x_ref[0], ng_ref[...], nb_ref[...])                     # (T, D)
    T = x.shape[0]
    patches = _mm(x[:T - n_cls, :], pw_ref[...])                    # (N, D)
    cls_f = _mm(x[T - n_cls:, :], cw_ref[...])                      # (K, D)
    patches = patches * jax.lax.rsqrt(
        jnp.sum(patches * patches, axis=-1, keepdims=True))
    cls_f = cls_f * jax.lax.rsqrt(
        jnp.sum(cls_f * cls_f, axis=-1, keepdims=True))
    m = _mm_t(patches, cls_f)                                       # (N, K)
    o_ref[0] = _ln(m, mg_ref[...], mb_ref[...]).astype(o_ref.dtype)


def _upsample_kernel(m_ref, ah_ref, awt_ref, o_ref, *, n_sig):
    # separable bilinear upsample (W then H matmuls) with fused sigmoid epilogue
    m = m_ref[0]                                                    # (K, gh, gw)
    ah = ah_ref[...]                                                # (H, gh)
    awt = awt_ref[...]                                              # (gw, W)
    for kk in range(m.shape[0]):                                    # static unroll
        t = jnp.dot(m[kk], awt, preferred_element_type=jnp.float32)  # (gh, W)
        u = jnp.dot(ah, t, preferred_element_type=jnp.float32)       # (H, W)
        if kk < n_sig:
            u = jax.nn.sigmoid(u)
        o_ref[0, kk] = u.astype(o_ref.dtype)


# ----------------------------- pallas_call plumbing --------------------------
def _full_spec(shape):
    zeros = (0,) * len(shape)
    return pl.BlockSpec(shape, lambda b, _z=zeros: _z)


def _batched_spec(shape):
    blk = (1,) + tuple(shape[1:])
    zeros = (0,) * (len(shape) - 1)
    return pl.BlockSpec(blk, lambda b, _z=zeros: (b,) + _z)


def _call_per_batch(kernel, batched_inputs, weights, out_shape):
    """Grid over batch (parallel -> both v7x TensorCores); weights are
    full-array VMEM blocks (same block index every step -> fetched once)."""
    bx = batched_inputs[0].shape[0]
    in_specs = ([_batched_spec(a.shape) for a in batched_inputs]
                + [_full_spec(w.shape) for w in weights])
    return pl.pallas_call(
        kernel,
        grid=(bx,),
        in_specs=in_specs,
        out_specs=_batched_spec(out_shape.shape),
        out_shape=out_shape,
        compiler_params=pltpu.CompilerParams(dimension_semantics=("parallel",)),
    )(*batched_inputs, *weights)


# ------------------------------ model pieces ----------------------------------
def embed_tokens(patches, enc):
    bx, n, _ = patches.shape
    d = enc["patch_w"].shape[1]
    weights = [enc["patch_w"], enc["patch_b"].reshape(1, d),
               enc["cls_token"].reshape(1, d), enc["pos_embed"].reshape(n + 1, d)]
    return _call_per_batch(_embed_kernel, [patches], weights,
                           jax.ShapeDtypeStruct((bx, n + 1, d), jnp.float32))


def transformer_block(x, p, n_heads):
    bx, t, d = x.shape
    scale = float(d // n_heads) ** -0.5
    w = [p["ln1_g"].reshape(1, d), p["ln1_b"].reshape(1, d),
         p["qkv_w"], p["qkv_b"].reshape(1, 3 * d),
         p["proj_w"], p["proj_b"].reshape(1, d),
         p["ln2_g"].reshape(1, d), p["ln2_b"].reshape(1, d),
         p["fc1_w"], p["fc1_b"].reshape(1, -1),
         p["fc2_w"], p["fc2_b"].reshape(1, d)]
    return _call_per_batch(
        functools.partial(_block_kernel, n_heads=n_heads, scale=scale),
        [x], w, jax.ShapeDtypeStruct((bx, t, d), jnp.float32))


def decoder_embed(x, enc_norm_g, enc_norm_b, dec, num_extra_tokens):
    bx, t, de = x.shape
    dd = dec["proj_dec_w"].shape[1]
    k = dec["cls_emb"].shape[1]
    n = t - num_extra_tokens
    w = [enc_norm_g.reshape(1, de), enc_norm_b.reshape(1, de),
         dec["proj_dec_w"], dec["proj_dec_b"].reshape(1, dd),
         dec["cls_emb"].reshape(k, dd)]
    return _call_per_batch(
        functools.partial(_dec_embed_kernel, n_extra=num_extra_tokens),
        [x], w, jax.ShapeDtypeStruct((bx, n + k, dd), jnp.float32))


def mask_tail(x, dec, n_cls):
    bx, t, d = x.shape
    n = t - n_cls
    w = [dec["norm_g"].reshape(1, d), dec["norm_b"].reshape(1, d),
         dec["proj_patch"], dec["proj_classes"],
         dec["mask_norm_g"].reshape(1, n_cls), dec["mask_norm_b"].reshape(1, n_cls)]
    return _call_per_batch(
        functools.partial(_mask_tail_kernel, n_cls=n_cls),
        [x], w, jax.ShapeDtypeStruct((bx, n, n_cls), jnp.float32))


def upsample_sigmoid(masks, ah, awt, n_sig):
    bx, k, _, _ = masks.shape
    h = ah.shape[0]
    w = awt.shape[1]
    return _call_per_batch(
        functools.partial(_upsample_kernel, n_sig=n_sig),
        [masks], [ah, awt],
        jax.ShapeDtypeStruct((bx, k, h, w), jnp.float32))


# ------------------------------ glue / forward --------------------------------
def padding(im, patch_size):
    _, _, h, w = im.shape
    pad_h = (patch_size - h % patch_size) % patch_size
    pad_w = (patch_size - w % patch_size) % patch_size
    return jnp.pad(im, ((0, 0), (0, 0), (0, pad_h), (0, pad_w)))


def unpadding(x, hw):
    h, w = hw
    return x[:, :, :h, :w]


def bilinear_matrix(out_size, in_size):
    # matches F.interpolate(mode="bilinear", align_corners=False)
    a = np.zeros((out_size, in_size), dtype=np.float32)
    scale = in_size / out_size
    for i in range(out_size):
        src = max((i + 0.5) * scale - 0.5, 0.0)
        x0 = min(int(np.floor(src)), in_size - 1)
        x1 = min(x0 + 1, in_size - 1)
        w1 = src - x0
        a[i, x0] += 1.0 - w1
        a[i, x1] += w1
    return jnp.asarray(a)


def segmenter_forward(im, params):
    h_ori, w_ori = im.shape[2], im.shape[3]
    im = padding(im, PATCH)
    bx, ci, h, w = im.shape
    gh, gw = h // PATCH, w // PATCH
    enc, dec = params["encoder"], params["decoder"]

    # ---- encoder ----
    # NOTE: patch extraction kept as a tiny XLA rearrange; a direct BlockSpec
    # gather over (C, P, P) windows would violate the (8, 128) block rule here.
    patches = (im.reshape(bx, ci, gh, PATCH, gw, PATCH)
                 .transpose(0, 2, 4, 1, 3, 5)
                 .reshape(bx, gh * gw, ci * PATCH * PATCH))
    x = embed_tokens(patches, enc)                                  # (B, 1+N, D)
    for blk in enc["blocks"]:
        x = transformer_block(x, blk, N_HEADS_ENC)

    # ---- decoder ----
    num_extra_tokens = 1  # 1 + distilled(=0); encoder final LN fused below
    x = decoder_embed(x, enc["norm_g"], enc["norm_b"], dec, num_extra_tokens)
    for blk in dec["blocks"]:
        x = transformer_block(x, blk, N_HEADS_DEC)
    masks = mask_tail(x, dec, N_CLS_DEC)                            # (B, N, K)
    masks = masks.reshape(bx, gh, gw, N_CLS_DEC).transpose(0, 3, 1, 2)  # tiny

    # ---- separable bilinear upsample + fused sigmoid / channel split ----
    ah = bilinear_matrix(h, gh)                                     # (H, gh)
    awt = bilinear_matrix(w, gw).T                                  # (gw, W)
    n_sig = N_CLS if REGRESS else N_CLS_DEC
    up = upsample_sigmoid(masks, ah, awt, n_sig)                    # (B, K, H, W)
    up = unpadding(up, (h_ori, w_ori))

    if not REGRESS:
        return up
    heatmap = up[:, :N_CLS]
    regression_x = up[:, N_CLS:2 * N_CLS]
    regression_y = up[:, 2 * N_CLS:]
    return heatmap, regression_x, regression_y


# --------------------------- parameter construction --------------------------
def _normal(key, shape, std=0.02):
    return std * jax.random.normal(key, shape, jnp.float32)


def init_block(key, d, d_ff):
    ks = jax.random.split(key, 4)
    return dict(
        ln1_g=jnp.ones((d,), jnp.float32), ln1_b=jnp.zeros((d,), jnp.float32),
        qkv_w=_normal(ks[0], (d, 3 * d)), qkv_b=jnp.zeros((3 * d,), jnp.float32),
        proj_w=_normal(ks[1], (d, d)), proj_b=jnp.zeros((d,), jnp.float32),
        ln2_g=jnp.ones((d,), jnp.float32), ln2_b=jnp.zeros((d,), jnp.float32),
        fc1_w=_normal(ks[2], (d, d_ff)), fc1_b=jnp.zeros((d_ff,), jnp.float32),
        fc2_w=_normal(ks[3], (d_ff, d)), fc2_b=jnp.zeros((d,), jnp.float32),
    )


def init_params(key):
    n_patches = (H_IMG // PATCH) * (W_IMG // PATCH)
    keys = jax.random.split(key, 16)
    enc_blocks = [init_block(keys[4 + i], D_ENC, D_FF_ENC) for i in range(N_LAYERS_ENC)]
    dec_blocks = [init_block(keys[8 + i], D_DEC, D_FF_DEC) for i in range(N_LAYERS_DEC)]
    encoder = dict(
        patch_w=_normal(keys[0], (C * PATCH * PATCH, D_ENC)),
        patch_b=jnp.zeros((D_ENC,), jnp.float32),
        cls_token=_normal(keys[1], (1, 1, D_ENC)),
        pos_embed=_normal(keys[2], (1, 1 + n_patches, D_ENC)),
        blocks=enc_blocks,
        norm_g=jnp.ones((D_ENC,), jnp.float32),
        norm_b=jnp.zeros((D_ENC,), jnp.float32),
    )
    decoder = dict(
        proj_dec_w=_normal(keys[3], (D_ENC, D_DEC)),
        proj_dec_b=jnp.zeros((D_DEC,), jnp.float32),
        cls_emb=_normal(keys[12], (1, N_CLS_DEC, D_DEC)),
        blocks=dec_blocks,
        norm_g=jnp.ones((D_DEC,), jnp.float32),
        norm_b=jnp.zeros((D_DEC,), jnp.float32),
        proj_patch=(D_DEC ** -0.5) * jax.random.normal(keys[13], (D_DEC, D_DEC), jnp.float32),
        proj_classes=(D_DEC ** -0.5) * jax.random.normal(keys[14], (D_DEC, D_DEC), jnp.float32),
        mask_norm_g=jnp.ones((N_CLS_DEC,), jnp.float32),
        mask_norm_b=jnp.zeros((N_CLS_DEC,), jnp.float32),
    )
    return dict(encoder=encoder, decoder=decoder)


# ----------------------------------- main -------------------------------------
if __name__ == "__main__":
    key = jax.random.PRNGKey(0)
    k_im, k_par = jax.random.split(key)
    im = jax.random.normal(k_im, (B, C, H_IMG, W_IMG), jnp.float32)
    params = init_params(k_par)

    fwd = jax.jit(segmenter_forward)
    heatmap, reg_x, reg_y = fwd(im, params)
    jax.block_until_ready((heatmap, reg_x, reg_y))

    assert heatmap.shape == (B, N_CLS, H_IMG, W_IMG)
    assert reg_x.shape == (B, N_CLS, H_IMG, W_IMG)
    assert reg_y.shape == (B, N_CLS, H_IMG, W_IMG)
    print("KERNEL_OK")
</pallas_src>

<mosaic_0001>
module attributes {stable_mosaic.version = 11 : i64} {
  func.func @_embed_kernel(%arg0: i32, %arg1: memref<1x4x768xf32, #tpu.memory_space<vmem>>, %arg2: memref<768x32xf32, #tpu.memory_space<vmem>>, %arg3: memref<1x32xf32, #tpu.memory_space<vmem>>, %arg4: memref<1x32xf32, #tpu.memory_space<vmem>>, %arg5: memref<5x32xf32, #tpu.memory_space<vmem>>, %arg6: memref<1x5x32xf32, #tpu.memory_space<vmem>>) attributes {dimension_semantics = [#tpu.dimension_semantics<parallel>], iteration_bounds = array<i64: 2>, scalar_prefetch = 0 : i64, scratch_operands = 0 : i64, tpu.core_type = #tpu.core_type<tc>, window_params = [{transform_indices = @transform_0, window_bounds = array<i64: 1, 4, 768>}, {pipeline_mode = #tpu.pipeline_mode<synchronous>, transform_indices = @transform_1, window_bounds = array<i64: 768, 32>}, {pipeline_mode = #tpu.pipeline_mode<synchronous>, transform_indices = @transform_2, window_bounds = array<i64: 1, 32>}, {pipeline_mode = #tpu.pipeline_mode<synchronous>, transform_indices = @transform_3, window_bounds = array<i64: 1, 32>}, {pipeline_mode = #tpu.pipeline_mode<synchronous>, transform_indices = @transform_4, window_bounds = array<i64: 5, 32>}, {transform_indices = @transform_5, window_bounds = array<i64: 1, 5, 32>}]} {
    %c0 = arith.constant 0 : index
    %c0_0 = arith.constant 0 : index
    %c0_1 = arith.constant 0 : index
    %0 = vector.load %arg1[%c0, %c0_0, %c0_1] : memref<1x4x768xf32, #tpu.memory_space<vmem>>, vector<1x4x768xf32>
    %1 = vector.shape_cast %0 : vector<1x4x768xf32> to vector<4x768xf32>
    %c0_2 = arith.constant 0 : index
    %c0_3 = arith.constant 0 : index
    %2 = vector.load %arg2[%c0_2, %c0_3] : memref<768x32xf32, #tpu.memory_space<vmem>>, vector<768x32xf32>
    %cst = arith.constant dense<0.000000e+00> : vector<4x32xf32>
    %3 = tpu.matmul %1, %2, %cst {dimension_numbers = #tpu.dot_dimension_numbers<[1], [0], [0], [1], [0, 0, 1, 1], [], []>} : vector<4x768xf32>, vector<768x32xf32>, vector<4x32xf32> -> vector<4x32xf32>
    %c0_4 = arith.constant 0 : index
    %c0_5 = arith.constant 0 : index
    %4 = vector.load %arg3[%c0_4, %c0_5] : memref<1x32xf32, #tpu.memory_space<vmem>>, vector<1x32xf32>
    %5 = vector.broadcast %4 : vector<1x32xf32> to vector<4x32xf32>
    %6 = arith.addf %3, %5 : vector<4x32xf32>
    %c0_6 = arith.constant 0 : index
    %c0_7 = arith.constant 0 : index
    %7 = vector.load %arg4[%c0_6, %c0_7] : memref<1x32xf32, #tpu.memory_space<vmem>>, vector<1x32xf32>
    %c0_8 = arith.constant 0 : index
    %c0_9 = arith.constant 0 : index
    %8 = vector.load %arg5[%c0_8, %c0_9] : memref<5x32xf32, #tpu.memory_space<vmem>>, vector<1x32xf32>
    %9 = arith.addf %7, %8 : vector<1x32xf32>
    %c0_10 = arith.constant 0 : index
    %c0_11 = arith.constant 0 : index
    %c0_12 = arith.constant 0 : index
    %10 = vector.load %arg6[%c0_10, %c0_11, %c0_12] : memref<1x5x32xf32, #tpu.memory_space<vmem>>, vector<1x1x32xf32>
    %11 = vector.shape_cast %10 : vector<1x1x32xf32> to vector<1x32xf32>
    %12 = vector.shape_cast %9 : vector<1x32xf32> to vector<1x1x32xf32>
    tpu.vector_store %arg6[%c0_10, %c0_11, %c0_12], %12 {strides = array<i32>} : memref<1x5x32xf32, #tpu.memory_space<vmem>>, vector<1x1x32xf32>,
    %c1 = arith.constant 1 : index
    %c0_13 = arith.constant 0 : index
    %13 = vector.load %arg5[%c1, %c0_13] : memref<5x32xf32, #tpu.memory_space<vmem>>, vector<4x32xf32>
    %14 = arith.addf %6, %13 : vector<4x32xf32>
    %c0_14 = arith.constant 0 : index
    %c1_15 = arith.constant 1 : index
    %c0_16 = arith.constant 0 : index
    %15 = vector.load %arg6[%c0_14, %c1_15, %c0_16] : memref<1x5x32xf32, #tpu.memory_space<vmem>>, vector<1x4x32xf32>
    %16 = vector.shape_cast %15 : vector<1x4x32xf32> to vector<4x32xf32>
    %17 = vector.shape_cast %14 : vector<4x32xf32> to vector<1x4x32xf32>
    tpu.vector_store %arg6[%c0_14, %c1_15, %c0_16], %17 {strides = array<i32>} : memref<1x5x32xf32, #tpu.memory_space<vmem>>, vector<1x4x32xf32>,
    return
  }
  func.func @transform_0(%arg0: i32) -> (i32, i32, i32) {
    %c0_i32 = arith.constant 0 : i32
    %c0_i32_0 = arith.constant 0 : i32
    %c0_i32_1 = arith.constant 0 : i32
    return %arg0, %c0_i32, %c0_i32_0 : i32, i32, i32
  }
  func.func @transform_1(%arg0: i32) -> (i32, i32) {
    %c0_i32 = arith.constant 0 : i32
    %c0_i32_0 = arith.constant 0 : i32
    %c0_i32_1 = arith.constant 0 : i32
    return %c0_i32, %c0_i32_0 : i32, i32
  }
  func.func @transform_2(%arg0: i32) -> (i32, i32) {
    %c0_i32 = arith.constant 0 : i32
    %c0_i32_0 = arith.constant 0 : i32
    %c0_i32_1 = arith.constant 0 : i32
    return %c0_i32, %c0_i32_0 : i32, i32
  }
  func.func @transform_3(%arg0: i32) -> (i32, i32) {
    %c0_i32 = arith.constant 0 : i32
    %c0_i32_0 = arith.constant 0 : i32
    %c0_i32_1 = arith.constant 0 : i32
    return %c0_i32, %c0_i32_0 : i32, i32
  }
  func.func @transform_4(%arg0: i32) -> (i32, i32) {
    %c0_i32 = arith.constant 0 : i32
    %c0_i32_0 = arith.constant 0 : i32
    %c0_i32_1 = arith.constant 0 : i32
    return %c0_i32, %c0_i32_0 : i32, i32
  }
  func.func @transform_5(%arg0: i32) -> (i32, i32, i32) {
    %c0_i32 = arith.constant 0 : i32
    %c0_i32_0 = arith.constant 0 : i32
    %c0_i32_1 = arith.constant 0 : i32
    return %arg0, %c0_i32, %c0_i32_0 : i32, i32, i32
  }
}

module attributes {stable_mosaic.version = 11 : i64} {
  func.func @_dec_embed_kernel(%arg0: i32, %arg1: memref<1x5x32xf32, #tpu.memory_space<vmem>>, %arg2: memref<1x32xf32, #tpu.memory_space<vmem>>, %arg3: memref<1x32xf32, #tpu.memory_space<vmem>>, %arg4: memref<32x32xf32, #tpu.memory_space<vmem>>, %arg5: memref<1x32xf32, #tpu.memory_space<vmem>>, %arg6: memref<9x32xf32, #tpu.memory_space<vmem>>, %arg7: memref<1x13x32xf32, #tpu.memory_space<vmem>>) attributes {dimension_semantics = [#tpu.dimension_semantics<parallel>], iteration_bounds = array<i64: 2>, scalar_prefetch = 0 : i64, scratch_operands = 0 : i64, tpu.core_type = #tpu.core_type<tc>, window_params = [{transform_indices = @transform_0, window_bounds = array<i64: 1, 5, 32>}, {pipeline_mode = #tpu.pipeline_mode<synchronous>, transform_indices = @transform_1, window_bounds = array<i64: 1, 32>}, {pipeline_mode = #tpu.pipeline_mode<synchronous>, transform_indices = @transform_2, window_bounds = array<i64: 1, 32>}, {pipeline_mode = #tpu.pipeline_mode<synchronous>, transform_indices = @transform_3, window_bounds = array<i64: 32, 32>}, {pipeline_mode = #tpu.pipeline_mode<synchronous>, transform_indices = @transform_4, window_bounds = array<i64: 1, 32>}, {pipeline_mode = #tpu.pipeline_mode<synchronous>, transform_indices = @transform_5, window_bounds = array<i64: 9, 32>}, {transform_indices = @transform_6, window_bounds = array<i64: 1, 13, 32>}]} {
    %c0 = arith.constant 0 : index
    %c0_0 = arith.constant 0 : index
    %c0_1 = arith.constant 0 : index
    %0 = vector.load %arg1[%c0, %c0_0, %c0_1] : memref<1x5x32xf32, #tpu.memory_space<vmem>>, vector<1x5x32xf32>
    %1 = vector.shape_cast %0 : vector<1x5x32xf32> to vector<5x32xf32>
    %2 = vector.extract_strided_slice %1 {offsets = [1, 0], sizes = [4, 32], strides = [1, 1]} : vector<5x32xf32> to vector<4x32xf32>
    %c0_2 = arith.constant 0 : index
    %c0_3 = arith.constant 0 : index
    %3 = vector.load %arg2[%c0_2, %c0_3] : memref<1x32xf32, #tpu.memory_space<vmem>>, vector<1x32xf32>
    %c0_4 = arith.constant 0 : index
    %c0_5 = arith.constant 0 : index
    %4 = vector.load %arg3[%c0_4, %c0_5] : memref<1x32xf32, #tpu.memory_space<vmem>>, vector<1x32xf32>
    %cst = arith.constant dense<0.000000e+00> : vector<4xf32>
    %5 = vector.multi_reduction <add>, %2, %cst [1] : vector<4x32xf32> to vector<4xf32>
    %6 = vector.shape_cast %5 : vector<4xf32> to vector<4x1xf32>
    %cst_6 = arith.constant 3.200000e+01 : f32
    %7 = vector.broadcast %cst_6 : f32 to vector<4x1xf32>
    %8 = arith.divf %6, %7 : vector<4x1xf32>
    %9 = vector.broadcast %8 : vector<4x1xf32> to vector<4x32xf32>
    %10 = arith.subf %2, %9 : vector<4x32xf32>
    %11 = arith.mulf %10, %10 : vector<4x32xf32>
    %cst_7 = arith.constant dense<0.000000e+00> : vector<4xf32>
    %12 = vector.multi_reduction <add>, %11, %cst_7 [1] : vector<4x32xf32> to vector<4xf32>
    %13 = vector.shape_cast %12 : vector<4xf32> to vector<4x1xf32>
    %cst_8 = arith.constant 3.200000e+01 : f32
    %14 = vector.broadcast %cst_8 : f32 to vector<4x1xf32>
    %15 = arith.divf %13, %14 : vector<4x1xf32>
    %cst_9 = arith.constant 9.99999974E-6 : f32
    %16 = vector.broadcast %cst_9 : f32 to vector<4x1xf32>
    %17 = arith.addf %15, %16 : vector<4x1xf32>
    %18 = math.rsqrt %17 : vector<4x1xf32>
    %19 = vector.broadcast %18 : vector<4x1xf32> to vector<4x32xf32>
    %20 = arith.mulf %10, %19 : vector<4x32xf32>
    %21 = vector.broadcast %3 : vector<1x32xf32> to vector<4x32xf32>
    %22 = arith.mulf %20, %21 : vector<4x32xf32>
    %23 = vector.broadcast %4 : vector<1x32xf32> to vector<4x32xf32>
    %24 = arith.addf %22, %23 : vector<4x32xf32>
    %c0_10 = arith.constant 0 : index
    %c0_11 = arith.constant 0 : index
    %25 = vector.load %arg4[%c0_10, %c0_11] : memref<32x32xf32, #tpu.memory_space<vmem>>, vector<32x32xf32>
    %cst_12 = arith.constant dense<0.000000e+00> : vector<4x32xf32>
    %26 = tpu.matmul %24, %25, %cst_12 {dimension_numbers = #tpu.dot_dimension_numbers<[1], [0], [0], [1], [0, 0, 1, 1], [], []>} : vector<4x32xf32>, vector<32x32xf32>, vector<4x32xf32> -> vector<4x32xf32>
    %c0_13 = arith.constant 0 : index
    %c0_14 = arith.constant 0 : index
    %27 = vector.load %arg5[%c0_13, %c0_14] : memref<1x32xf32, #tpu.memory_space<vmem>>, vector<1x32xf32>
    %28 = vector.broadcast %27 : vector<1x32xf32> to vector<4x32xf32>
    %29 = arith.addf %26, %28 : vector<4x32xf32>
    %c0_15 = arith.constant 0 : index
    %c0_16 = arith.constant 0 : index
    %c0_17 = arith.constant 0 : index
    %30 = vector.load %arg7[%c0_15, %c0_16, %c0_17] : memref<1x13x32xf32, #tpu.memory_space<vmem>>, vector<1x4x32xf32>
    %31 = vector.shape_cast %30 : vector<1x4x32xf32> to vector<4x32xf32>
    %32 = vector.shape_cast %29 : vector<4x32xf32> to vector<1x4x32xf32>
    tpu.vector_store %arg7[%c0_15, %c0_16, %c0_17], %32 {strides = array<i32>} : memref<1x13x32xf32, #tpu.memory_space<vmem>>, vector<1x4x32xf32>,
    %c0_18 = arith.constant 0 : index
    %c0_19 = arith.constant 0 : index
    %33 = vector.load %arg6[%c0_18, %c0_19] : memref<9x32xf32, #tpu.memory_space<vmem>>, vector<9x32xf32>
    %c0_20 = arith.constant 0 : index
    %c4 = arith.constant 4 : index
    %c0_21 = arith.constant 0 : index
    %34 = vector.load %arg7[%c0_20, %c4, %c0_21] : memref<1x13x32xf32, #tpu.memory_space<vmem>>, vector<1x9x32xf32>
    %35 = vector.shape_cast %34 : vector<1x9x32xf32> to vector<9x32xf32>
    %36 = vector.shape_cast %33 : vector<9x32xf32> to vector<1x9x32xf32>
    tpu.vector_store %arg7[%c0_20, %c4, %c0_21], %36 {strides = array<i32>} : memref<1x13x32xf32, #tpu.memory_space<vmem>>, vector<1x9x32xf32>,
    return
  }
  func.func @transform_0(%arg0: i32) -> (i32, i32, i32) {
    %c0_i32 = arith.constant 0 : i32
    %c0_i32_0 = arith.constant 0 : i32
    %c0_i32_1 = arith.constant 0 : i32
    return %arg0, %c0_i32, %c0_i32_0 : i32, i32, i32
  }
  func.func @transform_1(%arg0: i32) -> (i32, i32) {
    %c0_i32 = arith.constant 0 : i32
    %c0_i32_0 = arith.constant 0 : i32
    %c0_i32_1 = arith.constant 0 : i32
    return %c0_i32, %c0_i32_0 : i32, i32
  }
  func.func @transform_2(%arg0: i32) -> (i32, i32) {
    %c0_i32 = arith.constant 0 : i32
    %c0_i32_0 = arith.constant 0 : i32
    %c0_i32_1 = arith.constant 0 : i32
    return %c0_i32, %c0_i32_0 : i32, i32
  }
  func.func @transform_3(%arg0: i32) -> (i32, i32) {
    %c0_i32 = arith.constant 0 : i32
    %c0_i32_0 = arith.constant 0 : i32
    %c0_i32_1 = arith.constant 0 : i32
    return %c0_i32, %c0_i32_0 : i32, i32
  }
  func.func @transform_4(%arg0: i32) -> (i32, i32) {
    %c0_i32 = arith.constant 0 : i32
    %c0_i32_0 = arith.constant 0 : i32
    %c0_i32_1 = arith.constant 0 : i32
    return %c0_i32, %c0_i32_0 : i32, i32
  }
  func.func @transform_5(%arg0: i32) -> (i32, i32) {
    %c0_i32 = arith.constant 0 : i32
    %c0_i32_0 = arith.constant 0 : i32
    %c0_i32_1 = arith.constant 0 : i32
    return %c0_i32, %c0_i32_0 : i32, i32
  }
  func.func @transform_6(%arg0: i32) -> (i32, i32, i32) {
    %c0_i32 = arith.constant 0 : i32
    %c0_i32_0 = arith.constant 0 : i32
    %c0_i32_1 = arith.constant 0 : i32
    return %arg0, %c0_i32, %c0_i32_0 : i32, i32, i32
  }
}

module attributes {stable_mosaic.version = 11 : i64} {
  func.func @_block_kernel(%arg0: i32, %arg1: memref<1x13x32xf32, #tpu.memory_space<vmem>>, %arg2: memref<1x32xf32, #tpu.memory_space<vmem>>, %arg3: memref<1x32xf32, #tpu.memory_space<vmem>>, %arg4: memref<32x96xf32, #tpu.memory_space<vmem>>, %arg5: memref<1x96xf32, #tpu.memory_space<vmem>>, %arg6: memref<32x32xf32, #tpu.memory_space<vmem>>, %arg7: memref<1x32xf32, #tpu.memory_space<vmem>>, %arg8: memref<1x32xf32, #tpu.memory_space<vmem>>, %arg9: memref<1x32xf32, #tpu.memory_space<vmem>>, %arg10: memref<32x128xf32, #tpu.memory_space<vmem>>, %arg11: memref<1x128xf32, #tpu.memory_space<vmem>>, %arg12: memref<128x32xf32, #tpu.memory_space<vmem>>, %arg13: memref<1x32xf32, #tpu.memory_space<vmem>>, %arg14: memref<1x13x32xf32, #tpu.memory_space<vmem>>) attributes {dimension_semantics = [#tpu.dimension_semantics<parallel>], iteration_bounds = array<i64: 2>, scalar_prefetch = 0 : i64, scratch_operands = 0 : i64, tpu.core_type = #tpu.core_type<tc>, window_params = [{transform_indices = @transform_0, window_bounds = array<i64: 1, 13, 32>}, {pipeline_mode = #tpu.pipeline_mode<synchronous>, transform_indices = @transform_1, window_bounds = array<i64: 1, 32>}, {pipeline_mode = #tpu.pipeline_mode<synchronous>, transform_indices = @transform_2, window_bounds = array<i64: 1, 32>}, {pipeline_mode = #tpu.pipeline_mode<synchronous>, transform_indices = @transform_3, window_bounds = array<i64: 32, 96>}, {pipeline_mode = #tpu.pipeline_mode<synchronous>, transform_indices = @transform_4, window_bounds = array<i64: 1, 96>}, {pipeline_mode = #tpu.pipeline_mode<synchronous>, transform_indices = @transform_5, window_bounds = array<i64: 32, 32>}, {pipeline_mode = #tpu.pipeline_mode<synchronous>, transform_indices = @transform_6, window_bounds = array<i64: 1, 32>}, {pipeline_mode = #tpu.pipeline_mode<synchronous>, transform_indices = @transform_7, window_bounds = array<i64: 1, 32>}, {pipeline_mode = #tpu.pipeline_mode<synchronous>, transform_indices = @transform_8, window_bounds = array<i64: 1, 32>}, {pipeline_mode = #tpu.pipeline_mode<synchronous>, transform_indices = @transform_9, window_bounds = array<i64: 32, 128>}, {pipeline_mode = #tpu.pipeline_mode<synchronous>, transform_indices = @transform_10, window_bounds = array<i64: 1, 128>}, {pipeline_mode = #tpu.pipeline_mode<synchronous>, transform_indices = @transform_11, window_bounds = array<i64: 128, 32>}, {pipeline_mode = #tpu.pipeline_mode<synchronous>, transform_indices = @transform_12, window_bounds = array<i64: 1, 32>}, {transform_indices = @transform_13, window_bounds = array<i64: 1, 13, 32>}]} {
    %c0 = arith.constant 0 : index
    %c0_0 = arith.constant 0 : index
    %c0_1 = arith.constant 0 : index
    %0 = vector.load %arg1[%c0, %c0_0, %c0_1] : memref<1x13x32xf32, #tpu.memory_space<vmem>>, vector<1x13x32xf32>
    %1 = vector.shape_cast %0 : vector<1x13x32xf32> to vector<13x32xf32>
    %c0_2 = arith.constant 0 : index
    %c0_3 = arith.constant 0 : index
    %2 = vector.load %arg2[%c0_2, %c0_3] : memref<1x32xf32, #tpu.memory_space<vmem>>, vector<1x32xf32>
    %c0_4 = arith.constant 0 : index
    %c0_5 = arith.constant 0 : index
    %3 = vector.load %arg3[%c0_4, %c0_5] : memref<1x32xf32, #tpu.memory_space<vmem>>, vector<1x32xf32>
    %cst = arith.constant dense<0.000000e+00> : vector<13xf32>
    %4 = vector.multi_reduction <add>, %1, %cst [1] : vector<13x32xf32> to vector<13xf32>
    %5 = vector.shape_cast %4 : vector<13xf32> to vector<13x1xf32>
    %cst_6 = arith.constant 3.200000e+01 : f32
    %6 = vector.broadcast %cst_6 : f32 to vector<13x1xf32>
    %7 = arith.divf %5, %6 : vector<13x1xf32>
    %8 = vector.broadcast %7 : vector<13x1xf32> to vector<13x32xf32>
    %9 = arith.subf %1, %8 : vector<13x32xf32>
    %10 = arith.mulf %9, %9 : vector<13x32xf32>
    %cst_7 = arith.constant dense<0.000000e+00> : vector<13xf32>
    %11 = vector.multi_reduction <add>, %10, %cst_7 [1] : vector<13x32xf32> to vector<13xf32>
    %12 = vector.shape_cast %11 : vector<13xf32> to vector<13x1xf32>
    %cst_8 = arith.constant 3.200000e+01 : f32
    %13 = vector.broadcast %cst_8 : f32 to vector<13x1xf32>
    %14 = arith.divf %12, %13 : vector<13x1xf32>
    %cst_9 = arith.constant 9.99999974E-6 : f32
    %15 = vector.broadcast %cst_9 : f32 to vector<13x1xf32>
    %16 = arith.addf %14, %15 : vector<13x1xf32>
    %17 = math.rsqrt %16 : vector<13x1xf32>
    %18 = vector.broadcast %17 : vector<13x1xf32> to vector<13x32xf32>
    %19 = arith.mulf %9, %18 : vector<13x32xf32>
    %20 = vector.broadcast %2 : vector<1x32xf32> to vector<13x32xf32>
    %21 = arith.mulf %19, %20 : vector<13x32xf32>
    %22 = vector.broadcast %3 : vector<1x32xf32> to vector<13x32xf32>
    %23 = arith.addf %21, %22 : vector<13x32xf32>
    %c0_10 = arith.constant 0 : index
    %c0_11 = arith.constant 0 : index
    %24 = vector.load %arg4[%c0_10, %c0_11] : memref<32x96xf32, #tpu.memory_space<vmem>>, vector<32x96xf32>
    %cst_12 = arith.constant dense<0.000000e+00> : vector<13x96xf32>
    %25 = tpu.matmul %23, %24, %cst_12 {dimension_numbers = #tpu.dot_dimension_numbers<[1], [0], [0], [1], [0, 0, 1, 1], [], []>} : vector<13x32xf32>, vector<32x96xf32>, vector<13x96xf32> -> vector<13x96xf32>
    %c0_13 = arith.constant 0 : index
    %c0_14 = arith.constant 0 : index
    %26 = vector.load %arg5[%c0_13, %c0_14] : memref<1x96xf32, #tpu.memory_space<vmem>>, vector<1x96xf32>
    %27 = vector.broadcast %26 : vector<1x96xf32> to vector<13x96xf32>
    %28 = arith.addf %25, %27 : vector<13x96xf32>
    %c0_15 = arith.constant 0 : index
    %c0_16 = arith.constant 0 : index
    %29 = vector.load %arg6[%c0_15, %c0_16] : memref<32x32xf32, #tpu.memory_space<vmem>>, vector<32x32xf32>
    %c0_17 = arith.constant 0 : index
    %c0_18 = arith.constant 0 : index
    %30 = vector.load %arg7[%c0_17, %c0_18] : memref<1x32xf32, #tpu.memory_space<vmem>>, vector<1x32xf32>
    %31 = vector.shape_cast %30 : vector<1x32xf32> to vector<1x32xf32>
    %32 = vector.broadcast %31 : vector<1x32xf32> to vector<13x32xf32>
    %33 = vector.extract_strided_slice %28 {offsets = [0, 0], sizes = [13, 16], strides = [1, 1]} : vector<13x96xf32> to vector<13x16xf32>
    %34 = vector.extract_strided_slice %28 {offsets = [0, 32], sizes = [13, 16], strides = [1, 1]} : vector<13x96xf32> to vector<13x16xf32>
    %35 = vector.extract_strided_slice %28 {offsets = [0, 64], sizes = [13, 16], strides = [1, 1]} : vector<13x96xf32> to vector<13x16xf32>
    %cst_19 = arith.constant dense<0.000000e+00> : vector<13x13xf32>
    %36 = tpu.matmul %33, %34, %cst_19 {dimension_numbers = #tpu.dot_dimension_numbers<[1], [1], [0], [0], [0, 0, 1, 0], [], []>} : vector<13x16xf32>, vector<13x16xf32>, vector<13x13xf32> -> vector<13x13xf32>
    %cst_20 = arith.constant 2.500000e-01 : f32
    %37 = vector.broadcast %cst_20 : f32 to vector<13x13xf32>
    %38 = arith.mulf %36, %37 : vector<13x13xf32>
    %cst_21 = arith.constant dense<0xFF800000> : vector<13xf32>
    %39 = vector.multi_reduction <maximumf>, %38, %cst_21 [1] : vector<13x13xf32> to vector<13xf32>
    %40 = vector.shape_cast %39 : vector<13xf32> to vector<13x1xf32>
    %41 = vector.broadcast %40 : vector<13x1xf32> to vector<13x13xf32>
    %42 = arith.subf %38, %41 : vector<13x13xf32>
    %43 = math.exp %42 : vector<13x13xf32>
    %cst_22 = arith.constant dense<0.000000e+00> : vector<13xf32>
    %44 = vector.multi_reduction <add>, %43, %cst_22 [1] : vector<13x13xf32> to vector<13xf32>
    %45 = vector.shape_cast %44 : vector<13xf32> to vector<13x1xf32>
    %46 = tpu.reciprocal %45 {approx = true} : vector<13x1xf32> -> vector<13x1xf32>
    %47 = vector.broadcast %46 : vector<13x1xf32> to vector<13x13xf32>
    %48 = arith.mulf %43, %47 : vector<13x13xf32>
    %cst_23 = arith.constant dense<0.000000e+00> : vector<13x16xf32>
    %49 = tpu.matmul %48, %35, %cst_23 {dimension_numbers = #tpu.dot_dimension_numbers<[1], [0], [0], [1], [0, 0, 1, 1], [], []>} : vector<13x13xf32>, vector<13x16xf32>, vector<13x16xf32> -> vector<13x16xf32>
    %50 = vector.extract_strided_slice %29 {offsets = [0, 0], sizes = [16, 32], strides = [1, 1]} : vector<32x32xf32> to vector<16x32xf32>
    %cst_24 = arith.constant dense<0.000000e+00> : vector<13x32xf32>
    %51 = tpu.matmul %49, %50, %cst_24 {dimension_numbers = #tpu.dot_dimension_numbers<[1], [0], [0], [1], [0, 0, 1, 1], [], []>} : vector<13x16xf32>, vector<16x32xf32>, vector<13x32xf32> -> vector<13x32xf32>
    %52 = arith.addf %32, %51 : vector<13x32xf32>
    %53 = vector.extract_strided_slice %28 {offsets = [0, 16], sizes = [13, 16], strides = [1, 1]} : vector<13x96xf32> to vector<13x16xf32>
    %54 = vector.extract_strided_slice %28 {offsets = [0, 48], sizes = [13, 16], strides = [1, 1]} : vector<13x96xf32> to vector<13x16xf32>
    %55 = vector.extract_strided_slice %28 {offsets = [0, 80], sizes = [13, 16], strides = [1, 1]} : vector<13x96xf32> to vector<13x16xf32>
    %cst_25 = arith.constant dense<0.000000e+00> : vector<13x13xf32>
    %56 = tpu.matmul %53, %54, %cst_25 {dimension_numbers = #tpu.dot_dimension_numbers<[1], [1], [0], [0], [0, 0, 1, 0], [], []>} : vector<13x16xf32>, vector<13x16xf32>, vector<13x13xf32> -> vector<13x13xf32>
    %cst_26 = arith.constant 2.500000e-01 : f32
    %57 = vector.broadcast %cst_26 : f32 to vector<13x13xf32>
    %58 = arith.mulf %56, %57 : vector<13x13xf32>
    %cst_27 = arith.constant dense<0xFF800000> : vector<13xf32>
    %59 = vector.multi_reduction <maximumf>, %58, %cst_27 [1] : vector<13x13xf32> to vector<13xf32>
    %60 = vector.shape_cast %59 : vector<13xf32> to vector<13x1xf32>
    %61 = vector.broadcast %60 : vector<13x1xf32> to vector<13x13xf32>
    %62 = arith.subf %58, %61 : vector<13x13xf32>
    %63 = math.exp %62 : vector<13x13xf32>
    %cst_28 = arith.constant dense<0.000000e+00> : vector<13xf32>
    %64 = vector.multi_reduction <add>, %63, %cst_28 [1] : vector<13x13xf32> to vector<13xf32>
    %65 = vector.shape_cast %64 : vector<13xf32> to vector<13x1xf32>
    %66 = tpu.reciprocal %65 {approx = true} : vector<13x1xf32> -> vector<13x1xf32>
    %67 = vector.broadcast %66 : vector<13x1xf32> to vector<13x13xf32>
    %68 = arith.mulf %63, %67 : vector<13x13xf32>
    %cst_29 = arith.constant dense<0.000000e+00> : vector<13x16xf32>
    %69 = tpu.matmul %68, %55, %cst_29 {dimension_numbers = #tpu.dot_dimension_numbers<[1], [0], [0], [1], [0, 0, 1, 1], [], []>} : vector<13x13xf32>, vector<13x16xf32>, vector<13x16xf32> -> vector<13x16xf32>
    %70 = vector.extract_strided_slice %29 {offsets = [16, 0], sizes = [16, 32], strides = [1, 1]} : vector<32x32xf32> to vector<16x32xf32>
    %cst_30 = arith.constant dense<0.000000e+00> : vector<13x32xf32>
    %71 = tpu.matmul %69, %70, %cst_30 {dimension_numbers = #tpu.dot_dimension_numbers<[1], [0], [0], [1], [0, 0, 1, 1], [], []>} : vector<13x16xf32>, vector<16x32xf32>, vector<13x32xf32> -> vector<13x32xf32>
    %72 = arith.addf %52, %71 : vector<13x32xf32>
    %73 = arith.addf %1, %72 : vector<13x32xf32>
    %c0_31 = arith.constant 0 : index
    %c0_32 = arith.constant 0 : index
    %74 = vector.load %arg8[%c0_31, %c0_32] : memref<1x32xf32, #tpu.memory_space<vmem>>, vector<1x32xf32>
    %c0_33 = arith.constant 0 : index
    %c0_34 = arith.constant 0 : index
    %75 = vector.load %arg9[%c0_33, %c0_34] : memref<1x32xf32, #tpu.memory_space<vmem>>, vector<1x32xf32>
    %cst_35 = arith.constant dense<0.000000e+00> : vector<13xf32>
    %76 = vector.multi_reduction <add>, %73, %cst_35 [1] : vector<13x32xf32> to vector<13xf32>
    %77 = vector.shape_cast %76 : vector<13xf32> to vector<13x1xf32>
    %cst_36 = arith.constant 3.200000e+01 : f32
    %78 = vector.broadcast %cst_36 : f32 to vector<13x1xf32>
    %79 = arith.divf %77, %78 : vector<13x1xf32>
    %80 = vector.broadcast %79 : vector<13x1xf32> to vector<13x32xf32>
    %81 = arith.subf %73, %80 : vector<13x32xf32>
    %82 = arith.mulf %81, %81 : vector<13x32xf32>
    %cst_37 = arith.constant dense<0.000000e+00> : vector<13xf32>
    %83 = vector.multi_reduction <add>, %82, %cst_37 [1] : vector<13x32xf32> to vector<13xf32>
    %84 = vector.shape_cast %83 : vector<13xf32> to vector<13x1xf32>
    %cst_38 = arith.constant 3.200000e+01 : f32
    %85 = vector.broadcast %cst_38 : f32 to vector<13x1xf32>
    %86 = arith.divf %84, %85 : vector<13x1xf32>
    %cst_39 = arith.constant 9.99999974E-6 : f32
    %87 = vector.broadcast %cst_39 : f32 to vector<13x1xf32>
    %88 = arith.addf %86, %87 : vector<13x1xf32>
    %89 = math.rsqrt %88 : vector<13x1xf32>
    %90 = vector.broadcast %89 : vector<13x1xf32> to vector<13x32xf32>
    %91 = arith.mulf %81, %90 : vector<13x32xf32>
    %92 = vector.broadcast %74 : vector<1x32xf32> to vector<13x32xf32>
    %93 = arith.mulf %91, %92 : vector<13x32xf32>
    %94 = vector.broadcast %75 : vector<1x32xf32> to vector<13x32xf32>
    %95 = arith.addf %93, %94 : vector<13x32xf32>
    %c0_40 = arith.constant 0 : index
    %c0_41 = arith.constant 0 : index
    %96 = vector.load %arg10[%c0_40, %c0_41] : memref<32x128xf32, #tpu.memory_space<vmem>>, vector<32x128xf32>
    %cst_42 = arith.constant dense<0.000000e+00> : vector<13x128xf32>
    %97 = tpu.matmul %95, %96, %cst_42 {dimension_numbers = #tpu.dot_dimension_numbers<[1], [0], [0], [1], [0, 0, 1, 1], [], []>} : vector<13x32xf32>, vector<32x128xf32>, vector<13x128xf32> -> vector<13x128xf32>
    %c0_43 = arith.constant 0 : index
    %c0_44 = arith.constant 0 : index
    %98 = vector.load %arg11[%c0_43, %c0_44] : memref<1x128xf32, #tpu.memory_space<vmem>>, vector<1x128xf32>
    %99 = vector.broadcast %98 : vector<1x128xf32> to vector<13x128xf32>
    %100 = arith.addf %97, %99 : vector<13x128xf32>
    %101 = arith.mulf %100, %100 : vector<13x128xf32>
    %102 = arith.mulf %100, %101 : vector<13x128xf32>
    %cst_45 = arith.constant 4.471500e-02 : f32
    %103 = vector.broadcast %cst_45 : f32 to vector<13x128xf32>
    %104 = arith.mulf %103, %102 : vector<13x128xf32>
    %105 = arith.addf %100, %104 : vector<13x128xf32>
    %cst_46 = arith.constant 0.797884583 : f32
    %106 = vector.broadcast %cst_46 : f32 to vector<13x128xf32>
    %107 = arith.mulf %106, %105 : vector<13x128xf32>
    %108 = math.tanh %107 : vector<13x128xf32>
    %cst_47 = arith.constant 1.000000e+00 : f32
    %109 = vector.broadcast %cst_47 : f32 to vector<13x128xf32>
    %110 = arith.addf %109, %108 : vector<13x128xf32>
    %cst_48 = arith.constant 5.000000e-01 : f32
    %111 = vector.broadcast %cst_48 : f32 to vector<13x128xf32>
    %112 = arith.mulf %111, %110 : vector<13x128xf32>
    %113 = arith.mulf %100, %112 : vector<13x128xf32>
    %c0_49 = arith.constant 0 : index
    %c0_50 = arith.constant 0 : index
    %114 = vector.load %arg12[%c0_49, %c0_50] : memref<128x32xf32, #tpu.memory_space<vmem>>, vector<128x32xf32>
    %cst_51 = arith.constant dense<0.000000e+00> : vector<13x32xf32>
    %115 = tpu.matmul %113, %114, %cst_51 {dimension_numbers = #tpu.dot_dimension_numbers<[1], [0], [0], [1], [0, 0, 1, 1], [], []>} : vector<13x128xf32>, vector<128x32xf32>, vector<13x32xf32> -> vector<13x32xf32>
    %c0_52 = arith.constant 0 : index
    %c0_53 = arith.constant 0 : index
    %116 = vector.load %arg13[%c0_52, %c0_53] : memref<1x32xf32, #tpu.memory_space<vmem>>, vector<1x32xf32>
    %117 = vector.broadcast %116 : vector<1x32xf32> to vector<13x32xf32>
    %118 = arith.addf %115, %117 : vector<13x32xf32>
    %119 = arith.addf %73, %118 : vector<13x32xf32>
    %c0_54 = arith.constant 0 : index
    %c0_55 = arith.constant 0 : index
    %c0_56 = arith.constant 0 : index
    %120 = vector.load %arg14[%c0_54, %c0_55, %c0_56] : memref<1x13x32xf32, #tpu.memory_space<vmem>>, vector<1x13x32xf32>
    %121 = vector.shape_cast %120 : vector<1x13x32xf32> to vector<13x32xf32>
    %122 = vector.shape_cast %119 : vector<13x32xf32> to vector<1x13x32xf32>
    tpu.vector_store %arg14[%c0_54, %c0_55, %c0_56], %122 {strides = array<i32>} : memref<1x13x32xf32, #tpu.memory_space<vmem>>, vector<1x13x32xf32>,
    return
  }
  func.func @transform_0(%arg0: i32) -> (i32, i32, i32) {
    %c0_i32 = arith.constant 0 : i32
    %c0_i32_0 = arith.constant 0 : i32
    %c0_i32_1 = arith.constant 0 : i32
    return %arg0, %c0_i32, %c0_i32_0 : i32, i32, i32
  }
  func.func @transform_1(%arg0: i32) -> (i32, i32) {
    %c0_i32 = arith.constant 0 : i32
    %c0_i32_0 = arith.constant 0 : i32
    %c0_i32_1 = arith.constant 0 : i32
    return %c0_i32, %c0_i32_0 : i32, i32
  }
  func.func @transform_2(%arg0: i32) -> (i32, i32) {
    %c0_i32 = arith.constant 0 : i32
    %c0_i32_0 = arith.constant 0 : i32
    %c0_i32_1 = arith.constant 0 : i32
    return %c0_i32, %c0_i32_0 : i32, i32
  }
  func.func @transform_3(%arg0: i32) -> (i32, i32) {
    %c0_i32 = arith.constant 0 : i32
    %c0_i32_0 = arith.constant 0 : i32
    %c0_i32_1 = arith.constant 0 : i32
    return %c0_i32, %c0_i32_0 : i32, i32
  }
  func.func @transform_4(%arg0: i32) -> (i32, i32) {
    %c0_i32 = arith.constant 0 : i32
    %c0_i32_0 = arith.constant 0 : i32
    %c0_i32_1 = arith.constant 0 : i32
    return %c0_i32, %c0_i32_0 : i32, i32
  }
  func.func @transform_5(%arg0: i32) -> (i32, i32) {
    %c0_i32 = arith.constant 0 : i32
    %c0_i32_0 = arith.constant 0 : i32
    %c0_i32_1 = arith.constant 0 : i32
    return %c0_i32, %c0_i32_0 : i32, i32
  }
  func.func @transform_6(%arg0: i32) -> (i32, i32) {
    %c0_i32 = arith.constant 0 : i32
    %c0_i32_0 = arith.constant 0 : i32
    %c0_i32_1 = arith.constant 0 : i32
    return %c0_i32, %c0_i32_0 : i32, i32
  }
  func.func @transform_7(%arg0: i32) -> (i32, i32) {
    %c0_i32 = arith.constant 0 : i32
    %c0_i32_0 = arith.constant 0 : i32
    %c0_i32_1 = arith.constant 0 : i32
    return %c0_i32, %c0_i32_0 : i32, i32
  }
  func.func @transform_8(%arg0: i32) -> (i32, i32) {
    %c0_i32 = arith.constant 0 : i32
    %c0_i32_0 = arith.constant 0 : i32
    %c0_i32_1 = arith.constant 0 : i32
    return %c0_i32, %c0_i32_0 : i32, i32
  }
  func.func @transform_9(%arg0: i32) -> (i32, i32) {
    %c0_i32 = arith.constant 0 : i32
    %c0_i32_0 = arith.constant 0 : i32
    %c0_i32_1 = arith.constant 0 : i32
    return %c0_i32, %c0_i32_0 : i32, i32
  }
  func.func @transform_10(%arg0: i32) -> (i32, i32) {
    %c0_i32 = arith.constant 0 : i32
    %c0_i32_0 = arith.constant 0 : i32
    %c0_i32_1 = arith.constant 0 : i32
    return %c0_i32, %c0_i32_0 : i32, i32
  }
  func.func @transform_11(%arg0: i32) -> (i32, i32) {
    %c0_i32 = arith.constant 0 : i32
    %c0_i32_0 = arith.constant 0 : i32
    %c0_i32_1 = arith.constant 0 : i32
    return %c0_i32, %c0_i32_0 : i32, i32
  }
  func.func @transform_12(%arg0: i32) -> (i32, i32) {
    %c0_i32 = arith.constant 0 : i32
    %c0_i32_0 = arith.constant 0 : i32
    %c0_i32_1 = arith.constant 0 : i32
    return %c0_i32, %c0_i32_0 : i32, i32
  }
  func.func @transform_13(%arg0: i32) -> (i32, i32, i32) {
    %c0_i32 = arith.constant 0 : i32
    %c0_i32_0 = arith.constant 0 : i32
    %c0_i32_1 = arith.constant 0 : i32
    return %arg0, %c0_i32, %c0_i32_0 : i32, i32, i32
  }
}

module attributes {stable_mosaic.version = 11 : i64} {
  func.func @_block_kernel(%arg0: i32, %arg1: memref<1x5x32xf32, #tpu.memory_space<vmem>>, %arg2: memref<1x32xf32, #tpu.memory_space<vmem>>, %arg3: memref<1x32xf32, #tpu.memory_space<vmem>>, %arg4: memref<32x96xf32, #tpu.memory_space<vmem>>, %arg5: memref<1x96xf32, #tpu.memory_space<vmem>>, %arg6: memref<32x32xf32, #tpu.memory_space<vmem>>, %arg7: memref<1x32xf32, #tpu.memory_space<vmem>>, %arg8: memref<1x32xf32, #tpu.memory_space<vmem>>, %arg9: memref<1x32xf32, #tpu.memory_space<vmem>>, %arg10: memref<32x128xf32, #tpu.memory_space<vmem>>, %arg11: memref<1x128xf32, #tpu.memory_space<vmem>>, %arg12: memref<128x32xf32, #tpu.memory_space<vmem>>, %arg13: memref<1x32xf32, #tpu.memory_space<vmem>>, %arg14: memref<1x5x32xf32, #tpu.memory_space<vmem>>) attributes {dimension_semantics = [#tpu.dimension_semantics<parallel>], iteration_bounds = array<i64: 2>, scalar_prefetch = 0 : i64, scratch_operands = 0 : i64, tpu.core_type = #tpu.core_type<tc>, window_params = [{transform_indices = @transform_0, window_bounds = array<i64: 1, 5, 32>}, {pipeline_mode = #tpu.pipeline_mode<synchronous>, transform_indices = @transform_1, window_bounds = array<i64: 1, 32>}, {pipeline_mode = #tpu.pipeline_mode<synchronous>, transform_indices = @transform_2, window_bounds = array<i64: 1, 32>}, {pipeline_mode = #tpu.pipeline_mode<synchronous>, transform_indices = @transform_3, window_bounds = array<i64: 32, 96>}, {pipeline_mode = #tpu.pipeline_mode<synchronous>, transform_indices = @transform_4, window_bounds = array<i64: 1, 96>}, {pipeline_mode = #tpu.pipeline_mode<synchronous>, transform_indices = @transform_5, window_bounds = array<i64: 32, 32>}, {pipeline_mode = #tpu.pipeline_mode<synchronous>, transform_indices = @transform_6, window_bounds = array<i64: 1, 32>}, {pipeline_mode = #tpu.pipeline_mode<synchronous>, transform_indices = @transform_7, window_bounds = array<i64: 1, 32>}, {pipeline_mode = #tpu.pipeline_mode<synchronous>, transform_indices = @transform_8, window_bounds = array<i64: 1, 32>}, {pipeline_mode = #tpu.pipeline_mode<synchronous>, transform_indices = @transform_9, window_bounds = array<i64: 32, 128>}, {pipeline_mode = #tpu.pipeline_mode<synchronous>, transform_indices = @transform_10, window_bounds = array<i64: 1, 128>}, {pipeline_mode = #tpu.pipeline_mode<synchronous>, transform_indices = @transform_11, window_bounds = array<i64: 128, 32>}, {pipeline_mode = #tpu.pipeline_mode<synchronous>, transform_indices = @transform_12, window_bounds = array<i64: 1, 32>}, {transform_indices = @transform_13, window_bounds = array<i64: 1, 5, 32>}]} {
    %c0 = arith.constant 0 : index
    %c0_0 = arith.constant 0 : index
    %c0_1 = arith.constant 0 : index
    %0 = vector.load %arg1[%c0, %c0_0, %c0_1] : memref<1x5x32xf32, #tpu.memory_space<vmem>>, vector<1x5x32xf32>
    %1 = vector.shape_cast %0 : vector<1x5x32xf32> to vector<5x32xf32>
    %c0_2 = arith.constant 0 : index
    %c0_3 = arith.constant 0 : index
    %2 = vector.load %arg2[%c0_2, %c0_3] : memref<1x32xf32, #tpu.memory_space<vmem>>, vector<1x32xf32>
    %c0_4 = arith.constant 0 : index
    %c0_5 = arith.constant 0 : index
    %3 = vector.load %arg3[%c0_4, %c0_5] : memref<1x32xf32, #tpu.memory_space<vmem>>, vector<1x32xf32>
    %cst = arith.constant dense<0.000000e+00> : vector<5xf32>
    %4 = vector.multi_reduction <add>, %1, %cst [1] : vector<5x32xf32> to vector<5xf32>
    %5 = vector.shape_cast %4 : vector<5xf32> to vector<5x1xf32>
    %cst_6 = arith.constant 3.200000e+01 : f32
    %6 = vector.broadcast %cst_6 : f32 to vector<5x1xf32>
    %7 = arith.divf %5, %6 : vector<5x1xf32>
    %8 = vector.broadcast %7 : vector<5x1xf32> to vector<5x32xf32>
    %9 = arith.subf %1, %8 : vector<5x32xf32>
    %10 = arith.mulf %9, %9 : vector<5x32xf32>
    %cst_7 = arith.constant dense<0.000000e+00> : vector<5xf32>
    %11 = vector.multi_reduction <add>, %10, %cst_7 [1] : vector<5x32xf32> to vector<5xf32>
    %12 = vector.shape_cast %11 : vector<5xf32> to vector<5x1xf32>
    %cst_8 = arith.constant 3.200000e+01 : f32
    %13 = vector.broadcast %cst_8 : f32 to vector<5x1xf32>
    %14 = arith.divf %12, %13 : vector<5x1xf32>
    %cst_9 = arith.constant 9.99999974E-6 : f32
    %15 = vector.broadcast %cst_9 : f32 to vector<5x1xf32>
    %16 = arith.addf %14, %15 : vector<5x1xf32>
    %17 = math.rsqrt %16 : vector<5x1xf32>
    %18 = vector.broadcast %17 : vector<5x1xf32> to vector<5x32xf32>
    %19 = arith.mulf %9, %18 : vector<5x32xf32>
    %20 = vector.broadcast %2 : vector<1x32xf32> to vector<5x32xf32>
    %21 = arith.mulf %19, %20 : vector<5x32xf32>
    %22 = vector.broadcast %3 : vector<1x32xf32> to vector<5x32xf32>
    %23 = arith.addf %21, %22 : vector<5x32xf32>
    %c0_10 = arith.constant 0 : index
    %c0_11 = arith.constant 0 : index
    %24 = vector.load %arg4[%c0_10, %c0_11] : memref<32x96xf32, #tpu.memory_space<vmem>>, vector<32x96xf32>
    %cst_12 = arith.constant dense<0.000000e+00> : vector<5x96xf32>
    %25 = tpu.matmul %23, %24, %cst_12 {dimension_numbers = #tpu.dot_dimension_numbers<[1], [0], [0], [1], [0, 0, 1, 1], [], []>} : vector<5x32xf32>, vector<32x96xf32>, vector<5x96xf32> -> vector<5x96xf32>
    %c0_13 = arith.constant 0 : index
    %c0_14 = arith.constant 0 : index
    %26 = vector.load %arg5[%c0_13, %c0_14] : memref<1x96xf32, #tpu.memory_space<vmem>>, vector<1x96xf32>
    %27 = vector.broadcast %26 : vector<1x96xf32> to vector<5x96xf32>
    %28 = arith.addf %25, %27 : vector<5x96xf32>
    %c0_15 = arith.constant 0 : index
    %c0_16 = arith.constant 0 : index
    %29 = vector.load %arg6[%c0_15, %c0_16] : memref<32x32xf32, #tpu.memory_space<vmem>>, vector<32x32xf32>
    %c0_17 = arith.constant 0 : index
    %c0_18 = arith.constant 0 : index
    %30 = vector.load %arg7[%c0_17, %c0_18] : memref<1x32xf32, #tpu.memory_space<vmem>>, vector<1x32xf32>
    %31 = vector.shape_cast %30 : vector<1x32xf32> to vector<1x32xf32>
    %32 = vector.broadcast %31 : vector<1x32xf32> to vector<5x32xf32>
    %33 = vector.extract_strided_slice %28 {offsets = [0, 0], sizes = [5, 16], strides = [1, 1]} : vector<5x96xf32> to vector<5x16xf32>
    %34 = vector.extract_strided_slice %28 {offsets = [0, 32], sizes = [5, 16], strides = [1, 1]} : vector<5x96xf32> to vector<5x16xf32>
    %35 = vector.extract_strided_slice %28 {offsets = [0, 64], sizes = [5, 16], strides = [1, 1]} : vector<5x96xf32> to vector<5x16xf32>
    %cst_19 = arith.constant dense<0.000000e+00> : vector<5x5xf32>
    %36 = tpu.matmul %33, %34, %cst_19 {dimension_numbers = #tpu.dot_dimension_numbers<[1], [1], [0], [0], [0, 0, 1, 0], [], []>} : vector<5x16xf32>, vector<5x16xf32>, vector<5x5xf32> -> vector<5x5xf32>
    %cst_20 = arith.constant 2.500000e-01 : f32
    %37 = vector.broadcast %cst_20 : f32 to vector<5x5xf32>
    %38 = arith.mulf %36, %37 : vector<5x5xf32>
    %cst_21 = arith.constant dense<0xFF800000> : vector<5xf32>
    %39 = vector.multi_reduction <maximumf>, %38, %cst_21 [1] : vector<5x5xf32> to vector<5xf32>
    %40 = vector.shape_cast %39 : vector<5xf32> to vector<5x1xf32>
    %41 = vector.broadcast %40 : vector<5x1xf32> to vector<5x5xf32>
    %42 = arith.subf %38, %41 : vector<5x5xf32>
    %43 = math.exp %42 : vector<5x5xf32>
    %cst_22 = arith.constant dense<0.000000e+00> : vector<5xf32>
    %44 = vector.multi_reduction <add>, %43, %cst_22 [1] : vector<5x5xf32> to vector<5xf32>
    %45 = vector.shape_cast %44 : vector<5xf32> to vector<5x1xf32>
    %46 = tpu.reciprocal %45 {approx = true} : vector<5x1xf32> -> vector<5x1xf32>
    %47 = vector.broadcast %46 : vector<5x1xf32> to vector<5x5xf32>
    %48 = arith.mulf %43, %47 : vector<5x5xf32>
    %cst_23 = arith.constant dense<0.000000e+00> : vector<5x16xf32>
    %49 = tpu.matmul %48, %35, %cst_23 {dimension_numbers = #tpu.dot_dimension_numbers<[1], [0], [0], [1], [0, 0, 1, 1], [], []>} : vector<5x5xf32>, vector<5x16xf32>, vector<5x16xf32> -> vector<5x16xf32>
    %50 = vector.extract_strided_slice %29 {offsets = [0, 0], sizes = [16, 32], strides = [1, 1]} : vector<32x32xf32> to vector<16x32xf32>
    %cst_24 = arith.constant dense<0.000000e+00> : vector<5x32xf32>
    %51 = tpu.matmul %49, %50, %cst_24 {dimension_numbers = #tpu.dot_dimension_numbers<[1], [0], [0], [1], [0, 0, 1, 1], [], []>} : vector<5x16xf32>, vector<16x32xf32>, vector<5x32xf32> -> vector<5x32xf32>
    %52 = arith.addf %32, %51 : vector<5x32xf32>
    %53 = vector.extract_strided_slice %28 {offsets = [0, 16], sizes = [5, 16], strides = [1, 1]} : vector<5x96xf32> to vector<5x16xf32>
    %54 = vector.extract_strided_slice %28 {offsets = [0, 48], sizes = [5, 16], strides = [1, 1]} : vector<5x96xf32> to vector<5x16xf32>
    %55 = vector.extract_strided_slice %28 {offsets = [0, 80], sizes = [5, 16], strides = [1, 1]} : vector<5x96xf32> to vector<5x16xf32>
    %cst_25 = arith.constant dense<0.000000e+00> : vector<5x5xf32>
    %56 = tpu.matmul %53, %54, %cst_25 {dimension_numbers = #tpu.dot_dimension_numbers<[1], [1], [0], [0], [0, 0, 1, 0], [], []>} : vector<5x16xf32>, vector<5x16xf32>, vector<5x5xf32> -> vector<5x5xf32>
    %cst_26 = arith.constant 2.500000e-01 : f32
    %57 = vector.broadcast %cst_26 : f32 to vector<5x5xf32>
    %58 = arith.mulf %56, %57 : vector<5x5xf32>
    %cst_27 = arith.constant dense<0xFF800000> : vector<5xf32>
    %59 = vector.multi_reduction <maximumf>, %58, %cst_27 [1] : vector<5x5xf32> to vector<5xf32>
    %60 = vector.shape_cast %59 : vector<5xf32> to vector<5x1xf32>
    %61 = vector.broadcast %60 : vector<5x1xf32> to vector<5x5xf32>
    %62 = arith.subf %58, %61 : vector<5x5xf32>
    %63 = math.exp %62 : vector<5x5xf32>
    %cst_28 = arith.constant dense<0.000000e+00> : vector<5xf32>
    %64 = vector.multi_reduction <add>, %63, %cst_28 [1] : vector<5x5xf32> to vector<5xf32>
    %65 = vector.shape_cast %64 : vector<5xf32> to vector<5x1xf32>
    %66 = tpu.reciprocal %65 {approx = true} : vector<5x1xf32> -> vector<5x1xf32>
    %67 = vector.broadcast %66 : vector<5x1xf32> to vector<5x5xf32>
    %68 = arith.mulf %63, %67 : vector<5x5xf32>
    %cst_29 = arith.constant dense<0.000000e+00> : vector<5x16xf32>
    %69 = tpu.matmul %68, %55, %cst_29 {dimension_numbers = #tpu.dot_dimension_numbers<[1], [0], [0], [1], [0, 0, 1, 1], [], []>} : vector<5x5xf32>, vector<5x16xf32>, vector<5x16xf32> -> vector<5x16xf32>
    %70 = vector.extract_strided_slice %29 {offsets = [16, 0], sizes = [16, 32], strides = [1, 1]} : vector<32x32xf32> to vector<16x32xf32>
    %cst_30 = arith.constant dense<0.000000e+00> : vector<5x32xf32>
    %71 = tpu.matmul %69, %70, %cst_30 {dimension_numbers = #tpu.dot_dimension_numbers<[1], [0], [0], [1], [0, 0, 1, 1], [], []>} : vector<5x16xf32>, vector<16x32xf32>, vector<5x32xf32> -> vector<5x32xf32>
    %72 = arith.addf %52, %71 : vector<5x32xf32>
    %73 = arith.addf %1, %72 : vector<5x32xf32>
    %c0_31 = arith.constant 0 : index
    %c0_32 = arith.constant 0 : index
    %74 = vector.load %arg8[%c0_31, %c0_32] : memref<1x32xf32, #tpu.memory_space<vmem>>, vector<1x32xf32>
    %c0_33 = arith.constant 0 : index
    %c0_34 = arith.constant 0 : index
    %75 = vector.load %arg9[%c0_33, %c0_34] : memref<1x32xf32, #tpu.memory_space<vmem>>, vector<1x32xf32>
    %cst_35 = arith.constant dense<0.000000e+00> : vector<5xf32>
    %76 = vector.multi_reduction <add>, %73, %cst_35 [1] : vector<5x32xf32> to vector<5xf32>
    %77 = vector.shape_cast %76 : vector<5xf32> to vector<5x1xf32>
    %cst_36 = arith.constant 3.200000e+01 : f32
    %78 = vector.broadcast %cst_36 : f32 to vector<5x1xf32>
    %79 = arith.divf %77, %78 : vector<5x1xf32>
    %80 = vector.broadcast %79 : vector<5x1xf32> to vector<5x32xf32>
    %81 = arith.subf %73, %80 : vector<5x32xf32>
    %82 = arith.mulf %81, %81 : vector<5x32xf32>
    %cst_37 = arith.constant dense<0.000000e+00> : vector<5xf32>
    %83 = vector.multi_reduction <add>, %82, %cst_37 [1] : vector<5x32xf32> to vector<5xf32>
    %84 = vector.shape_cast %83 : vector<5xf32> to vector<5x1xf32>
    %cst_38 = arith.constant 3.200000e+01 : f32
    %85 = vector.broadcast %cst_38 : f32 to vector<5x1xf32>
    %86 = arith.divf %84, %85 : vector<5x1xf32>
    %cst_39 = arith.constant 9.99999974E-6 : f32
    %87 = vector.broadcast %cst_39 : f32 to vector<5x1xf32>
    %88 = arith.addf %86, %87 : vector<5x1xf32>
    %89 = math.rsqrt %88 : vector<5x1xf32>
    %90 = vector.broadcast %89 : vector<5x1xf32> to vector<5x32xf32>
    %91 = arith.mulf %81, %90 : vector<5x32xf32>
    %92 = vector.broadcast %74 : vector<1x32xf32> to vector<5x32xf32>
    %93 = arith.mulf %91, %92 : vector<5x32xf32>
    %94 = vector.broadcast %75 : vector<1x32xf32> to vector<5x32xf32>
    %95 = arith.addf %93, %94 : vector<5x32xf32>
    %c0_40 = arith.constant 0 : index
    %c0_41 = arith.constant 0 : index
    %96 = vector.load %arg10[%c0_40, %c0_41] : memref<32x128xf32, #tpu.memory_space<vmem>>, vector<32x128xf32>
    %cst_42 = arith.constant dense<0.000000e+00> : vector<5x128xf32>
    %97 = tpu.matmul %95, %96, %cst_42 {dimension_numbers = #tpu.dot_dimension_numbers<[1], [0], [0], [1], [0, 0, 1, 1], [], []>} : vector<5x32xf32>, vector<32x128xf32>, vector<5x128xf32> -> vector<5x128xf32>
    %c0_43 = arith.constant 0 : index
    %c0_44 = arith.constant 0 : index
    %98 = vector.load %arg11[%c0_43, %c0_44] : memref<1x128xf32, #tpu.memory_space<vmem>>, vector<1x128xf32>
    %99 = vector.broadcast %98 : vector<1x128xf32> to vector<5x128xf32>
    %100 = arith.addf %97, %99 : vector<5x128xf32>
    %101 = arith.mulf %100, %100 : vector<5x128xf32>
    %102 = arith.mulf %100, %101 : vector<5x128xf32>
    %cst_45 = arith.constant 4.471500e-02 : f32
    %103 = vector.broadcast %cst_45 : f32 to vector<5x128xf32>
    %104 = arith.mulf %103, %102 : vector<5x128xf32>
    %105 = arith.addf %100, %104 : vector<5x128xf32>
    %cst_46 = arith.constant 0.797884583 : f32
    %106 = vector.broadcast %cst_46 : f32 to vector<5x128xf32>
    %107 = arith.mulf %106, %105 : vector<5x128xf32>
    %108 = math.tanh %107 : vector<5x128xf32>
    %cst_47 = arith.constant 1.000000e+00 : f32
    %109 = vector.broadcast %cst_47 : f32 to vector<5x128xf32>
    %110 = arith.addf %109, %108 : vector<5x128xf32>
    %cst_48 = arith.constant 5.000000e-01 : f32
    %111 = vector.broadcast %cst_48 : f32 to vector<5x128xf32>
    %112 = arith.mulf %111, %110 : vector<5x128xf32>
    %113 = arith.mulf %100, %112 : vector<5x128xf32>
    %c0_49 = arith.constant 0 : index
    %c0_50 = arith.constant 0 : index
    %114 = vector.load %arg12[%c0_49, %c0_50] : memref<128x32xf32, #tpu.memory_space<vmem>>, vector<128x32xf32>
    %cst_51 = arith.constant dense<0.000000e+00> : vector<5x32xf32>
    %115 = tpu.matmul %113, %114, %cst_51 {dimension_numbers = #tpu.dot_dimension_numbers<[1], [0], [0], [1], [0, 0, 1, 1], [], []>} : vector<5x128xf32>, vector<128x32xf32>, vector<5x32xf32> -> vector<5x32xf32>
    %c0_52 = arith.constant 0 : index
    %c0_53 = arith.constant 0 : index
    %116 = vector.load %arg13[%c0_52, %c0_53] : memref<1x32xf32, #tpu.memory_space<vmem>>, vector<1x32xf32>
    %117 = vector.broadcast %116 : vector<1x32xf32> to vector<5x32xf32>
    %118 = arith.addf %115, %117 : vector<5x32xf32>
    %119 = arith.addf %73, %118 : vector<5x32xf32>
    %c0_54 = arith.constant 0 : index
    %c0_55 = arith.constant 0 : index
    %c0_56 = arith.constant 0 : index
    %120 = vector.load %arg14[%c0_54, %c0_55, %c0_56] : memref<1x5x32xf32, #tpu.memory_space<vmem>>, vector<1x5x32xf32>
    %121 = vector.shape_cast %120 : vector<1x5x32xf32> to vector<5x32xf32>
    %122 = vector.shape_cast %119 : vector<5x32xf32> to vector<1x5x32xf32>
    tpu.vector_store %arg14[%c0_54, %c0_55, %c0_56], %122 {strides = array<i32>} : memref<1x5x32xf32, #tpu.memory_space<vmem>>, vector<1x5x32xf32>,
    return
  }
  func.func @transform_0(%arg0: i32) -> (i32, i32, i32) {
    %c0_i32 = arith.constant 0 : i32
    %c0_i32_0 = arith.constant 0 : i32
    %c0_i32_1 = arith.constant 0 : i32
    return %arg0, %c0_i32, %c0_i32_0 : i32, i32, i32
  }
  func.func @transform_1(%arg0: i32) -> (i32, i32) {
    %c0_i32 = arith.constant 0 : i32
    %c0_i32_0 = arith.constant 0 : i32
    %c0_i32_1 = arith.constant 0 : i32
    return %c0_i32, %c0_i32_0 : i32, i32
  }
  func.func @transform_2(%arg0: i32) -> (i32, i32) {
    %c0_i32 = arith.constant 0 : i32
    %c0_i32_0 = arith.constant 0 : i32
    %c0_i32_1 = arith.constant 0 : i32
    return %c0_i32, %c0_i32_0 : i32, i32
  }
  func.func @transform_3(%arg0: i32) -> (i32, i32) {
    %c0_i32 = arith.constant 0 : i32
    %c0_i32_0 = arith.constant 0 : i32
    %c0_i32_1 = arith.constant 0 : i32
    return %c0_i32, %c0_i32_0 : i32, i32
  }
  func.func @transform_4(%arg0: i32) -> (i32, i32) {
    %c0_i32 = arith.constant 0 : i32
    %c0_i32_0 = arith.constant 0 : i32
    %c0_i32_1 = arith.constant 0 : i32
    return %c0_i32, %c0_i32_0 : i32, i32
  }
  func.func @transform_5(%arg0: i32) -> (i32, i32) {
    %c0_i32 = arith.constant 0 : i32
    %c0_i32_0 = arith.constant 0 : i32
    %c0_i32_1 = arith.constant 0 : i32
    return %c0_i32, %c0_i32_0 : i32, i32
  }
  func.func @transform_6(%arg0: i32) -> (i32, i32) {
    %c0_i32 = arith.constant 0 : i32
    %c0_i32_0 = arith.constant 0 : i32
    %c0_i32_1 = arith.constant 0 : i32
    return %c0_i32, %c0_i32_0 : i32, i32
  }
  func.func @transform_7(%arg0: i32) -> (i32, i32) {
    %c0_i32 = arith.constant 0 : i32
    %c0_i32_0 = arith.constant 0 : i32
    %c0_i32_1 = arith.constant 0 : i32
    return %c0_i32, %c0_i32_0 : i32, i32
  }
  func.func @transform_8(%arg0: i32) -> (i32, i32) {
    %c0_i32 = arith.constant 0 : i32
    %c0_i32_0 = arith.constant 0 : i32
    %c0_i32_1 = arith.constant 0 : i32
    return %c0_i32, %c0_i32_0 : i32, i32
  }
  func.func @transform_9(%arg0: i32) -> (i32, i32) {
    %c0_i32 = arith.constant 0 : i32
    %c0_i32_0 = arith.constant 0 : i32
    %c0_i32_1 = arith.constant 0 : i32
    return %c0_i32, %c0_i32_0 : i32, i32
  }
  func.func @transform_10(%arg0: i32) -> (i32, i32) {
    %c0_i32 = arith.constant 0 : i32
    %c0_i32_0 = arith.constant 0 : i32
    %c0_i32_1 = arith.constant 0 : i32
    return %c0_i32, %c0_i32_0 : i32, i32
  }
  func.func @transform_11(%arg0: i32) -> (i32, i32) {
    %c0_i32 = arith.constant 0 : i32
    %c0_i32_0 = arith.constant 0 : i32
    %c0_i32_1 = arith.constant 0 : i32
    return %c0_i32, %c0_i32_0 : i32, i32
  }
  func.func @transform_12(%arg0: i32) -> (i32, i32) {
    %c0_i32 = arith.constant 0 : i32
    %c0_i32_0 = arith.constant 0 : i32
    %c0_i32_1 = arith.constant 0 : i32
    return %c0_i32, %c0_i32_0 : i32, i32
  }
  func.func @transform_13(%arg0: i32) -> (i32, i32, i32) {
    %c0_i32 = arith.constant 0 : i32
    %c0_i32_0 = arith.constant 0 : i32
    %c0_i32_1 = arith.constant 0 : i32
    return %arg0, %c0_i32, %c0_i32_0 : i32, i32, i32
  }
}

module attributes {stable_mosaic.version = 11 : i64} {
  func.func @_upsample_kernel(%arg0: i32, %arg1: memref<1x9x2x2xf32, #tpu.memory_space<vmem>>, %arg2: memref<32x2xf32, #tpu.memory_space<vmem>>, %arg3: memref<2x32xf32, #tpu.memory_space<vmem>>, %arg4: memref<1x9x32x32xf32, #tpu.memory_space<vmem>>) attributes {dimension_semantics = [#tpu.dimension_semantics<parallel>], iteration_bounds = array<i64: 2>, scalar_prefetch = 0 : i64, scratch_operands = 0 : i64, tpu.core_type = #tpu.core_type<tc>, window_params = [{transform_indices = @transform_0, window_bounds = array<i64: 1, 9, 2, 2>}, {pipeline_mode = #tpu.pipeline_mode<synchronous>, transform_indices = @transform_1, window_bounds = array<i64: 32, 2>}, {pipeline_mode = #tpu.pipeline_mode<synchronous>, transform_indices = @transform_2, window_bounds = array<i64: 2, 32>}, {transform_indices = @transform_3, window_bounds = array<i64: 1, 9, 32, 32>}]} {
    %c0 = arith.constant 0 : index
    %c0_0 = arith.constant 0 : index
    %c0_1 = arith.constant 0 : index
    %c0_2 = arith.constant 0 : index
    %0 = vector.load %arg1[%c0, %c0_0, %c0_1, %c0_2] : memref<1x9x2x2xf32, #tpu.memory_space<vmem>>, vector<1x9x2x2xf32>
    %1 = vector.shape_cast %0 : vector<1x9x2x2xf32> to vector<9x2x2xf32>
    %c0_3 = arith.constant 0 : index
    %c0_4 = arith.constant 0 : index
    %2 = vector.load %arg2[%c0_3, %c0_4] : memref<32x2xf32, #tpu.memory_space<vmem>>, vector<32x2xf32>
    %c0_5 = arith.constant 0 : index
    %c0_6 = arith.constant 0 : index
    %3 = vector.load %arg3[%c0_5, %c0_6] : memref<2x32xf32, #tpu.memory_space<vmem>>, vector<2x32xf32>
    %4 = vector.extract_strided_slice %1 {offsets = [0, 0, 0], sizes = [1, 2, 2], strides = [1, 1, 1]} : vector<9x2x2xf32> to vector<1x2x2xf32>
    %5 = vector.shape_cast %4 : vector<1x2x2xf32> to vector<2x2xf32>
    %cst = arith.constant dense<0.000000e+00> : vector<2x32xf32>
    %6 = tpu.matmul %5, %3, %cst {dimension_numbers = #tpu.dot_dimension_numbers<[1], [0], [0], [1], [0, 0, 1, 1], [], []>} : vector<2x2xf32>, vector<2x32xf32>, vector<2x32xf32> -> vector<2x32xf32>
    %cst_7 = arith.constant dense<0.000000e+00> : vector<32x32xf32>
    %7 = tpu.matmul %2, %6, %cst_7 {dimension_numbers = #tpu.dot_dimension_numbers<[1], [0], [0], [1], [0, 0, 1, 1], [], []>} : vector<32x2xf32>, vector<2x32xf32>, vector<32x32xf32> -> vector<32x32xf32>
    %8 = arith.negf %7 : vector<32x32xf32>
    %9 = math.exp %8 : vector<32x32xf32>
    %cst_8 = arith.constant 1.000000e+00 : f32
    %10 = vector.broadcast %cst_8 : f32 to vector<32x32xf32>
    %11 = arith.addf %10, %9 : vector<32x32xf32>
    %12 = arith.divf %10, %11 : vector<32x32xf32>
    %c0_9 = arith.constant 0 : index
    %c0_10 = arith.constant 0 : index
    %c0_11 = arith.constant 0 : index
    %c0_12 = arith.constant 0 : index
    %13 = vector.load %arg4[%c0_9, %c0_10, %c0_11, %c0_12] : memref<1x9x32x32xf32, #tpu.memory_space<vmem>>, vector<1x1x32x32xf32>
    %14 = vector.shape_cast %13 : vector<1x1x32x32xf32> to vector<32x32xf32>
    %15 = vector.shape_cast %12 : vector<32x32xf32> to vector<1x1x32x32xf32>
    tpu.vector_store %arg4[%c0_9, %c0_10, %c0_11, %c0_12], %15 {strides = array<i32>} : memref<1x9x32x32xf32, #tpu.memory_space<vmem>>, vector<1x1x32x32xf32>,
    %16 = vector.extract_strided_slice %1 {offsets = [1, 0, 0], sizes = [1, 2, 2], strides = [1, 1, 1]} : vector<9x2x2xf32> to vector<1x2x2xf32>
    %17 = vector.shape_cast %16 : vector<1x2x2xf32> to vector<2x2xf32>
    %cst_13 = arith.constant dense<0.000000e+00> : vector<2x32xf32>
    %18 = tpu.matmul %17, %3, %cst_13 {dimension_numbers = #tpu.dot_dimension_numbers<[1], [0], [0], [1], [0, 0, 1, 1], [], []>} : vector<2x2xf32>, vector<2x32xf32>, vector<2x32xf32> -> vector<2x32xf32>
    %cst_14 = arith.constant dense<0.000000e+00> : vector<32x32xf32>
    %19 = tpu.matmul %2, %18, %cst_14 {dimension_numbers = #tpu.dot_dimension_numbers<[1], [0], [0], [1], [0, 0, 1, 1], [], []>} : vector<32x2xf32>, vector<2x32xf32>, vector<32x32xf32> -> vector<32x32xf32>
    %20 = arith.negf %19 : vector<32x32xf32>
    %21 = math.exp %20 : vector<32x32xf32>
    %cst_15 = arith.constant 1.000000e+00 : f32
    %22 = vector.broadcast %cst_15 : f32 to vector<32x32xf32>
    %23 = arith.addf %22, %21 : vector<32x32xf32>
    %24 = arith.divf %22, %23 : vector<32x32xf32>
    %c0_16 = arith.constant 0 : index
    %c1 = arith.constant 1 : index
    %c0_17 = arith.constant 0 : index
    %c0_18 = arith.constant 0 : index
    %25 = vector.load %arg4[%c0_16, %c1, %c0_17, %c0_18] : memref<1x9x32x32xf32, #tpu.memory_space<vmem>>, vector<1x1x32x32xf32>
    %26 = vector.shape_cast %25 : vector<1x1x32x32xf32> to vector<32x32xf32>
    %27 = vector.shape_cast %24 : vector<32x32xf32> to vector<1x1x32x32xf32>
    tpu.vector_store %arg4[%c0_16, %c1, %c0_17, %c0_18], %27 {strides = array<i32>} : memref<1x9x32x32xf32, #tpu.memory_space<vmem>>, vector<1x1x32x32xf32>,
    %28 = vector.extract_strided_slice %1 {offsets = [2, 0, 0], sizes = [1, 2, 2], strides = [1, 1, 1]} : vector<9x2x2xf32> to vector<1x2x2xf32>
    %29 = vector.shape_cast %28 : vector<1x2x2xf32> to vector<2x2xf32>
    %cst_19 = arith.constant dense<0.000000e+00> : vector<2x32xf32>
    %30 = tpu.matmul %29, %3, %cst_19 {dimension_numbers = #tpu.dot_dimension_numbers<[1], [0], [0], [1], [0, 0, 1, 1], [], []>} : vector<2x2xf32>, vector<2x32xf32>, vector<2x32xf32> -> vector<2x32xf32>
    %cst_20 = arith.constant dense<0.000000e+00> : vector<32x32xf32>
    %31 = tpu.matmul %2, %30, %cst_20 {dimension_numbers = #tpu.dot_dimension_numbers<[1], [0], [0], [1], [0, 0, 1, 1], [], []>} : vector<32x2xf32>, vector<2x32xf32>, vector<32x32xf32> -> vector<32x32xf32>
    %32 = arith.negf %31 : vector<32x32xf32>
    %33 = math.exp %32 : vector<32x32xf32>
    %cst_21 = arith.constant 1.000000e+00 : f32
    %34 = vector.broadcast %cst_21 : f32 to vector<32x32xf32>
    %35 = arith.addf %34, %33 : vector<32x32xf32>
    %36 = arith.divf %34, %35 : vector<32x32xf32>
    %c0_22 = arith.constant 0 : index
    %c2 = arith.constant 2 : index
    %c0_23 = arith.constant 0 : index
    %c0_24 = arith.constant 0 : index
    %37 = vector.load %arg4[%c0_22, %c2, %c0_23, %c0_24] : memref<1x9x32x32xf32, #tpu.memory_space<vmem>>, vector<1x1x32x32xf32>
    %38 = vector.shape_cast %37 : vector<1x1x32x32xf32> to vector<32x32xf32>
    %39 = vector.shape_cast %36 : vector<32x32xf32> to vector<1x1x32x32xf32>
    tpu.vector_store %arg4[%c0_22, %c2, %c0_23, %c0_24], %39 {strides = array<i32>} : memref<1x9x32x32xf32, #tpu.memory_space<vmem>>, vector<1x1x32x32xf32>,
    %40 = vector.extract_strided_slice %1 {offsets = [3, 0, 0], sizes = [1, 2, 2], strides = [1, 1, 1]} : vector<9x2x2xf32> to vector<1x2x2xf32>
    %41 = vector.shape_cast %40 : vector<1x2x2xf32> to vector<2x2xf32>
    %cst_25 = arith.constant dense<0.000000e+00> : vector<2x32xf32>
    %42 = tpu.matmul %41, %3, %cst_25 {dimension_numbers = #tpu.dot_dimension_numbers<[1], [0], [0], [1], [0, 0, 1, 1], [], []>} : vector<2x2xf32>, vector<2x32xf32>, vector<2x32xf32> -> vector<2x32xf32>
    %cst_26 = arith.constant dense<0.000000e+00> : vector<32x32xf32>
    %43 = tpu.matmul %2, %42, %cst_26 {dimension_numbers = #tpu.dot_dimension_numbers<[1], [0], [0], [1], [0, 0, 1, 1], [], []>} : vector<32x2xf32>, vector<2x32xf32>, vector<32x32xf32> -> vector<32x32xf32>
    %c0_27 = arith.constant 0 : index
    %c3 = arith.constant 3 : index
    %c0_28 = arith.constant 0 : index
    %c0_29 = arith.constant 0 : index
    %44 = vector.load %arg4[%c0_27, %c3, %c0_28, %c0_29] : memref<1x9x32x32xf32, #tpu.memory_space<vmem>>, vector<1x1x32x32xf32>
    %45 = vector.shape_cast %44 : vector<1x1x32x32xf32> to vector<32x32xf32>
    %46 = vector.shape_cast %43 : vector<32x32xf32> to vector<1x1x32x32xf32>
    tpu.vector_store %arg4[%c0_27, %c3, %c0_28, %c0_29], %46 {strides = array<i32>} : memref<1x9x32x32xf32, #tpu.memory_space<vmem>>, vector<1x1x32x32xf32>,
    %47 = vector.extract_strided_slice %1 {offsets = [4, 0, 0], sizes = [1, 2, 2], strides = [1, 1, 1]} : vector<9x2x2xf32> to vector<1x2x2xf32>
    %48 = vector.shape_cast %47 : vector<1x2x2xf32> to vector<2x2xf32>
    %cst_30 = arith.constant dense<0.000000e+00> : vector<2x32xf32>
    %49 = tpu.matmul %48, %3, %cst_30 {dimension_numbers = #tpu.dot_dimension_numbers<[1], [0], [0], [1], [0, 0, 1, 1], [], []>} : vector<2x2xf32>, vector<2x32xf32>, vector<2x32xf32> -> vector<2x32xf32>
    %cst_31 = arith.constant dense<0.000000e+00> : vector<32x32xf32>
    %50 = tpu.matmul %2, %49, %cst_31 {dimension_numbers = #tpu.dot_dimension_numbers<[1], [0], [0], [1], [0, 0, 1, 1], [], []>} : vector<32x2xf32>, vector<2x32xf32>, vector<32x32xf32> -> vector<32x32xf32>
    %c0_32 = arith.constant 0 : index
    %c4 = arith.constant 4 : index
    %c0_33 = arith.constant 0 : index
    %c0_34 = arith.constant 0 : index
    %51 = vector.load %arg4[%c0_32, %c4, %c0_33, %c0_34] : memref<1x9x32x32xf32, #tpu.memory_space<vmem>>, vector<1x1x32x32xf32>
    %52 = vector.shape_cast %51 : vector<1x1x32x32xf32> to vector<32x32xf32>
    %53 = vector.shape_cast %50 : vector<32x32xf32> to vector<1x1x32x32xf32>
    tpu.vector_store %arg4[%c0_32, %c4, %c0_33, %c0_34], %53 {strides = array<i32>} : memref<1x9x32x32xf32, #tpu.memory_space<vmem>>, vector<1x1x32x32xf32>,
    %54 = vector.extract_strided_slice %1 {offsets = [5, 0, 0], sizes = [1, 2, 2], strides = [1, 1, 1]} : vector<9x2x2xf32> to vector<1x2x2xf32>
    %55 = vector.shape_cast %54 : vector<1x2x2xf32> to vector<2x2xf32>
    %cst_35 = arith.constant dense<0.000000e+00> : vector<2x32xf32>
    %56 = tpu.matmul %55, %3, %cst_35 {dimension_numbers = #tpu.dot_dimension_numbers<[1], [0], [0], [1], [0, 0, 1, 1], [], []>} : vector<2x2xf32>, vector<2x32xf32>, vector<2x32xf32> -> vector<2x32xf32>
    %cst_36 = arith.constant dense<0.000000e+00> : vector<32x32xf32>
    %57 = tpu.matmul %2, %56, %cst_36 {dimension_numbers = #tpu.dot_dimension_numbers<[1], [0], [0], [1], [0, 0, 1, 1], [], []>} : vector<32x2xf32>, vector<2x32xf32>, vector<32x32xf32> -> vector<32x32xf32>
    %c0_37 = arith.constant 0 : index
    %c5 = arith.constant 5 : index
    %c0_38 = arith.constant 0 : index
    %c0_39 = arith.constant 0 : index
    %58 = vector.load %arg4[%c0_37, %c5, %c0_38, %c0_39] : memref<1x9x32x32xf32, #tpu.memory_space<vmem>>, vector<1x1x32x32xf32>
    %59 = vector.shape_cast %58 : vector<1x1x32x32xf32> to vector<32x32xf32>
    %60 = vector.shape_cast %57 : vector<32x32xf32> to vector<1x1x32x32xf32>
    tpu.vector_store %arg4[%c0_37, %c5, %c0_38, %c0_39], %60 {strides = array<i32>} : memref<1x9x32x32xf32, #tpu.memory_space<vmem>>, vector<1x1x32x32xf32>,
    %61 = vector.extract_strided_slice %1 {offsets = [6, 0, 0], sizes = [1, 2, 2], strides = [1, 1, 1]} : vector<9x2x2xf32> to vector<1x2x2xf32>
    %62 = vector.shape_cast %61 : vector<1x2x2xf32> to vector<2x2xf32>
    %cst_40 = arith.constant dense<0.000000e+00> : vector<2x32xf32>
    %63 = tpu.matmul %62, %3, %cst_40 {dimension_numbers = #tpu.dot_dimension_numbers<[1], [0], [0], [1], [0, 0, 1, 1], [], []>} : vector<2x2xf32>, vector<2x32xf32>, vector<2x32xf32> -> vector<2x32xf32>
    %cst_41 = arith.constant dense<0.000000e+00> : vector<32x32xf32>
    %64 = tpu.matmul %2, %63, %cst_41 {dimension_numbers = #tpu.dot_dimension_numbers<[1], [0], [0], [1], [0, 0, 1, 1], [], []>} : vector<32x2xf32>, vector<2x32xf32>, vector<32x32xf32> -> vector<32x32xf32>
    %c0_42 = arith.constant 0 : index
    %c6 = arith.constant 6 : index
    %c0_43 = arith.constant 0 : index
    %c0_44 = arith.constant 0 : index
    %65 = vector.load %arg4[%c0_42, %c6, %c0_43, %c0_44] : memref<1x9x32x32xf32, #tpu.memory_space<vmem>>, vector<1x1x32x32xf32>
    %66 = vector.shape_cast %65 : vector<1x1x32x32xf32> to vector<32x32xf32>
    %67 = vector.shape_cast %64 : vector<32x32xf32> to vector<1x1x32x32xf32>
    tpu.vector_store %arg4[%c0_42, %c6, %c0_43, %c0_44], %67 {strides = array<i32>} : memref<1x9x32x32xf32, #tpu.memory_space<vmem>>, vector<1x1x32x32xf32>,
    %68 = vector.extract_strided_slice %1 {offsets = [7, 0, 0], sizes = [1, 2, 2], strides = [1, 1, 1]} : vector<9x2x2xf32> to vector<1x2x2xf32>
    %69 = vector.shape_cast %68 : vector<1x2x2xf32> to vector<2x2xf32>
    %cst_45 = arith.constant dense<0.000000e+00> : vector<2x32xf32>
    %70 = tpu.matmul %69, %3, %cst_45 {dimension_numbers = #tpu.dot_dimension_numbers<[1], [0], [0], [1], [0, 0, 1, 1], [], []>} : vector<2x2xf32>, vector<2x32xf32>, vector<2x32xf32> -> vector<2x32xf32>
    %cst_46 = arith.constant dense<0.000000e+00> : vector<32x32xf32>
    %71 = tpu.matmul %2, %70, %cst_46 {dimension_numbers = #tpu.dot_dimension_numbers<[1], [0], [0], [1], [0, 0, 1, 1], [], []>} : vector<32x2xf32>, vector<2x32xf32>, vector<32x32xf32> -> vector<32x32xf32>
    %c0_47 = arith.constant 0 : index
    %c7 = arith.constant 7 : index
    %c0_48 = arith.constant 0 : index
    %c0_49 = arith.constant 0 : index
    %72 = vector.load %arg4[%c0_47, %c7, %c0_48, %c0_49] : memref<1x9x32x32xf32, #tpu.memory_space<vmem>>, vector<1x1x32x32xf32>
    %73 = vector.shape_cast %72 : vector<1x1x32x32xf32> to vector<32x32xf32>
    %74 = vector.shape_cast %71 : vector<32x32xf32> to vector<1x1x32x32xf32>
    tpu.vector_store %arg4[%c0_47, %c7, %c0_48, %c0_49], %74 {strides = array<i32>} : memref<1x9x32x32xf32, #tpu.memory_space<vmem>>, vector<1x1x32x32xf32>,
    %75 = vector.extract_strided_slice %1 {offsets = [8, 0, 0], sizes = [1, 2, 2], strides = [1, 1, 1]} : vector<9x2x2xf32> to vector<1x2x2xf32>
    %76 = vector.shape_cast %75 : vector<1x2x2xf32> to vector<2x2xf32>
    %cst_50 = arith.constant dense<0.000000e+00> : vector<2x32xf32>
    %77 = tpu.matmul %76, %3, %cst_50 {dimension_numbers = #tpu.dot_dimension_numbers<[1], [0], [0], [1], [0, 0, 1, 1], [], []>} : vector<2x2xf32>, vector<2x32xf32>, vector<2x32xf32> -> vector<2x32xf32>
    %cst_51 = arith.constant dense<0.000000e+00> : vector<32x32xf32>
    %78 = tpu.matmul %2, %77, %cst_51 {dimension_numbers = #tpu.dot_dimension_numbers<[1], [0], [0], [1], [0, 0, 1, 1], [], []>} : vector<32x2xf32>, vector<2x32xf32>, vector<32x32xf32> -> vector<32x32xf32>
    %c0_52 = arith.constant 0 : index
    %c8 = arith.constant 8 : index
    %c0_53 = arith.constant 0 : index
    %c0_54 = arith.constant 0 : index
    %79 = vector.load %arg4[%c0_52, %c8, %c0_53, %c0_54] : memref<1x9x32x32xf32, #tpu.memory_space<vmem>>, vector<1x1x32x32xf32>
    %80 = vector.shape_cast %79 : vector<1x1x32x32xf32> to vector<32x32xf32>
    %81 = vector.shape_cast %78 : vector<32x32xf32> to vector<1x1x32x32xf32>
    tpu.vector_store %arg4[%c0_52, %c8, %c0_53, %c0_54], %81 {strides = array<i32>} : memref<1x9x32x32xf32, #tpu.memory_space<vmem>>, vector<1x1x32x32xf32>,
    return
  }
  func.func @transform_0(%arg0: i32) -> (i32, i32, i32, i32) {
    %c0_i32 = arith.constant 0 : i32
    %c0_i32_0 = arith.constant 0 : i32
    %c0_i32_1 = arith.constant 0 : i32
    %c0_i32_2 = arith.constant 0 : i32
    return %arg0, %c0_i32, %c0_i32_0, %c0_i32_1 : i32, i32, i32, i32
  }
  func.func @transform_1(%arg0: i32) -> (i32, i32) {
    %c0_i32 = arith.constant 0 : i32
    %c0_i32_0 = arith.constant 0 : i32
    %c0_i32_1 = arith.constant 0 : i32
    return %c0_i32, %c0_i32_0 : i32, i32
  }
  func.func @transform_2(%arg0: i32) -> (i32, i32) {
    %c0_i32 = arith.constant 0 : i32
    %c0_i32_0 = arith.constant 0 : i32
    %c0_i32_1 = arith.constant 0 : i32
    return %c0_i32, %c0_i32_0 : i32, i32
  }
  func.func @transform_3(%arg0: i32) -> (i32, i32, i32, i32) {
    %c0_i32 = arith.constant 0 : i32
    %c0_i32_0 = arith.constant 0 : i32
    %c0_i32_1 = arith.constant 0 : i32
    %c0_i32_2 = arith.constant 0 : i32
    return %arg0, %c0_i32, %c0_i32_0, %c0_i32_1 : i32, i32, i32, i32
  }
}

module attributes {stable_mosaic.version = 11 : i64} {
  func.func @_mask_tail_kernel(%arg0: i32, %arg1: memref<1x13x32xf32, #tpu.memory_space<vmem>>, %arg2: memref<1x32xf32, #tpu.memory_space<vmem>>, %arg3: memref<1x32xf32, #tpu.memory_space<vmem>>, %arg4: memref<32x32xf32, #tpu.memory_space<vmem>>, %arg5: memref<32x32xf32, #tpu.memory_space<vmem>>, %arg6: memref<1x9xf32, #tpu.memory_space<vmem>>, %arg7: memref<1x9xf32, #tpu.memory_space<vmem>>, %arg8: memref<1x4x9xf32, #tpu.memory_space<vmem>>) attributes {dimension_semantics = [#tpu.dimension_semantics<parallel>], iteration_bounds = array<i64: 2>, scalar_prefetch = 0 : i64, scratch_operands = 0 : i64, tpu.core_type = #tpu.core_type<tc>, window_params = [{transform_indices = @transform_0, window_bounds = array<i64: 1, 13, 32>}, {pipeline_mode = #tpu.pipeline_mode<synchronous>, transform_indices = @transform_1, window_bounds = array<i64: 1, 32>}, {pipeline_mode = #tpu.pipeline_mode<synchronous>, transform_indices = @transform_2, window_bounds = array<i64: 1, 32>}, {pipeline_mode = #tpu.pipeline_mode<synchronous>, transform_indices = @transform_3, window_bounds = array<i64: 32, 32>}, {pipeline_mode = #tpu.pipeline_mode<synchronous>, transform_indices = @transform_4, window_bounds = array<i64: 32, 32>}, {pipeline_mode = #tpu.pipeline_mode<synchronous>, transform_indices = @transform_5, window_bounds = array<i64: 1, 9>}, {pipeline_mode = #tpu.pipeline_mode<synchronous>, transform_indices = @transform_6, window_bounds = array<i64: 1, 9>}, {transform_indices = @transform_7, window_bounds = array<i64: 1, 4, 9>}]} {
    %c0 = arith.constant 0 : index
    %c0_0 = arith.constant 0 : index
    %c0_1 = arith.constant 0 : index
    %0 = vector.load %arg1[%c0, %c0_0, %c0_1] : memref<1x13x32xf32, #tpu.memory_space<vmem>>, vector<1x13x32xf32>
    %1 = vector.shape_cast %0 : vector<1x13x32xf32> to vector<13x32xf32>
    %c0_2 = arith.constant 0 : index
    %c0_3 = arith.constant 0 : index
    %2 = vector.load %arg2[%c0_2, %c0_3] : memref<1x32xf32, #tpu.memory_space<vmem>>, vector<1x32xf32>
    %c0_4 = arith.constant 0 : index
    %c0_5 = arith.constant 0 : index
    %3 = vector.load %arg3[%c0_4, %c0_5] : memref<1x32xf32, #tpu.memory_space<vmem>>, vector<1x32xf32>
    %cst = arith.constant dense<0.000000e+00> : vector<13xf32>
    %4 = vector.multi_reduction <add>, %1, %cst [1] : vector<13x32xf32> to vector<13xf32>
    %5 = vector.shape_cast %4 : vector<13xf32> to vector<13x1xf32>
    %cst_6 = arith.constant 3.200000e+01 : f32
    %6 = vector.broadcast %cst_6 : f32 to vector<13x1xf32>
    %7 = arith.divf %5, %6 : vector<13x1xf32>
    %8 = vector.broadcast %7 : vector<13x1xf32> to vector<13x32xf32>
    %9 = arith.subf %1, %8 : vector<13x32xf32>
    %10 = arith.mulf %9, %9 : vector<13x32xf32>
    %cst_7 = arith.constant dense<0.000000e+00> : vector<13xf32>
    %11 = vector.multi_reduction <add>, %10, %cst_7 [1] : vector<13x32xf32> to vector<13xf32>
    %12 = vector.shape_cast %11 : vector<13xf32> to vector<13x1xf32>
    %cst_8 = arith.constant 3.200000e+01 : f32
    %13 = vector.broadcast %cst_8 : f32 to vector<13x1xf32>
    %14 = arith.divf %12, %13 : vector<13x1xf32>
    %cst_9 = arith.constant 9.99999974E-6 : f32
    %15 = vector.broadcast %cst_9 : f32 to vector<13x1xf32>
    %16 = arith.addf %14, %15 : vector<13x1xf32>
    %17 = math.rsqrt %16 : vector<13x1xf32>
    %18 = vector.broadcast %17 : vector<13x1xf32> to vector<13x32xf32>
    %19 = arith.mulf %9, %18 : vector<13x32xf32>
    %20 = vector.broadcast %2 : vector<1x32xf32> to vector<13x32xf32>
    %21 = arith.mulf %19, %20 : vector<13x32xf32>
    %22 = vector.broadcast %3 : vector<1x32xf32> to vector<13x32xf32>
    %23 = arith.addf %21, %22 : vector<13x32xf32>
    %24 = vector.extract_strided_slice %23 {offsets = [0, 0], sizes = [4, 32], strides = [1, 1]} : vector<13x32xf32> to vector<4x32xf32>
    %c0_10 = arith.constant 0 : index
    %c0_11 = arith.constant 0 : index
    %25 = vector.load %arg4[%c0_10, %c0_11] : memref<32x32xf32, #tpu.memory_space<vmem>>, vector<32x32xf32>
    %cst_12 = arith.constant dense<0.000000e+00> : vector<4x32xf32>
    %26 = tpu.matmul %24, %25, %cst_12 {dimension_numbers = #tpu.dot_dimension_numbers<[1], [0], [0], [1], [0, 0, 1, 1], [], []>} : vector<4x32xf32>, vector<32x32xf32>, vector<4x32xf32> -> vector<4x32xf32>
    %27 = vector.extract_strided_slice %23 {offsets = [4, 0], sizes = [9, 32], strides = [1, 1]} : vector<13x32xf32> to vector<9x32xf32>
    %c0_13 = arith.constant 0 : index
    %c0_14 = arith.constant 0 : index
    %28 = vector.load %arg5[%c0_13, %c0_14] : memref<32x32xf32, #tpu.memory_space<vmem>>, vector<32x32xf32>
    %cst_15 = arith.constant dense<0.000000e+00> : vector<9x32xf32>
    %29 = tpu.matmul %27, %28, %cst_15 {dimension_numbers = #tpu.dot_dimension_numbers<[1], [0], [0], [1], [0, 0, 1, 1], [], []>} : vector<9x32xf32>, vector<32x32xf32>, vector<9x32xf32> -> vector<9x32xf32>
    %30 = arith.mulf %26, %26 : vector<4x32xf32>
    %cst_16 = arith.constant dense<0.000000e+00> : vector<4xf32>
    %31 = vector.multi_reduction <add>, %30, %cst_16 [1] : vector<4x32xf32> to vector<4xf32>
    %32 = vector.shape_cast %31 : vector<4xf32> to vector<4x1xf32>
    %33 = math.rsqrt %32 : vector<4x1xf32>
    %34 = vector.broadcast %33 : vector<4x1xf32> to vector<4x32xf32>
    %35 = arith.mulf %26, %34 : vector<4x32xf32>
    %36 = arith.mulf %29, %29 : vector<9x32xf32>
    %cst_17 = arith.constant dense<0.000000e+00> : vector<9xf32>
    %37 = vector.multi_reduction <add>, %36, %cst_17 [1] : vector<9x32xf32> to vector<9xf32>
    %38 = vector.shape_cast %37 : vector<9xf32> to vector<9x1xf32>
    %39 = math.rsqrt %38 : vector<9x1xf32>
    %40 = vector.broadcast %39 : vector<9x1xf32> to vector<9x32xf32>
    %41 = arith.mulf %29, %40 : vector<9x32xf32>
    %cst_18 = arith.constant dense<0.000000e+00> : vector<4x9xf32>
    %42 = tpu.matmul %35, %41, %cst_18 {dimension_numbers = #tpu.dot_dimension_numbers<[1], [1], [0], [0], [0, 0, 1, 0], [], []>} : vector<4x32xf32>, vector<9x32xf32>, vector<4x9xf32> -> vector<4x9xf32>
    %c0_19 = arith.constant 0 : index
    %c0_20 = arith.constant 0 : index
    %43 = vector.load %arg6[%c0_19, %c0_20] : memref<1x9xf32, #tpu.memory_space<vmem>>, vector<1x9xf32>
    %c0_21 = arith.constant 0 : index
    %c0_22 = arith.constant 0 : index
    %44 = vector.load %arg7[%c0_21, %c0_22] : memref<1x9xf32, #tpu.memory_space<vmem>>, vector<1x9xf32>
    %cst_23 = arith.constant dense<0.000000e+00> : vector<4xf32>
    %45 = vector.multi_reduction <add>, %42, %cst_23 [1] : vector<4x9xf32> to vector<4xf32>
    %46 = vector.shape_cast %45 : vector<4xf32> to vector<4x1xf32>
    %cst_24 = arith.constant 9.000000e+00 : f32
    %47 = vector.broadcast %cst_24 : f32 to vector<4x1xf32>
    %48 = arith.divf %46, %47 : vector<4x1xf32>
    %49 = vector.broadcast %48 : vector<4x1xf32> to vector<4x9xf32>
    %50 = arith.subf %42, %49 : vector<4x9xf32>
    %51 = arith.mulf %50, %50 : vector<4x9xf32>
    %cst_25 = arith.constant dense<0.000000e+00> : vector<4xf32>
    %52 = vector.multi_reduction <add>, %51, %cst_25 [1] : vector<4x9xf32> to vector<4xf32>
    %53 = vector.shape_cast %52 : vector<4xf32> to vector<4x1xf32>
    %cst_26 = arith.constant 9.000000e+00 : f32
    %54 = vector.broadcast %cst_26 : f32 to vector<4x1xf32>
    %55 = arith.divf %53, %54 : vector<4x1xf32>
    %cst_27 = arith.constant 9.99999974E-6 : f32
    %56 = vector.broadcast %cst_27 : f32 to vector<4x1xf32>
    %57 = arith.addf %55, %56 : vector<4x1xf32>
    %58 = math.rsqrt %57 : vector<4x1xf32>
    %59 = vector.broadcast %58 : vector<4x1xf32> to vector<4x9xf32>
    %60 = arith.mulf %50, %59 : vector<4x9xf32>
    %61 = vector.broadcast %43 : vector<1x9xf32> to vector<4x9xf32>
    %62 = arith.mulf %60, %61 : vector<4x9xf32>
    %63 = vector.broadcast %44 : vector<1x9xf32> to vector<4x9xf32>
    %64 = arith.addf %62, %63 : vector<4x9xf32>
    %c0_28 = arith.constant 0 : index
    %c0_29 = arith.constant 0 : index
    %c0_30 = arith.constant 0 : index
    %65 = vector.load %arg8[%c0_28, %c0_29, %c0_30] : memref<1x4x9xf32, #tpu.memory_space<vmem>>, vector<1x4x9xf32>
    %66 = vector.shape_cast %65 : vector<1x4x9xf32> to vector<4x9xf32>
    %67 = vector.shape_cast %64 : vector<4x9xf32> to vector<1x4x9xf32>
    tpu.vector_store %arg8[%c0_28, %c0_29, %c0_30], %67 {strides = array<i32>} : memref<1x4x9xf32, #tpu.memory_space<vmem>>, vector<1x4x9xf32>,
    return
  }
  func.func @transform_0(%arg0: i32) -> (i32, i32, i32) {
    %c0_i32 = arith.constant 0 : i32
    %c0_i32_0 = arith.constant 0 : i32
    %c0_i32_1 = arith.constant 0 : i32
    return %arg0, %c0_i32, %c0_i32_0 : i32, i32, i32
  }
  func.func @transform_1(%arg0: i32) -> (i32, i32) {
    %c0_i32 = arith.constant 0 : i32
    %c0_i32_0 = arith.constant 0 : i32
    %c0_i32_1 = arith.constant 0 : i32
    return %c0_i32, %c0_i32_0 : i32, i32
  }
  func.func @transform_2(%arg0: i32) -> (i32, i32) {
    %c0_i32 = arith.constant 0 : i32
    %c0_i32_0 = arith.constant 0 : i32
    %c0_i32_1 = arith.constant 0 : i32
    return %c0_i32, %c0_i32_0 : i32, i32
  }
  func.func @transform_3(%arg0: i32) -> (i32, i32) {
    %c0_i32 = arith.constant 0 : i32
    %c0_i32_0 = arith.constant 0 : i32
    %c0_i32_1 = arith.constant 0 : i32
    return %c0_i32, %c0_i32_0 : i32, i32
  }
  func.func @transform_4(%arg0: i32) -> (i32, i32) {
    %c0_i32 = arith.constant 0 : i32
    %c0_i32_0 = arith.constant 0 : i32
    %c0_i32_1 = arith.constant 0 : i32
    return %c0_i32, %c0_i32_0 : i32, i32
  }
  func.func @transform_5(%arg0: i32) -> (i32, i32) {
    %c0_i32 = arith.constant 0 : i32
    %c0_i32_0 = arith.constant 0 : i32
    %c0_i32_1 = arith.constant 0 : i32
    return %c0_i32, %c0_i32_0 : i32, i32
  }
  func.func @transform_6(%arg0: i32) -> (i32, i32) {
    %c0_i32 = arith.constant 0 : i32
    %c0_i32_0 = arith.constant 0 : i32
    %c0_i32_1 = arith.constant 0 : i32
    return %c0_i32, %c0_i32_0 : i32, i32
  }
  func.func @transform_7(%arg0: i32) -> (i32, i32, i32) {
    %c0_i32 = arith.constant 0 : i32
    %c0_i32_0 = arith.constant 0 : i32
    %c0_i32_1 = arith.constant 0 : i32
    return %arg0, %c0_i32, %c0_i32_0 : i32, i32, i32
  }
}

</mosaic_0001>

<bundles_post_ra>
// kernel: segmenter_forward.10
= control target key start
LH: loop header
LB: loop body
LE: loop exit
PB: predicated region body
PF: predicated region fallthrough
CT: control target
= control target key end

     0   :  { %s525_s21 = smov 0   ;;  %s574_s0 = inlined_call_operand.vmem [shape: f32[2,5,32], index: 0, kind: input, shape index: {}]   ;;  %s575_s1 = inlined_call_operand.vmem [shape: f32[1,32], index: 1, kind: input, shape index: {}]   ;;  %s576_s2 = inlined_call_operand.vmem [shape: f32[1,32], index: 2, kind: input, shape index: {}]   ;;  %s577_s3 = inlined_call_operand.vmem [shape: f32[32,32], index: 3, kind: input, shape index: {}]   ;;  %s578_s4 = inlined_call_operand.vmem [shape: f32[1,32], index: 4, kind: input, shape index: {}]   ;;  %s579_s5 = inlined_call_operand.vmem [shape: f32[9,32], index: 5, kind: input, shape index: {}]   ;;  %s580_s6 = inlined_call_operand.vmem [shape: f32[2,13,32], index: 6, kind: output, shape index: {}]  }
   0x1 LB: > { %s429_s22 = sadd.s32 4294967295, %s485_s21   ;;  %p433_p0 = scmp.ge.s32.totalorder %s485_s21, 1  ;;  %s485_s21 = sphi %s525_s21, %s16_s21  }
   0x2   : > { %p211_p1 = scmp.lt.s32.totalorder %s485_s21, 3 }
   0x4   : > { %p212_p2 = pnand %p433_p0, %p211_p1 }
   0x5   : > { %p240_p3 = scmp.lt.s32.totalorder (!%p212_p2), %s429_s22, 1  ;;  %v370_v0 = vld [vmem:[%s579_s5 + $0x8] sm:$0x1] (!%p212_p2)  ;;  %vm372_vm0 = vcmask (!%p212_p2), 253952   ;;  %vm252_vm1 = vcmask (!%p212_p2), 258049   ;;  %v281_v8 = vld [vmem:[%s577_s3] sm:$0xff] (!%p212_p2) }
   0x6   : > { %215 = sbr.rel (%p212_p2) target bundleno = 547 (0x223), region = 44  ;;  %v282_v9 = vld [vmem:[%s577_s3 + $0x8] sm:$0xff] (!%p212_p2)  ;;  %v487_v11 = vmov (!%p212_p2), 0.0|0.0   ;;  %v283_v12 = vld [vmem:[%s577_s3 + $0x10] sm:$0xff] (!%p212_p2)  ;;  %v284_v13 = vld [vmem:[%s577_s3 + $0x18] sm:$0xff] (!%p212_p2)  ;;  %vm488_vm2 = vmmov (!%p212_p2), 0  }
   0x7   : > { %v461_v10 = vpack.c.bf16 (!%p212_p2), %v282_v9, %v281_v8  ;;  %460 = vmatprep.subr.bf16.mxu0 (!%p212_p2), %v487_v11  ;;  %v464_v14 = vpack.c.bf16 (!%p212_p2), %v284_v13, %v283_v12  ;;  %v489_v15 = vmov (!%p212_p2), 0.0   ;;  %vm294_vm3 = vcmask (!%p212_p2), 261120   ;;  %v369_v16 = vld [vmem:[%s579_s5] sm:$0xff] (!%p212_p2) }
   0x8   : > { %457 = vmatprep.mubr.msk.f32.mxu0 (!%p212_p2), %vm488_vm2, %v489_v15  ;;  %v437_v21 = vld [vmem:[%s575_s1] ss:$0 sm:$0xff] (!%p212_p2)  ;;  %vm367_vm4 = vcmask (!%p212_p2), 257024  }
   0x9   : > { %462 = vmatpush3.bf16.msra.mxu0 (!%p212_p2), %v461_v10  ;;  %v438_v23 = vld [vmem:[%s576_s2] ss:$0 sm:$0xff] (!%p212_p2) }
   0xa   : > { %463 = vmatprep.subr.bf16.mxu0 (!%p212_p2), %v487_v11  ;;  %v439_v27 = vld [vmem:[%s578_s4] ss:$0 sm:$0xff] (!%p212_p2) }
   0xd   : > { %s582_s22 = smov (!%p240_p3, %s429_s22), 1  ;;  %465 = vmatpush3.bf16.msra.mxu0 %v464_v14 }
   0xe   : > { %s434_s25 = sshll.u32 %s582_s22, 3  ;;  %s443_s26 = sshll.u32 %s582_s22, 4 }
   0xf   : > { %s243_s29 = scalar_lea.vmem %s574_s0, %s434_s25  ;;  %s542_s8 = scalar_lea.vmem %s580_s6, %s443_s26 }
  0x10   : > { %v249_v1 = vld [vmem:[%s243_s29] sm:$0x1f]  ;;  %373 = vst.msk [vmem:[%s542_s8 + $0xc] sm:$0x1] %vm372_vm0, %v370_v0 }
  0x11   : > { %v253_v2 = vsel %vm252_vm1, %v249_v1, 0.0  ;;  %371 = vst.msk [vmem:[%s542_s8 + $0x4] sm:$0xff] %vm294_vm3, %v369_v16 }
  0x12   : > { %254 = vadd.xlane.f32.xlu0 %v253_v2 }
  0x9f   : > { %v255_v3 = vpop.xlane.xlu0 %254 }
  0xa0   : > { %v257_v4 = vmul.f32 0.03125, %v255_v3 }
  0xa2   : > { %v258_v5 = vsub.f32 %v249_v1, %v257_v4 }
  0xa4   : > { %v259_v6 = vmul.f32 %v258_v5, %v258_v5 }
  0xa6   : > { %v260_v7 = vsel %vm252_vm1, %v259_v6, 0.0 }
  0xa7   : > { %261 = vadd.xlane.f32.xlu0 %v260_v7 }
 0x134   : > { %v262_v17 = vpop.xlane.xlu0 %261 }
 0x135   : > { %v263_v18 = vmul.f32 0.03125, %v262_v17 }
 0x137   : > { %v264_v19 = vadd.f32 1e-05, %v263_v18 }
 0x139   : > { %477 = vrsqrt.f32 %v264_v19 }
 0x143   : > { %v478_v20 = vpop.eup %477 }
 0x144   : > { %v266_v22 = vmul.f32 %v478_v20, %v258_v5 }
 0x146   : > { %v273_v24 = vmul.f32 %v437_v21, %v266_v22 }
 0x148   : > { %v280_v25 = vadd.f32 %v438_v23, %v273_v24 }
 0x14a   : > { %v293_v26 = vrot.slane %v280_v25, 1 }
 0x14c   : > { %458 = vmatmul.mubr.msk.f32.vlgmr.msra.gmra.mrb[0].mxu0 %vm294_vm3, %v293_v26 }
 0x21f   : > { %v363_v28 = vpop.f32.mrb[0].mxu0 }
 0x220   : > { %v364_v29 = vadd.f32 %v439_v27, %v363_v28  ;;  %v459_v30 = vpop.f32.mrb[1].mxu0 }
 0x222   : > { %368 = vst.msk [vmem:[%s542_s8] sm:$0xf] %vm367_vm4, %v364_v29 }
 0x223 PF: > { %s16_s21 = sadd.s32 1, %s485_s21  }
 0x224   : > { %p13_p4 = scmp.ge.s32.totalorder %s16_s21, 4  }
 0x226   :  { %15 = sbr.rel (!%p13_p4) target bundleno = 1 (0x1), region = 74 }

// kernel: segmenter_forward.7
= control target key start
LH: loop header
LB: loop body
LE: loop exit
PB: predicated region body
PF: predicated region fallthrough
CT: control target
= control target key end

     0   :  { %s871_s18 = smov 0   ;;  %s1211_s0 = inlined_call_operand.vmem [shape: f32[2,4,768], index: 0, kind: input, shape index: {}]   ;;  %s1212_s1 = inlined_call_operand.vmem [shape: f32[768,32], index: 1, kind: input, shape index: {}]   ;;  %s1213_s2 = inlined_call_operand.vmem [shape: f32[1,32], index: 2, kind: input, shape index: {}]   ;;  %s1214_s3 = inlined_call_operand.vmem [shape: f32[1,32], index: 3, kind: input, shape index: {}]   ;;  %s1215_s4 = inlined_call_operand.vmem [shape: f32[5,32], index: 4, kind: input, shape index: {}]   ;;  %s1216_s5 = inlined_call_operand.vmem [shape: f32[2,5,32], index: 5, kind: output, shape index: {}]  }
   0x1 LB: > { %s610_s19 = sadd.s32 4294967295, %s839_s18   ;;  %p614_p0 = scmp.ge.s32.totalorder %s839_s18, 1  ;;  %s839_s18 = sphi %s871_s18, %s15_s18  }
   0x2   : > { %p187_p1 = scmp.lt.s32.totalorder %s839_s18, 3 }
   0x4   : > { %p188_p2 = pnand %p614_p0, %p187_p1 }
   0x5   : > { %v242_v0 = vld [vmem:[%s1212_s1 + $0x80] sm:$0xff] (!%p188_p2)  ;;  %v243_v1 = vld [vmem:[%s1212_s1 + $0x88] sm:$0xff] (!%p188_p2)  ;;  %v244_v11 = vld [vmem:[%s1212_s1 + $0x90] sm:$0xff] (!%p188_p2)  ;;  %p935_p3 = scmp.lt.s32.totalorder (!%p188_p2), %s610_s19, 1  ;;  %vm551_vm0 = vcmask (!%p188_p2), 253952   ;;  %vm555_vm1 = vcmask (!%p188_p2), 257024  }
   0x6   : > { %191 = sbr.rel (%p188_p2) target bundleno = 292 (0x124), region = 40  ;;  %v226_v2 = vld [vmem:[%s1212_s1] sm:$0xff] (!%p188_p2)  ;;  %v725_v3 = vpack.c.bf16 (!%p188_p2), %v243_v1, %v242_v0  ;;  %v227_v4 = vld [vmem:[%s1212_s1 + $0x8] sm:$0xff] (!%p188_p2)  ;;  %v245_v13 = vld [vmem:[%s1212_s1 + $0x98] sm:$0xff] (!%p188_p2) }
   0x7   : > { %v274_v5 = vld [vmem:[%s1212_s1 + $0x180] sm:$0xff] (!%p188_p2)  ;;  %v275_v6 = vld [vmem:[%s1212_s1 + $0x188] sm:$0xff] (!%p188_p2)  ;;  %v727_v7 = vpack.c.bf16 (!%p188_p2), %v227_v4, %v226_v2  ;;  %v228_v14 = vld [vmem:[%s1212_s1 + $0x10] sm:$0xff] (!%p188_p2)  ;;  %v729_v16 = vpack.c.bf16 (!%p188_p2), %v245_v13, %v244_v11 }
   0x8   : > { %v757_v8 = vpack.c.bf16 (!%p188_p2), %v275_v6, %v274_v5  ;;  %v258_v9 = vld [vmem:[%s1212_s1 + $0x100] sm:$0xff] (!%p188_p2)  ;;  %v259_v10 = vld [vmem:[%s1212_s1 + $0x108] sm:$0xff] (!%p188_p2)  ;;  %726 = vmatprep.subr.bf16.mxu0 (!%p188_p2), %v725_v3  ;;  %v229_v15 = vld [vmem:[%s1212_s1 + $0x18] sm:$0xff] (!%p188_p2) }
   0x9   : > { %v759_v12 = vpack.c.bf16 (!%p188_p2), %v259_v10, %v258_v9  ;;  %728 = vmatpush3.bf16.msra.mxu0 (!%p188_p2), %v727_v7  ;;  %v731_v17 = vpack.c.bf16 (!%p188_p2), %v229_v15, %v228_v14  ;;  %v276_v18 = vld [vmem:[%s1212_s1 + $0x190] sm:$0xff] (!%p188_p2)  ;;  %v277_v19 = vld [vmem:[%s1212_s1 + $0x198] sm:$0xff] (!%p188_p2)  ;;  %v246_v23 = vld [vmem:[%s1212_s1 + $0xa0] sm:$0xff] (!%p188_p2) }
   0xa   : > { %758 = vmatprep.subr.bf16.mxu1 (!%p188_p2), %v757_v8  ;;  %v260_v20 = vld [vmem:[%s1212_s1 + $0x110] sm:$0xff] (!%p188_p2)  ;;  %v761_v21 = vpack.c.bf16 (!%p188_p2), %v277_v19, %v276_v18  ;;  %v261_v22 = vld [vmem:[%s1212_s1 + $0x118] sm:$0xff] (!%p188_p2)  ;;  %v247_v24 = vld [vmem:[%s1212_s1 + $0xa8] sm:$0xff] (!%p188_p2)  ;;  %730 = vmatprep.subr.bf16.mxu0 (!%p188_p2), %v729_v16 }
   0xb   : > { %760 = vmatpush3.bf16.msra.mxu1 (!%p188_p2), %v759_v12  ;;  %v763_v25 = vpack.c.bf16 (!%p188_p2), %v261_v22, %v260_v20  ;;  %v733_v26 = vpack.c.bf16 (!%p188_p2), %v247_v24, %v246_v23  ;;  %v230_v27 = vld [vmem:[%s1212_s1 + $0x20] sm:$0xff] (!%p188_p2)  ;;  %v231_v28 = vld [vmem:[%s1212_s1 + $0x28] sm:$0xff] (!%p188_p2)  ;;  %v248_v35 = vld [vmem:[%s1212_s1 + $0xb0] sm:$0xff] (!%p188_p2) }
   0xc   : > { %v278_v29 = vld [vmem:[%s1212_s1 + $0x1a0] sm:$0xff] (!%p188_p2)  ;;  %762 = vmatprep.subr.bf16.mxu1 (!%p188_p2), %v761_v21  ;;  %v279_v30 = vld [vmem:[%s1212_s1 + $0x1a8] sm:$0xff] (!%p188_p2)  ;;  %v735_v33 = vpack.c.bf16 (!%p188_p2), %v231_v28, %v230_v27  ;;  %v249_v36 = vld [vmem:[%s1212_s1 + $0xb8] sm:$0xff] (!%p188_p2) }
   0xd   : > { %v262_v31 = vld [vmem:[%s1212_s1 + $0x120] sm:$0xff]  ;;  %v263_v32 = vld [vmem:[%s1212_s1 + $0x128] sm:$0xff]  ;;  %732 = vmatpush3.bf16.msra.mxu0 %v731_v17  ;;  %v765_v34 = vpack.c.bf16 %v279_v30, %v278_v29  ;;  %v232_v37 = vld [vmem:[%s1212_s1 + $0x30] sm:$0xff]  ;;  %v737_v39 = vpack.c.bf16 %v249_v36, %v248_v35  ;;  %s1219_s19 = smov (!%p935_p3, %s610_s19), 1 }
   0xe   : > { %734 = vmatprep.subr.bf16.mxu0 %v733_v26  ;;  %v767_v38 = vpack.c.bf16 %v263_v32, %v262_v31  ;;  %v233_v40 = vld [vmem:[%s1212_s1 + $0x38] sm:$0xff]  ;;  %v280_v41 = vld [vmem:[%s1212_s1 + $0x1b0] sm:$0xff]  ;;  %v250_v46 = vld [vmem:[%s1212_s1 + $0xc0] sm:$0xff]  ;;  %s821_s30 = smul.u32 24, %s1219_s19  ;;  %s616_s10 = sshll.u32 %s1219_s19, 3 }
   0xf   : > { %764 = vmatpush3.bf16.msra.mxu1 %v763_v25  ;;  %v281_v42 = vld [vmem:[%s1212_s1 + $0x1b8] sm:$0xff]  ;;  %v264_v44 = vld [vmem:[%s1212_s1 + $0x130] sm:$0xff]  ;;  %v251_v47 = vld [vmem:[%s1212_s1 + $0xc8] sm:$0xff]  ;;  %v739_v48 = vpack.c.bf16 %v233_v40, %v232_v37  ;;  %s1067_s22 = scalar_lea.vmem %s1216_s5, %s616_s10 }
  0x10   : > { %766 = vmatprep.subr.bf16.mxu1 %v765_v34  ;;  %v769_v43 = vpack.c.bf16 %v281_v42, %v280_v41  ;;  %v265_v45 = vld [vmem:[%s1212_s1 + $0x138] sm:$0xff]  ;;  %v282_v49 = vld [vmem:[%s1212_s1 + $0x1c0] sm:$0xff]  ;;  %v283_v50 = vld [vmem:[%s1212_s1 + $0x1c8] sm:$0xff]  ;;  %v741_v52 = vpack.c.bf16 %v251_v47, %v250_v46  ;;  %s1036_s26 = scalar_lea.vmem %s1211_s0, %s821_s30 }
  0x11   : > { %736 = vmatpush3.bf16.msra.mxu0 %v735_v33  ;;  %v771_v51 = vpack.c.bf16 %v265_v45, %v264_v44  ;;  %v234_v53 = vld [vmem:[%s1212_s1 + $0x40] sm:$0xff]  ;;  %v235_v54 = vld [vmem:[%s1212_s1 + $0x48] sm:$0xff]  ;;  %v773_v56 = vpack.c.bf16 %v283_v50, %v282_v49  ;;  %v252_v58 = vld [vmem:[%s1212_s1 + $0xd0] sm:$0xff] }
  0x12   : > { %738 = vmatprep.subr.bf16.mxu0 %v737_v39  ;;  %v266_v55 = vld [vmem:[%s1212_s1 + $0x140] sm:$0xff]  ;;  %v267_v57 = vld [vmem:[%s1212_s1 + $0x148] sm:$0xff]  ;;  %v253_v59 = vld [vmem:[%s1212_s1 + $0xd8] sm:$0xff]  ;;  %v743_v62 = vpack.c.bf16 %v235_v54, %v234_v53 }
  0x13   : > { %768 = vmatpush3.bf16.msra.mxu1 %v767_v38  ;;  %v284_v60 = vld [vmem:[%s1212_s1 + $0x1d0] sm:$0xff]  ;;  %v285_v61 = vld [vmem:[%s1212_s1 + $0x1d8] sm:$0xff]  ;;  %v775_v63 = vpack.c.bf16 %v267_v57, %v266_v55  ;;  %v745_v0 = vpack.c.bf16 %v253_v59, %v252_v58  ;;  %v254_v6 = vld [vmem:[%s1212_s1 + $0xe0] sm:$0xff] }
  0x14   : > { %770 = vmatprep.subr.bf16.mxu1 %v769_v43  ;;  %v236_v1 = vld [vmem:[%s1212_s1 + $0x50] sm:$0xff]  ;;  %v237_v2 = vld [vmem:[%s1212_s1 + $0x58] sm:$0xff]  ;;  %v777_v4 = vpack.c.bf16 %v285_v61, %v284_v60  ;;  %v255_v7 = vld [vmem:[%s1212_s1 + $0xe8] sm:$0xff] }
  0x15   : > { %740 = vmatpush3.bf16.msra.mxu0 %v739_v48  ;;  %v268_v3 = vld [vmem:[%s1212_s1 + $0x150] sm:$0xff]  ;;  %v269_v5 = vld [vmem:[%s1212_s1 + $0x158] sm:$0xff]  ;;  %v286_v8 = vld [vmem:[%s1212_s1 + $0x1e0] sm:$0xff]  ;;  %v747_v10 = vpack.c.bf16 %v237_v2, %v236_v1  ;;  %v749_v15 = vpack.c.bf16 %v255_v7, %v254_v6 }
  0x16   : > { %742 = vmatprep.subr.bf16.mxu0 %v741_v52  ;;  %v287_v9 = vld [vmem:[%s1212_s1 + $0x1e8] sm:$0xff]  ;;  %v238_v11 = vld [vmem:[%s1212_s1 + $0x60] sm:$0xff]  ;;  %v779_v14 = vpack.c.bf16 %v269_v5, %v268_v3  ;;  %v256_v22 = vld [vmem:[%s1212_s1 + $0xf0] sm:$0xff] }
  0x17   : > { %772 = vmatpush3.bf16.msra.mxu1 %v771_v51  ;;  %v239_v12 = vld [vmem:[%s1212_s1 + $0x68] sm:$0xff]  ;;  %v223_v13 = vld [vmem:[%s1036_s26] sm:$0xff]  ;;  %v781_v20 = vpack.c.bf16 %v287_v9, %v286_v8  ;;  %v257_v23 = vld [vmem:[%s1212_s1 + $0xf8] sm:$0xff] }
  0x18   : > { %774 = vmatprep.subr.bf16.mxu1 %v773_v56  ;;  %v270_v16 = vld [vmem:[%s1212_s1 + $0x160] sm:$0xff]  ;;  %v332_v17 = vcombine.high %v223_v13, %v223_v13  ;;  %v271_v21 = vld [vmem:[%s1212_s1 + $0x168] sm:$0xff]  ;;  %v288_v25 = vld [vmem:[%s1212_s1 + $0x1f0] sm:$0xff]  ;;  %v751_v28 = vpack.c.bf16 %v239_v12, %v238_v11  ;;  %v753_v31 = vpack.c.bf16 %v257_v23, %v256_v22 }
  0x19   : > { %744 = vmatpush3.bf16.msra.mxu0 %v743_v62  ;;  %v548_v18 = vld [vmem:[%s1214_s3] sm:$0x1]  ;;  %v289_v26 = vld [vmem:[%s1212_s1 + $0x1f8] sm:$0xff]  ;;  %v224_v27 = vld [vmem:[%s1036_s26 + $0x8] sm:$0xff]  ;;  %v783_v30 = vpack.c.bf16 %v271_v21, %v270_v16 }
  0x1a   : > { %746 = vmatprep.subr.bf16.mxu0 %v745_v0  ;;  %v549_v19 = vld [vmem:[%s1215_s4] sm:$0x1]  ;;  %402 = vmatprep.mubr.f32.mxu0 %v332_v17  ;;  %v333_v29 = vcombine.high %v224_v27, %v224_v27  ;;  %v240_v32 = vld [vmem:[%s1212_s1 + $0x70] sm:$0xff]  ;;  %v241_v33 = vld [vmem:[%s1212_s1 + $0x78] sm:$0xff]  ;;  %v785_v35 = vpack.c.bf16 %v289_v26, %v288_v25 }
  0x1b   : > { %776 = vmatpush3.bf16.msra.mxu1 %v775_v63  ;;  %v550_v24 = vadd.f32 %v549_v19, %v548_v18  ;;  %v272_v34 = vld [vmem:[%s1212_s1 + $0x170] sm:$0xff]  ;;  %v273_v36 = vld [vmem:[%s1212_s1 + $0x178] sm:$0xff]  ;;  %v306_v37 = vld [vmem:[%s1212_s1 + $0x280] sm:$0xff]  ;;  %v755_v39 = vpack.c.bf16 %v241_v33, %v240_v32 }
  0x1c   : > { %778 = vmatprep.subr.bf16.mxu1 %v777_v4  ;;  %v307_v38 = vld [vmem:[%s1212_s1 + $0x288] sm:$0xff]  ;;  %472 = vmatprep.mubr.f32.mxu1 %v333_v29  ;;  %v787_v40 = vpack.c.bf16 %v273_v36, %v272_v34  ;;  %v290_v42 = vld [vmem:[%s1212_s1 + $0x200] sm:$0xff]  ;;  %v308_v44 = vld [vmem:[%s1212_s1 + $0x290] sm:$0xff] }
  0x1d   : > { %748 = vmatpush3.bf16.msra.mxu0 %v747_v10  ;;  %552 = vst.msk [vmem:[%s1067_s22] sm:$0x1] %vm551_vm0, %v550_v24  ;;  %v789_v41 = vpack.c.bf16 %v307_v38, %v306_v37  ;;  %v291_v43 = vld [vmem:[%s1212_s1 + $0x208] sm:$0xff]  ;;  %v309_v45 = vld [vmem:[%s1212_s1 + $0x298] sm:$0xff]  ;;  %v292_v48 = vld [vmem:[%s1212_s1 + $0x210] sm:$0xff] }
  0x1e   : > { %750 = vmatprep.subr.bf16.mxu0 %v749_v15  ;;  %v791_v46 = vpack.c.bf16 %v291_v43, %v290_v42  ;;  %v793_v47 = vpack.c.bf16 %v309_v45, %v308_v44  ;;  %v293_v49 = vld [vmem:[%s1212_s1 + $0x218] sm:$0xff]  ;;  %v225_v50 = vld [vmem:[%s1036_s26 + $0x10] sm:$0xff]  ;;  %v310_v51 = vld [vmem:[%s1212_s1 + $0x2a0] sm:$0xff] }
  0x1f   : > { %780 = vmatpush3.bf16.msra.mxu1 %v779_v14  ;;  %v311_v52 = vld [vmem:[%s1212_s1 + $0x2a8] sm:$0xff]  ;;  %v334_v53 = vcombine.high %v225_v50, %v225_v50  ;;  %v795_v54 = vpack.c.bf16 %v293_v49, %v292_v48  ;;  %v294_v56 = vld [vmem:[%s1212_s1 + $0x220] sm:$0xff]  ;;  %v312_v58 = vld [vmem:[%s1212_s1 + $0x2b0] sm:$0xff] }
  0x20   : > { %782 = vmatprep.subr.bf16.mxu1 %v781_v20  ;;  %v797_v55 = vpack.c.bf16 %v311_v52, %v310_v51  ;;  %v295_v57 = vld [vmem:[%s1212_s1 + $0x228] sm:$0xff]  ;;  %v313_v59 = vld [vmem:[%s1212_s1 + $0x2b8] sm:$0xff]  ;;  %v296_v62 = vld [vmem:[%s1212_s1 + $0x230] sm:$0xff] }
  0x21   : > { %752 = vmatpush3.bf16.msra.mxu0 %v751_v28  ;;  %v799_v60 = vpack.c.bf16 %v295_v57, %v294_v56  ;;  %v801_v61 = vpack.c.bf16 %v313_v59, %v312_v58  ;;  %v297_v63 = vld [vmem:[%s1212_s1 + $0x238] sm:$0xff]  ;;  %v314_v0 = vld [vmem:[%s1212_s1 + $0x2c0] sm:$0xff]  ;;  %v315_v1 = vld [vmem:[%s1212_s1 + $0x2c8] sm:$0xff] }
  0x22   : > { %754 = vmatprep.subr.bf16.mxu0 %v753_v31  ;;  %v803_v2 = vpack.c.bf16 %v297_v63, %v296_v62  ;;  %v805_v3 = vpack.c.bf16 %v315_v1, %v314_v0  ;;  %v298_v4 = vld [vmem:[%s1212_s1 + $0x240] sm:$0xff]  ;;  %v299_v5 = vld [vmem:[%s1212_s1 + $0x248] sm:$0xff]  ;;  %v316_v6 = vld [vmem:[%s1212_s1 + $0x2d0] sm:$0xff] }
  0x23   : > { %784 = vmatpush3.bf16.msra.mxu1 %v783_v30  ;;  %v317_v7 = vld [vmem:[%s1212_s1 + $0x2d8] sm:$0xff]  ;;  %v807_v8 = vpack.c.bf16 %v299_v5, %v298_v4  ;;  %v300_v10 = vld [vmem:[%s1212_s1 + $0x250] sm:$0xff]  ;;  %v318_v12 = vld [vmem:[%s1212_s1 + $0x2e0] sm:$0xff] }
  0x24   : > { %786 = vmatprep.subr.bf16.mxu1 %v785_v35  ;;  %v809_v9 = vpack.c.bf16 %v317_v7, %v316_v6  ;;  %v301_v11 = vld [vmem:[%s1212_s1 + $0x258] sm:$0xff]  ;;  %v302_v16 = vld [vmem:[%s1212_s1 + $0x260] sm:$0xff]  ;;  %v303_v17 = vld [vmem:[%s1212_s1 + $0x268] sm:$0xff] }
  0x25   : > { %756 = vmatpush3.bf16.msra.mxu0 %v755_v39  ;;  %v811_v14 = vpack.c.bf16 %v301_v11, %v300_v10  ;;  %v320_v18 = vld [vmem:[%s1212_s1 + $0x2f0] sm:$0xff]  ;;  %v321_v19 = vld [vmem:[%s1212_s1 + $0x2f8] sm:$0xff]  ;;  %v815_v20 = vpack.c.bf16 %v303_v17, %v302_v16  ;;  %v617_v26 = vld [vmem:[%s1213_s2] ss:$0 sm:$0xff] }
  0x26   : > { %790 = vmatprep.subr.bf16.mxu0 %v789_v41  ;;  %v817_v21 = vpack.c.bf16 %v321_v19, %v320_v18  ;;  %v304_v22 = vld [vmem:[%s1212_s1 + $0x270] sm:$0xff]  ;;  %v305_v23 = vld [vmem:[%s1212_s1 + $0x278] sm:$0xff]  ;;  %v553_v37 = vld [vmem:[%s1215_s4 + $0x1] sm:$0xf] }
  0x27   : > { %788 = vmatpush3.bf16.msra.mxu1 %v787_v40  ;;  %v819_v24 = vpack.c.bf16 %v305_v23, %v304_v22 }
  0x28   : > { %403 = vmatmul.mubr.f32.vlgmr.msra.gmra.mrb[0].mxu0 %v223_v13  ;;  %v319_v13 = vld [vmem:[%s1212_s1 + $0x2e8] sm:$0xff] }
  0x29   : > { %792 = vmatpush3.bf16.msra.mxu0 %v791_v46  ;;  %542 = vmatprep.mubr.f32.mxu0 %v334_v53  ;;  %v813_v15 = vpack.c.bf16 %v319_v13, %v318_v12 }
  0x2a   : > { %473 = vmatmul.mubr.f32.vlgmr.msra.gmra.mrb[0].mxu1 %v224_v27  ;;  %794 = vmatprep.subr.bf16.mxu0 %v793_v47 }
  0x2d   : > { %796 = vmatpush3.bf16.msra.mxu0 %v795_v54 }
  0x2e   : > { %798 = vmatprep.subr.bf16.mxu0 %v797_v55 }
  0x31   : > { %800 = vmatpush3.bf16.msra.mxu0 %v799_v60 }
  0x32   : > { %802 = vmatprep.subr.bf16.mxu0 %v801_v61 }
  0x35   : > { %804 = vmatpush3.bf16.msra.mxu0 %v803_v2 }
  0x36   : > { %806 = vmatprep.subr.bf16.mxu0 %v805_v3 }
  0x39   : > { %808 = vmatpush3.bf16.msra.mxu0 %v807_v8 }
  0x3a   : > { %810 = vmatprep.subr.bf16.mxu0 %v809_v9 }
  0x3d   : > { %812 = vmatpush3.bf16.msra.mxu0 %v811_v14 }
  0x3e   : > { %814 = vmatprep.subr.bf16.mxu0 %v813_v15 }
  0x41   : > { %816 = vmatpush3.bf16.msra.mxu0 %v815_v20 }
  0x42   : > { %818 = vmatprep.subr.bf16.mxu0 %v817_v21 }
  0x45   : > { %820 = vmatpush3.bf16.msra.mxu0 %v819_v24 }
  0x48   : > { %543 = vmatmul.mubr.f32.vlgmr.msra.gmra.mrb[2].mxu0 %v225_v50 }
  0xfb   : > { %v652_v25 = vpop.f32.mrb[0].mxu0 }
  0xfc   : > { %v653_v27 = vpop.f32.mrb[1].mxu0 }
  0xfd   : > { %v687_v28 = vpop.f32.mrb[0].mxu1  ;;  %v654_v29 = vadd.f32 %v653_v27, %v652_v25 }
  0xfe   : > { %v688_v30 = vpop.f32.mrb[1].mxu1 }
  0xff   : > { %v689_v31 = vadd.f32 %v688_v30, %v687_v28  ;;  %v405_v32 = vadd.f32 %v654_v29, %v617_v26 }
 0x101   : > { %v475_v33 = vadd.f32 %v689_v31, %v405_v32 }
 0x11b   : > { %v722_v34 = vpop.f32.mrb[2].mxu0 }
 0x11c   : > { %v723_v35 = vpop.f32.mrb[3].mxu0 }
 0x11d   : > { %v724_v36 = vadd.f32 %v723_v35, %v722_v34 }
 0x11f   : > { %v545_v38 = vadd.f32 %v724_v36, %v475_v33 }
 0x121   : > { %v554_v39 = vadd.f32 %v553_v37, %v545_v38 }
 0x123   : > { %556 = vst.msk [vmem:[%s1067_s22 + $0x1] sm:$0xf] %vm555_vm1, %v554_v39 }
 0x124 PF: > { %s15_s18 = sadd.s32 1, %s839_s18  }
 0x125   : > { %p12_p4 = scmp.ge.s32.totalorder %s15_s18, 4  }
 0x127   :  { %14 = sbr.rel (!%p12_p4) target bundleno = 1 (0x1), region = 70 }

// kernel: segmenter_forward.8
= control target key start
LH: loop header
LB: loop body
LE: loop exit
PB: predicated region body
PF: predicated region fallthrough
CT: control target
= control target key end

     0   :  { %s1639_s25 = smov 0   ;;  %s1838_s0 = inlined_call_operand.vmem [shape: f32[2,5,32], index: 0, kind: input, shape index: {}]   ;;  %s1839_s1 = inlined_call_operand.vmem [shape: f32[1,32], index: 1, kind: input, shape index: {}]   ;;  %s1840_s2 = inlined_call_operand.vmem [shape: f32[1,32], index: 2, kind: input, shape index: {}]   ;;  %s1841_s3 = inlined_call_operand.vmem [shape: f32[32,96], index: 3, kind: input, shape index: {}]   ;;  %s1842_s4 = inlined_call_operand.vmem [shape: f32[1,96], index: 4, kind: input, shape index: {}]   ;;  %s1843_s5 = inlined_call_operand.vmem [shape: f32[32,32], index: 5, kind: input, shape index: {}]   ;;  %s1844_s6 = inlined_call_operand.vmem [shape: f32[1,32], index: 6, kind: input, shape index: {}]   ;;  %s1845_s7 = inlined_call_operand.vmem [shape: f32[1,32], index: 7, kind: input, shape index: {}]   ;;  %s1846_s8 = inlined_call_operand.vmem [shape: f32[1,32], index: 8, kind: input, shape index: {}]   ;;  %s1847_s9 = inlined_call_operand.vmem [shape: f32[32,128], index: 9, kind: input, shape index: {}]   ;;  %s1848_s10 = inlined_call_operand.vmem [shape: f32[1,128], index: 10, kind: input, shape index: {}]   ;;  %s1849_s11 = inlined_call_operand.vmem [shape: f32[128,32], index: 11, kind: input, shape index: {}]   ;;  %s1850_s12 = inlined_call_operand.vmem [shape: f32[1,32], index: 12, kind: input, shape index: {}]   ;;  %s1851_s13 = inlined_call_operand.vmem [shape: f32[2,5,32], index: 13, kind: output, shape index: {}]  }
   0x1 LB: > { %s1320_s26 = sadd.s32 4294967295, %s1559_s25   ;;  %p1324_p0 = scmp.ge.s32.totalorder %s1559_s25, 1  ;;  %s1559_s25 = sphi %s1639_s25, %s23_s25  }
   0x2   : > { %p386_p1 = scmp.lt.s32.totalorder %s1559_s25, 3 }
   0x4   : > { %p387_p2 = pnand %p1324_p0, %p386_p1 }
   0x5   : > { %p428_p3 = scmp.lt.s32.totalorder (!%p387_p2), %s1320_s26, 1  ;;  %vm439_vm0 = vcmask (!%p387_p2), 258048   ;;  %v468_v7 = vld [vmem:[%s1841_s3] sm:$0xff] (!%p387_p2)  ;;  %v469_v8 = vld [vmem:[%s1841_s3 + $0x8] sm:$0xff] (!%p387_p2)  ;;  %v470_v9 = vld [vmem:[%s1841_s3 + $0x10] sm:$0xff] (!%p387_p2)  ;;  %v1561_v10 = vmov (!%p387_p2), 0.0|0.0  }
   0x6   : > { %390 = sbr.rel (%p387_p2) target bundleno = 3133 (0xc3d), region = 72  ;;  %1481 = vmatprep.subr.bf16.mxu0 (!%p387_p2), %v1561_v10  ;;  %v1482_v11 = vpack.c.bf16 (!%p387_p2), %v469_v8, %v468_v7  ;;  %v471_v12 = vld [vmem:[%s1841_s3 + $0x18] sm:$0xff] (!%p387_p2)  ;;  %vm1562_vm1 = vmmov (!%p387_p2), 0   ;;  %v1563_v13 = vmov (!%p387_p2), 0.0   ;;  %1490 = vmatprep.subr.bf16.mxu1 (!%p387_p2), %v1561_v10  ;;  %v1327_v19 = vld [vmem:[%s1839_s1] ss:$0 sm:$0xff] (!%p387_p2) }
   0x7   : > { %1398 = vmatprep.mubr.msk.f32.mxu0 (!%p387_p2), %vm1562_vm1, %v1563_v13  ;;  %1432 = vmatprep.mubr.msk.f32.mxu1 (!%p387_p2), %vm1562_vm1, %v1563_v13  ;;  %v1485_v14 = vpack.c.bf16 (!%p387_p2), %v471_v12, %v470_v9  ;;  %v1328_v21 = vld [vmem:[%s1840_s2] ss:$0 sm:$0xff] (!%p387_p2)  ;;  %vm479_vm2 = vcmask (!%p387_p2), 261120   ;;  %s1564_s14 = smov (!%p387_p2), 96   ;;  %vm567_vm3 = vcmask (!%p387_p2), 130048   ;;  %vm643_vm4 = vcmask (!%p387_p2), 36864  }
   0x8   : > { %1483 = vmatpush3.bf16.msra.mxu0 (!%p387_p2), %v1482_v11  ;;  %v1329_v24 = vld [vmem:[%s1842_s4] ss:$0 sm:$0xff] (!%p387_p2)  ;;  %s1565_s15 = smov (!%p387_p2), 64   ;;  %s1566_s16 = smov (!%p387_p2), 80   ;;  %vm661_vm5 = vcmask (!%p387_p2), 1044480   ;;  %v554_v41 = vld [vmem:[%s1843_s5 + $0x8] sm:$0xff] (!%p387_p2) }
   0x9   : > { %1484 = vmatprep.subr.bf16.mxu0 (!%p387_p2), %v1561_v10  ;;  %s1567_s17 = smov (!%p387_p2), 112   ;;  %v553_v40 = vld [vmem:[%s1843_s5] sm:$0xff] (!%p387_p2)  ;;  %vm657_vm6 = vcmask (!%p387_p2), 39936   ;;  %s1568_s22 = smov (!%p387_p2), 48   ;;  %v555_v61 = vld [vmem:[%s1843_s5 + $0x10] sm:$0xff] (!%p387_p2)  ;;  %v556_v62 = vld [vmem:[%s1843_s5 + $0x18] sm:$0xff] (!%p387_p2) }
   0xa   : > { %v1488_v43 = vpack.c.bf16 (!%p387_p2), %v554_v41, %v553_v40  ;;  %v1491_v63 = vpack.c.bf16 (!%p387_p2), %v556_v62, %v555_v61  ;;  %v1177_v40 = vld [vmem:[%s1849_s11 + $0x28] sm:$0xff] (!%p387_p2) }
   0xc   : > { %1486 = vmatpush3.bf16.msra.mxu0 (!%p387_p2), %v1485_v14  ;;  %1492 = vmatpush3.bf16.msra.mxu1 (!%p387_p2), %v1491_v63 }
   0xd   : > { %s1853_s26 = smov (!%p428_p3, %s1320_s26), 1  ;;  %1401 = vmatprep.subr.mxu0 %v1563_v13  ;;  %1499 = vmatprep.subr.bf16.mxu1 %v1561_v10 }
   0xe   : > { %s1325_s27 = sshll.u32 %s1853_s26, 3 }
   0xf   : > { %s431_s30 = scalar_lea.vmem %s1838_s0, %s1325_s27  ;;  %s435_s23 = scalar_lea.vmem %s1851_s13, %s1325_s27 }
  0x10   : > { %v1655_v0 = vld [vmem:[%s431_s30] sm:$0x1f] }
  0x11   : > { %v440_v1 = vsel %vm439_vm0, %v1655_v0, 0.0 }
  0x12   : > { %441 = vadd.xlane.f32.xlu0 %v440_v1 }
  0x9f   : > { %v442_v2 = vpop.xlane.xlu0 %441 }
  0xa0   : > { %v444_v3 = vmul.f32 0.03125, %v442_v2 }
  0xa2   : > { %v445_v4 = vsub.f32 %v1655_v0, %v444_v3 }
  0xa4   : > { %v446_v5 = vmul.f32 %v445_v4, %v445_v4 }
  0xa6   : > { %v447_v6 = vsel %vm439_vm0, %v446_v5, 0.0 }
  0xa7   : > { %448 = vadd.xlane.f32.xlu0 %v447_v6  ;;  %v1331_v6 = vld [vmem:[%s1844_s6] ss:$0 sm:$0xff] }
 0x134   : > { %v449_v15 = vpop.xlane.xlu0 %448 }
 0x135   : > { %v450_v16 = vmul.f32 0.03125, %v449_v15 }
 0x137   : > { %v451_v17 = vadd.f32 1e-05, %v450_v16 }
 0x139   : > { %1539 = vrsqrt.f32 %v451_v17 }
 0x143   : > { %v1540_v18 = vpop.eup %1539 }
 0x144   : > { %v453_v20 = vmul.f32 %v1540_v18, %v445_v4 }
 0x146   : > { %v460_v22 = vmul.f32 %v1327_v19, %v453_v20  ;;  %v1079_v19 = vld [vmem:[%s1847_s9] sm:$0xff] }
 0x148   : > { %v467_v23 = vadd.f32 %v1328_v21, %v460_v22  ;;  %v1081_v21 = vld [vmem:[%s1847_s9 + $0x10] sm:$0xff]  ;;  %v1082_v22 = vld [vmem:[%s1847_s9 + $0x18] sm:$0xff] }
 0x14a   : > { %1399 = vmatmul.mubr.msk.f32.vlgmr.msra.gmra.mrb[0].mxu0 %vm479_vm2, %v467_v23  ;;  %v1497_v23 = vpack.c.bf16 %v1082_v22, %v1081_v21 }
 0x14b   : > { %1403 = vmatprep.mubr.msk.f32.mxu0 %vm1562_vm1, %v1563_v13 }
 0x21d   : > { %v549_v25 = vpop.f32.mrb[0].mxu0 }
 0x21e   : > { %v550_v26 = vadd.f32 %v1329_v24, %v549_v25  ;;  %v1400_v27 = vpop.f32.mrb[1].mxu0  ;;  %v1172_v24 = vld [vmem:[%s1849_s11] sm:$0xff]  ;;  %v1173_v25 = vld [vmem:[%s1849_s11 + $0x8] sm:$0xff] }
 0x220   : > { %565 = vrot.lane.b32.xlu1 %v550_v26, %s1564_s14 }
 0x292   : > { %v566_v28 = vpop.permute.xlu1 %565 }
 0x293   : > { %1402 = vmatpush3.xpose.msk.msra.mxu0 %vm567_vm3, %v566_v28 }
 0x294   : > { %1406 = vmatprep.subr.mxu0 %v1563_v13 }
 0x296   : > { %1404 = vmatmul.mubr.msk.f32.vlgmr.msra.gmra.mrb[2].mxu0 %vm567_vm3, %v550_v26 }
 0x297   : > { %1408 = vmatprep.mubr.msk.f32.mxu0 %vm1562_vm1, %v1563_v13 }
 0x369   : > { %v638_v29 = vpop.f32.mrb[2].mxu0 }
 0x36a   : > { %v642_v30 = vmul.f32 0.25, %v638_v29  ;;  %v1405_v31 = vpop.f32.mrb[3].mxu0 }
 0x36b   : > { %v1342_v31 = vld [vmem:[%s1845_s7] ss:$0 sm:$0xff] }
 0x36c   : > { %v644_v32 = vsel %vm643_vm4, %v642_v30, -inf }
 0x36d   : > { %645 = vmax.xlane.f32.xlu1 %v644_v32 }
 0x3fa   : > { %v646_v33 = vpop.xlane.xlu1 %645 }
 0x3fb   : > { %v647_v34 = vsub.f32 %v642_v30, %v646_v33  ;;  %v1343_v33 = vld [vmem:[%s1846_s8] ss:$0 sm:$0xff] }
 0x3fd   : > { %v648_v35 = vmul.f32 1.442695, %v647_v34 }
 0x3ff   : > { %1541 = vpow2.f32 %v648_v35 }
 0x409   : > { %v1542_v36 = vpop.eup %1541 }
 0x40a   : > { %v650_v37 = vsel %vm643_vm4, %v1542_v36, 0.0 }
 0x40b   : > { %651 = vadd.xlane.f32.xlu0 %v650_v37  ;;  %v1175_v37 = vld [vmem:[%s1849_s11 + $0x18] sm:$0xff] }
 0x421   : > { %655 = vrot.lane.b32.xlu0 %v550_v26, %s1565_s15 }
 0x425   : > { %810 = vrot.lane.b32.xlu0 %v550_v26, %s1566_s16 }
 0x429   : > { %808 = vrot.lane.b32.xlu0 %v550_v26, %s1567_s17 }
 0x498   : > { %v652_v38 = vpop.xlane.xlu0 %651 }
 0x499   : > { %1543 = vrcp.f32 %v652_v38 }
 0x49c   : > { %v656_v39 = vpop.permute.xlu0 %655 }
 0x49d   : > { %1407 = vmatpush3.msk.msra.mxu0 %vm661_vm5, %v656_v39  ;;  %v1176_v39 = vld [vmem:[%s1849_s11 + $0x20] sm:$0xff] }
 0x49e   : > { %1487 = vmatprep.subr.bf16.mxu0 %v1561_v10  ;;  %v1506_v41 = vpack.c.bf16 %v1177_v40, %v1176_v39 }
 0x4a0   : > { %v811_v45 = vpop.permute.xlu0 %810 }
 0x4a3   : > { %v1544_v42 = vpop.eup %1543 }
 0x4a4   : > { %v654_v44 = vmul.f32 %v1544_v42, %v1542_v36  ;;  %v809_v48 = vpop.permute.xlu0 %808  ;;  %v1174_v36 = vld [vmem:[%s1849_s11 + $0x10] sm:$0xff] }
 0x4a5   : > { %v1503_v38 = vpack.c.bf16 %v1175_v37, %v1174_v36  ;;  %v1178_v42 = vld [vmem:[%s1849_s11 + $0x30] sm:$0xff] }
 0x4a6   : > { %1409 = vmatmul.mubr.msk.f32.vlgmr.msra.gmra.mrb[4].mxu0 %vm657_vm6, %v654_v44 }
 0x4a7   : > { %1489 = vmatpush3.bf16.msra.mxu0 %v1488_v43  ;;  %1415 = vmatprep.mubr.msk.f32.mxu0 %vm1562_vm1, %v1563_v13  ;;  %v1179_v43 = vld [vmem:[%s1849_s11 + $0x38] sm:$0xff] }
 0x4a8   : > { %1418 = vmatprep.subr.mxu0 %v1563_v13  ;;  %v1509_v44 = vpack.c.bf16 %v1179_v43, %v1178_v42 }
 0x579   : > { %v730_v46 = vpop.f32.mrb[4].mxu0 }
 0x57a   : > { %v1410_v47 = vpop.f32.mrb[5].mxu0  ;;  %1416 = vmatmul.mubr.msk.f32.vlgmr.msra.gmra.mrb[6].mxu0 %vm567_vm3, %v730_v46  ;;  %v1181_v46 = vld [vmem:[%s1849_s11 + $0x48] sm:$0xff] }
 0x57b   : > { %1419 = vmatpush3.xpose.msk.msra.mxu0 %vm567_vm3, %v811_v45  ;;  %1420 = vmatprep.mubr.msk.f32.mxu0 %vm1562_vm1, %v1563_v13  ;;  %v1180_v45 = vld [vmem:[%s1849_s11 + $0x40] sm:$0xff]  ;;  %v1182_v47 = vld [vmem:[%s1849_s11 + $0x50] sm:$0xff] }
 0x57c   : > { %1423 = vmatprep.subr.mxu0 %v1563_v13 }
 0x57e   : > { %1421 = vmatmul.mubr.msk.f32.vlgmr.msra.gmra.mrb[8].mxu0 %vm567_vm3, %v809_v48  ;;  %v1512_v48 = vpack.c.bf16 %v1181_v46, %v1180_v45 }
 0x57f   : > { %1425 = vmatprep.mubr.msk.f32.mxu0 %vm1562_vm1, %v1563_v13 }
 0x64d   : > { %v803_v49 = vpop.f32.mrb[6].mxu0 }
 0x64e   : > { %v1417_v50 = vpop.f32.mrb[7].mxu0  ;;  %v807_v7 = vadd.f32 %v1331_v6, %v803_v49  ;;  %v1183_v49 = vld [vmem:[%s1849_s11 + $0x58] sm:$0xff] }
 0x64f   : > { %v1515_v50 = vpack.c.bf16 %v1183_v49, %v1182_v47 }
 0x651   : > { %v882_v51 = vpop.f32.mrb[8].mxu0 }
 0x652   : > { %v886_v52 = vmul.f32 0.25, %v882_v51  ;;  %v1422_v53 = vpop.f32.mrb[9].mxu0  ;;  %v1184_v51 = vld [vmem:[%s1849_s11 + $0x60] sm:$0xff] }
 0x654   : > { %v887_v54 = vsel %vm643_vm4, %v886_v52, -inf }
 0x655   : > { %888 = vmax.xlane.f32.xlu1 %v887_v54  ;;  %v1186_v54 = vld [vmem:[%s1849_s11 + $0x70] sm:$0xff] }
 0x666   : > { %898 = vrot.lane.b32.xlu1 %v550_v26, %s1568_s22  ;;  %v1500_v26 = vpack.c.bf16 %v1173_v25, %v1172_v24 }
 0x6e2   : > { %v889_v55 = vpop.xlane.xlu1 %888 }
 0x6e3   : > { %v890_v56 = vsub.f32 %v886_v52, %v889_v55  ;;  %v1185_v52 = vld [vmem:[%s1849_s11 + $0x68] sm:$0xff]  ;;  %v1187_v55 = vld [vmem:[%s1849_s11 + $0x78] sm:$0xff] }
 0x6e4   : > { %v1518_v53 = vpack.c.bf16 %v1185_v52, %v1184_v51 }
 0x6e5   : > { %v891_v57 = vmul.f32 1.442695, %v890_v56  ;;  %v1521_v56 = vpack.c.bf16 %v1187_v55, %v1186_v54 }
 0x6e6   : > { %v899_v58 = vpop.permute.xlu1 %898 }
 0x6e7   : > { %1545 = vpow2.f32 %v891_v57  ;;  %1424 = vmatpush3.msk.msra.mxu0 %vm661_vm5, %v899_v58  ;;  %v1344_v57 = vld [vmem:[%s1848_s10] ss:$0 sm:$0xff] }
 0x6e8   : > { %1493 = vmatprep.subr.bf16.mxu0 %v1561_v10 }
 0x6f1   : > { %v1546_v59 = vpop.eup %1545 }
 0x6f2   : > { %v893_v60 = vsel %vm643_vm4, %v1546_v59, 0.0 }
 0x6f3   : > { %894 = vadd.xlane.f32.xlu0 %v893_v60 }
 0x780   : > { %v895_v1 = vpop.xlane.xlu0 %894 }
 0x781   : > { %1547 = vrcp.f32 %v895_v1 }
 0x78b   : > { %v1548_v2 = vpop.eup %1547 }
 0x78c   : > { %v897_v3 = vmul.f32 %v1548_v2, %v1546_v59 }
 0x78e   : > { %1426 = vmatmul.mubr.msk.f32.vlgmr.msra.gmra.mrb[10].mxu0 %vm657_vm6, %v897_v3 }
 0x78f   : > { %1443 = vmatprep.mubr.msk.f32.mxu0 %vm1562_vm1, %v1563_v13 }
 0x861   : > { %v971_v4 = vpop.f32.mrb[10].mxu0 }
 0x862   : > { %v1427_v5 = vpop.f32.mrb[11].mxu0  ;;  %1433 = vmatmul.mubr.msk.f32.vlgmr.msra.gmra.mrb[0].mxu1 %vm567_vm3, %v971_v4 }
 0x863   : > { %1478 = vmatprep.mubr.msk.f32.mxu1 %vm1562_vm1, %v1563_v13  ;;  %1501 = vmatpush3.bf16.msra.mxu1 %v1500_v26 }
 0x864   : > { %1502 = vmatprep.subr.bf16.mxu1 %v1561_v10 }
 0x867   : > { %1504 = vmatpush3.bf16.msra.mxu1 %v1503_v38 }
 0x868   : > { %1505 = vmatprep.subr.bf16.mxu1 %v1561_v10 }
 0x86b   : > { %1507 = vmatpush3.bf16.msra.mxu1 %v1506_v41 }
 0x86c   : > { %1508 = vmatprep.subr.bf16.mxu1 %v1561_v10 }
 0x86f   : > { %1510 = vmatpush3.bf16.msra.mxu1 %v1509_v44 }
 0x870   : > { %1511 = vmatprep.subr.bf16.mxu1 %v1561_v10 }
 0x873   : > { %1513 = vmatpush3.bf16.msra.mxu1 %v1512_v48 }
 0x874   : > { %1514 = vmatprep.subr.bf16.mxu1 %v1561_v10 }
 0x877   : > { %1516 = vmatpush3.bf16.msra.mxu1 %v1515_v50 }
 0x878   : > { %1517 = vmatprep.subr.bf16.mxu1 %v1561_v10 }
 0x87b   : > { %1519 = vmatpush3.bf16.msra.mxu1 %v1518_v53 }
 0x87c   : > { %1520 = vmatprep.subr.bf16.mxu1 %v1561_v10 }
 0x87f   : > { %1522 = vmatpush3.bf16.msra.mxu1 %v1521_v56 }
 0x935   : > { %v1044_v8 = vpop.f32.mrb[0].mxu1 }
 0x936   : > { %v1048_v9 = vadd.f32 %v1044_v8, %v807_v7  ;;  %v1434_v11 = vpop.f32.mrb[1].mxu1 }
 0x938   : > { %v1741_v12 = vadd.f32 %v1048_v9, %v1655_v0  ;;  %v1080_v0 = vld [vmem:[%s1847_s9 + $0x8] sm:$0xff] }
 0x939   : > { %v1494_v20 = vpack.c.bf16 %v1080_v0, %v1079_v19 }
 0x93a   : > { %v1052_v14 = vsel %vm439_vm0, %v1741_v12, 0.0 }
 0x93b   : > { %1053 = vadd.xlane.f32.xlu1 %v1052_v14  ;;  %1495 = vmatpush3.bf16.msra.mxu0 %v1494_v20 }
 0x93c   : > { %1496 = vmatprep.subr.bf16.mxu0 %v1561_v10  ;;  %v1346_v10 = vld [vmem:[%s1850_s12] ss:$0 sm:$0xff] }
 0x93f   : > { %1498 = vmatpush3.bf16.msra.mxu0 %v1497_v23 }
 0x9c8   : > { %v1054_v15 = vpop.xlane.xlu1 %1053 }
 0x9c9   : > { %v1055_v16 = vmul.f32 0.03125, %v1054_v15 }
 0x9cb   : > { %v1056_v17 = vsub.f32 %v1741_v12, %v1055_v16 }
 0x9cd   : > { %v1057_v13 = vmul.f32 %v1056_v17, %v1056_v17 }
 0x9cf   : > { %v1058_v18 = vsel %vm439_vm0, %v1057_v13, 0.0 }
 0x9d0   : > { %1059 = vadd.xlane.f32.xlu0 %v1058_v18 }
 0xa5d   : > { %v1060_v27 = vpop.xlane.xlu0 %1059 }
 0xa5e   : > { %v1061_v28 = vmul.f32 0.03125, %v1060_v27 }
 0xa60   : > { %v1062_v29 = vadd.f32 1e-05, %v1061_v28 }
 0xa62   : > { %1549 = vrsqrt.f32 %v1062_v29 }
 0xa6c   : > { %v1550_v30 = vpop.eup %1549 }
 0xa6d   : > { %v1064_v32 = vmul.f32 %v1550_v30, %v1056_v17 }
 0xa6f   : > { %v1071_v34 = vmul.f32 %v1342_v31, %v1064_v32 }
 0xa71   : > { %v1078_v35 = vadd.f32 %v1343_v33, %v1071_v34 }
 0xa73   : > { %1444 = vmatmul.mubr.msk.f32.vlgmr.msra.gmra.mrb[12].mxu0 %vm479_vm2, %v1078_v35 }
 0xb46   : > { %v1159_v58 = vpop.f32.mrb[12].mxu0 }
 0xb47   : > { %v1160_v59 = vadd.f32 %v1344_v57, %v1159_v58  ;;  %v1445_v60 = vpop.f32.mrb[13].mxu0 }
 0xb49   : > { %v1163_v61 = vmul.f32 %v1160_v59, %v1160_v59 }
 0xb4b   : > { %v1164_v62 = vmul.f32 %v1163_v61, %v1160_v59 }
 0xb4d   : > { %v1165_v63 = vmul.f32 0.044715, %v1164_v62 }
 0xb4f   : > { %v1166_v1 = vadd.f32 %v1165_v63, %v1160_v59 }
 0xb51   : > { %v1167_v2 = vmul.f32 0.7978846, %v1166_v1 }
 0xb53   : > { %1551 = vtanh.f32 %v1167_v2 }
 0xb5d   : > { %v1552_v3 = vpop.eup %1551 }
 0xb5e   : > { %v1169_v4 = vadd.f32 1.0, %v1552_v3 }
 0xb60   : > { %v1170_v5 = vmul.f32 0.5, %v1169_v4 }
 0xb62   : > { %v1171_v6 = vmul.f32 %v1170_v5, %v1160_v59 }
 0xb64   : > { %1479 = vmatmul.mubr.f32.vlgmr.msra.gmra.mrb[2].mxu1 %v1171_v6 }
 0xc37   : > { %v1261_v7 = vpop.f32.mrb[2].mxu1 }
 0xc38   : > { %v1262_v8 = vadd.f32 %v1346_v10, %v1261_v7  ;;  %v1480_v9 = vpop.f32.mrb[3].mxu1 }
 0xc3a   : > { %v1265_v11 = vadd.f32 %v1262_v8, %v1741_v12 }
 0xc3c   : > { %1266 = vst.msk [vmem:[%s435_s23] sm:$0x1f] %vm439_vm0, %v1265_v11 }
 0xc3d PF: > { %s23_s25 = sadd.s32 1, %s1559_s25  }
 0xc3e   : > { %p20_p4 = scmp.ge.s32.totalorder %s23_s25, 4  }
 0xc40   :  { %22 = sbr.rel (!%p20_p4) target bundleno = 1 (0x1), region = 102 }

// kernel: segmenter_forward.11
= control target key start
LH: loop header
LB: loop body
LE: loop exit
PB: predicated region body
PF: predicated region fallthrough
CT: control target
= control target key end

     0   :  { %s1906_s25 = smov 0   ;;  %s2124_s0 = inlined_call_operand.vmem [shape: f32[2,13,32], index: 0, kind: input, shape index: {}]   ;;  %s2125_s1 = inlined_call_operand.vmem [shape: f32[1,32], index: 1, kind: input, shape index: {}]   ;;  %s2126_s2 = inlined_call_operand.vmem [shape: f32[1,32], index: 2, kind: input, shape index: {}]   ;;  %s2127_s3 = inlined_call_operand.vmem [shape: f32[32,96], index: 3, kind: input, shape index: {}]   ;;  %s2128_s4 = inlined_call_operand.vmem [shape: f32[1,96], index: 4, kind: input, shape index: {}]   ;;  %s2129_s5 = inlined_call_operand.vmem [shape: f32[32,32], index: 5, kind: input, shape index: {}]   ;;  %s2130_s6 = inlined_call_operand.vmem [shape: f32[1,32], index: 6, kind: input, shape index: {}]   ;;  %s2131_s7 = inlined_call_operand.vmem [shape: f32[1,32], index: 7, kind: input, shape index: {}]   ;;  %s2132_s8 = inlined_call_operand.vmem [shape: f32[1,32], index: 8, kind: input, shape index: {}]   ;;  %s2133_s9 = inlined_call_operand.vmem [shape: f32[32,128], index: 9, kind: input, shape index: {}]   ;;  %s2134_s10 = inlined_call_operand.vmem [shape: f32[1,128], index: 10, kind: input, shape index: {}]   ;;  %s2135_s11 = inlined_call_operand.vmem [shape: f32[128,32], index: 11, kind: input, shape index: {}]   ;;  %s2136_s12 = inlined_call_operand.vmem [shape: f32[1,32], index: 12, kind: input, shape index: {}]   ;;  %s2137_s13 = inlined_call_operand.vmem [shape: f32[2,13,32], index: 13, kind: output, shape index: {}]  }
   0x1 LB: > { %s1480_s26 = sadd.s32 4294967295, %s1828_s25   ;;  %p1484_p0 = scmp.ge.s32.totalorder %s1828_s25, 1  ;;  %s1828_s25 = sphi %s1906_s25, %s23_s25  }
   0x2   : > { %p387_p1 = scmp.lt.s32.totalorder %s1828_s25, 3 }
   0x4   : > { %p388_p2 = pnand %p1484_p0, %p387_p1 }
   0x5   : > { %p431_p3 = scmp.lt.s32.totalorder (!%p388_p2), %s1480_s26, 1  ;;  %vm445_vm0 = vcmask (!%p388_p2), 261120   ;;  %vm449_vm1 = vcmask (!%p388_p2), 258048   ;;  %v490_v14 = vld [vmem:[%s2127_s3] sm:$0xff] (!%p388_p2)  ;;  %v491_v15 = vld [vmem:[%s2127_s3 + $0x8] sm:$0xff] (!%p388_p2)  ;;  %v492_v16 = vld [vmem:[%s2127_s3 + $0x10] sm:$0xff] (!%p388_p2) }
   0x6   : > { %391 = sbr.rel (%p388_p2) target bundleno = 3180 (0xc6c), region = 72  ;;  %v1676_v17 = vpack.c.bf16 (!%p388_p2), %v491_v15, %v490_v14  ;;  %v493_v18 = vld [vmem:[%s2127_s3 + $0x18] sm:$0xff] (!%p388_p2)  ;;  %v1489_v27 = vld [vmem:[%s2125_s1] ss:$0 sm:$0xff] (!%p388_p2)  ;;  %vm599_vm2 = vcmask (!%p388_p2), 130048   ;;  %s1830_s14 = smov (!%p388_p2), 96  }
   0x7   : > { %v1680_v19 = vpack.c.bf16 (!%p388_p2), %v493_v18, %v492_v16  ;;  %v1490_v29 = vld [vmem:[%s2126_s2] ss:$0 sm:$0xff] (!%p388_p2)  ;;  %s1831_s15 = smov (!%p388_p2), 80   ;;  %s1832_s16 = smov (!%p388_p2), 112   ;;  %vm1964_vm3 = vmpackc.low (!%p388_p2), %vm599_vm2, %vm599_vm2  ;;  %vm685_vm4 = vcmask (!%p388_p2), 105472   ;;  %vm689_vm5 = vcmask (!%p388_p2), 102400  }
   0x8   : > { %1677 = vmatprep.subr.bf16.mxu0 (!%p388_p2), %v1676_v17  ;;  %v1491_v36 = vld [vmem:[%s2128_s4] ss:$0 sm:$0xff] (!%p388_p2)  ;;  %s1833_s17 = smov (!%p388_p2), 64   ;;  %vm720_vm6 = vcmask (!%p388_p2), 1044480   ;;  %vm1834_vm7 = vmmov (!%p388_p2), 1   ;;  %s1835_s22 = smov (!%p388_p2), 48  }
   0x9   : > { %1679 = vmatpush3.bf16.msra.mxu0 (!%p388_p2), %v1676_v17  ;;  %vm1984_vm8 = vmpackc.low (!%p388_p2), %vm720_vm6, %vm1834_vm7  ;;  %v584_v45 = vld [vmem:[%s2129_s5 + $0x10] sm:$0xff] (!%p388_p2) }
   0xa   : > { %1681 = vmatprep.subr.bf16.mxu0 (!%p388_p2), %v1680_v19 }
   0xd   : > { %s2143_s26 = smov (!%p431_p3, %s1480_s26), 1  ;;  %1683 = vmatpush3.bf16.msra.mxu0 %v1680_v19 }
   0xe   : > { %s1521_s27 = sshll.u32 %s2143_s26, 4 }
   0xf   : > { %s435_s30 = scalar_lea.vmem %s2124_s0, %s1521_s27  ;;  %s440_s23 = scalar_lea.vmem %s2137_s13, %s1521_s27 }
  0x10   : > { %v1922_v0 = vld [vmem:[%s435_s30] sm:$0xff]  ;;  %v1924_v1 = vld [vmem:[%s435_s30 + $0x8] sm:$0x1f] }
  0x11   : > { %v446_v2 = vsel %vm445_vm0, %v1922_v0, 0.0  ;;  %v450_v3 = vsel %vm449_vm1, %v1924_v1, 0.0 }
  0x12   : > { %447 = vadd.xlane.f32.xlu0 %v446_v2 }
  0x16   : > { %451 = vadd.xlane.f32.xlu0 %v450_v3 }
  0x9f   : > { %v448_v4 = vpop.xlane.xlu0 %447 }
  0xa0   : > { %v454_v5 = vmul.f32 0.03125, %v448_v4  ;;  %v582_v4 = vld [vmem:[%s2129_s5] sm:$0xff] }
  0xa2   : > { %v456_v6 = vsub.f32 %v1922_v0, %v454_v5  ;;  %v583_v5 = vld [vmem:[%s2129_s5 + $0x8] sm:$0xff] }
  0xa3   : > { %v452_v7 = vpop.xlane.xlu0 %451 }
  0xa4   : > { %v455_v8 = vmul.f32 0.03125, %v452_v7  ;;  %v458_v9 = vmul.f32 %v456_v6, %v456_v6 }
  0xa6   : > { %v457_v10 = vsub.f32 %v1924_v1, %v455_v8  ;;  %v460_v11 = vsel %vm445_vm0, %v458_v9, 0.0 }
  0xa7   : > { %461 = vadd.xlane.f32.xlu1 %v460_v11 }
  0xa8   : > { %v459_v12 = vmul.f32 %v457_v10, %v457_v10 }
  0xaa   : > { %v463_v13 = vsel %vm449_vm1, %v459_v12, 0.0 }
  0xab   : > { %464 = vadd.xlane.f32.xlu1 %v463_v13 }
 0x134   : > { %v462_v20 = vpop.xlane.xlu1 %461 }
 0x135   : > { %v466_v21 = vmul.f32 0.03125, %v462_v20 }
 0x137   : > { %v468_v22 = vadd.f32 1e-05, %v466_v21 }
 0x138   : > { %v465_v23 = vpop.xlane.xlu1 %464 }
 0x139   : > { %1794 = vrsqrt.f32 %v468_v22  ;;  %v467_v24 = vmul.f32 0.03125, %v465_v23 }
 0x13b   : > { %v469_v25 = vadd.f32 1e-05, %v467_v24 }
 0x13d   : > { %1796 = vrsqrt.f32 %v469_v25 }
 0x143   : > { %v1795_v26 = vpop.eup %1794 }
 0x144   : > { %v472_v28 = vmul.f32 %v1795_v26, %v456_v6 }
 0x146   : > { %v480_v30 = vmul.f32 %v1489_v27, %v472_v28 }
 0x147   : > { %v1797_v31 = vpop.eup %1796 }
 0x148   : > { %v473_v32 = vmul.f32 %v1797_v31, %v457_v10  ;;  %v488_v33 = vadd.f32 %v1490_v29, %v480_v30  ;;  %v1696_v10 = vpack.c.bf16 %v583_v5, %v582_v4 }
 0x14a   : > { %v481_v34 = vmul.f32 %v1489_v27, %v473_v32  ;;  %1585 = vmatprep.mubr.msk.f32.mxu0 %vm445_vm0, %v488_v33 }
 0x14c   : > { %v489_v35 = vadd.f32 %v1490_v29, %v481_v34 }
 0x14e   : > { %1586 = vmatmul.mubr.msk.f32.vlgmr.msra.gmra.mrb[0].mxu0 %vm445_vm0, %v489_v35 }
 0x221   : > { %v1587_v37 = vpop.f32.mrb[0].mxu0 }
 0x222   : > { %v579_v38 = vadd.f32 %v1587_v37, %v1491_v36  ;;  %v573_v39 = vpop.f32.mrb[1].mxu0 }
 0x223   : > { %v574_v40 = vadd.f32 %v1491_v36, %v573_v39 }
 0x225   : > { %1592 = vmatprep.mubr.msk.f32.mxu0 %vm599_vm2, %v574_v40  ;;  %v1958_v41 = vpack.i.bf16 %v579_v38, %v574_v40 }
 0x227   : > { %1775 = vrot.lane.b32.xlu0 %v1958_v41, %s1830_s14 }
 0x22b   : > { %1785 = vrot.lane.b32.xlu0 %v1958_v41, %s1831_s15 }
 0x22f   : > { %881 = vrot.lane.b32.xlu0 %v574_v40, %s1832_s16 }
 0x233   : > { %883 = vrot.lane.b32.xlu0 %v579_v38, %s1832_s16 }
 0x299   : > { %v1776_v42 = vpop.permute.xlu0 %1775 }
 0x29a   : > { %v1778_v43 = vunpack.i.h.bf16 %v1776_v42  ;;  %v1777_v44 = vunpack.i.l.bf16 %v1776_v42 }
 0x29c   : > { %v1684_v46 = vpack.c.bf16 %v1778_v43, %v1777_v44 }
 0x29d   : > { %v1786_v11 = vpop.permute.xlu0 %1785 }
 0x29e   : > { %1686 = vmatprep.subr.msk.bf16.mxu0 %vm1964_vm3, %v1684_v46  ;;  %v1788_v14 = vunpack.i.h.bf16 %v1786_v11  ;;  %v1787_v15 = vunpack.i.l.bf16 %v1786_v11 }
 0x29f   : > { %1689 = vmatpush3.bf16.xpose.msk.msra.mxu0 %vm1964_vm3, %v1684_v46  ;;  %v585_v46 = vld [vmem:[%s2129_s5 + $0x18] sm:$0xff] }
 0x2a0   : > { %v1700_v18 = vpack.c.bf16 %v1788_v14, %v1787_v15  ;;  %v1214_v14 = vld [vmem:[%s2133_s9 + $0x8] sm:$0xff] }
 0x2a1   : > { %v882_v21 = vpop.permute.xlu0 %881 }
 0x2a5   : > { %v884_v22 = vpop.permute.xlu0 %883 }
 0x2a6   : > { %1593 = vmatmul.mubr.msk.f32.vlgmr.msra.gmra.mrb[2].mxu0 %vm599_vm2, %v579_v38 }
 0x379   : > { %v1594_v47 = vpop.f32.mrb[2].mxu0 }
 0x37a   : > { %v674_v48 = vpop.f32.mrb[3].mxu0  ;;  %v684_v50 = vmul.f32 0.25, %v1594_v47  ;;  %v1712_v47 = vpack.c.bf16 %v585_v46, %v584_v45  ;;  %v1330_v45 = vld [vmem:[%s2135_s11 + $0x38] sm:$0xff] }
 0x37b   : > { %v683_v49 = vmul.f32 0.25, %v674_v48 }
 0x37c   : > { %v690_v52 = vsel %vm689_vm5, %v684_v50, -inf }
 0x37d   : > { %v686_v51 = vsel %vm685_vm4, %v683_v49, -inf }
 0x37e   : > { %687 = vmax.xlane.f32.xlu1 %v686_v51 }
 0x382   : > { %691 = vmax.xlane.f32.xlu1 %v690_v52 }
 0x40b   : > { %v688_v53 = vpop.xlane.xlu1 %687 }
 0x40c   : > { %v693_v54 = vsub.f32 %v683_v49, %v688_v53 }
 0x40e   : > { %v695_v57 = vmul.f32 1.442695, %v693_v54 }
 0x40f   : > { %v692_v55 = vpop.xlane.xlu1 %691 }
 0x410   : > { %v694_v56 = vsub.f32 %v684_v50, %v692_v55 }
 0x412   : > { %v697_v58 = vmul.f32 1.442695, %v694_v56  ;;  %v1494_v56 = vld [vmem:[%s2130_s6] ss:$0 sm:$0xff] }
 0x414   : > { %1798 = vpow2.f32 %v697_v58 }
 0x415   : > { %1800 = vpow2.f32 %v695_v57 }
 0x41e   : > { %v1799_v59 = vpop.eup %1798 }
 0x41f   : > { %v702_v60 = vsel %vm689_vm5, %v1799_v59, 0.0  ;;  %v1801_v61 = vpop.eup %1800 }
 0x420   : > { %703 = vadd.xlane.f32.xlu1 %v702_v60  ;;  %v699_v62 = vsel %vm685_vm4, %v1801_v61, 0.0 }
 0x424   : > { %700 = vadd.xlane.f32.xlu1 %v699_v62 }
 0x435   : > { %1780 = vrot.lane.b32.xlu1 %v1958_v41, %s1833_s17 }
 0x4ad   : > { %v704_v63 = vpop.xlane.xlu1 %703 }
 0x4ae   : > { %1802 = vrcp.f32 %v704_v63 }
 0x4b1   : > { %v701_v2 = vpop.xlane.xlu1 %700 }
 0x4b2   : > { %1804 = vrcp.f32 %v701_v2 }
 0x4b5   : > { %v1781_v3 = vpop.permute.xlu1 %1780 }
 0x4b6   : > { %v1783_v6 = vunpack.i.h.bf16 %v1781_v3  ;;  %v1782_v7 = vunpack.i.l.bf16 %v1781_v3 }
 0x4b8   : > { %v1690_v9 = vpack.c.bf16 %v1783_v6, %v1782_v7  ;;  %v1803_v12 = vpop.eup %1802 }
 0x4b9   : > { %v708_v17 = vmul.f32 %v1803_v12, %v1799_v59 }
 0x4ba   : > { %1692 = vmatprep.subr.msk.bf16.mxu0 %vm1984_vm8, %v1690_v9 }
 0x4bb   : > { %1695 = vmatpush3.bf16.msk.msra.mxu0 %vm1984_vm8, %v1690_v9 }
 0x4bc   : > { %v1805_v13 = vpop.eup %1804  ;;  %1697 = vmatprep.subr.bf16.mxu0 %v1696_v10 }
 0x4bd   : > { %v707_v16 = vmul.f32 %v1805_v13, %v1801_v61  ;;  %v1213_v13 = vld [vmem:[%s2133_s9] sm:$0xff] }
 0x4be   : > { %v1716_v15 = vpack.c.bf16 %v1214_v14, %v1213_v13 }
 0x4bf   : > { %1599 = vmatprep.mubr.msk.f32.mxu0 %vm685_vm4, %v707_v16  ;;  %v1215_v16 = vld [vmem:[%s2133_s9 + $0x10] sm:$0xff] }
 0x4c0   : > { %1600 = vmatmul.mubr.msk.f32.vlgmr.msra.gmra.mrb[4].mxu0 %vm685_vm4, %v708_v17  ;;  %v1216_v17 = vld [vmem:[%s2133_s9 + $0x18] sm:$0xff] }
 0x4c1   : > { %1699 = vmatpush3.bf16.msra.mxu0 %v1696_v10 }
 0x4c2   : > { %1702 = vmatprep.subr.msk.bf16.mxu0 %vm1964_vm3, %v1700_v18 }
 0x593   : > { %v1601_v19 = vpop.f32.mrb[4].mxu0 }
 0x594   : > { %v789_v20 = vpop.f32.mrb[5].mxu0 }
 0x595   : > { %1606 = vmatprep.mubr.msk.f32.mxu0 %vm599_vm2, %v789_v20 }
 0x596   : > { %1607 = vmatmul.mubr.msk.f32.vlgmr.msra.gmra.mrb[6].mxu0 %vm599_vm2, %v1601_v19 }
 0x597   : > { %1705 = vmatpush3.bf16.xpose.msk.msra.mxu0 %vm1964_vm3, %v1700_v18  ;;  %1613 = vmatprep.mubr.msk.f32.mxu0 %vm599_vm2, %v882_v21  ;;  %v1720_v18 = vpack.c.bf16 %v1216_v17, %v1215_v16 }
 0x598   : > { %1717 = vmatprep.subr.bf16.mxu0 %v1716_v15 }
 0x59e   : > { %1614 = vmatmul.mubr.msk.f32.vlgmr.msra.gmra.mrb[8].mxu0 %vm599_vm2, %v884_v22 }
 0x59f   : > { %1719 = vmatpush3.bf16.msra.mxu0 %v1716_v15 }
 0x5a0   : > { %1721 = vmatprep.subr.bf16.mxu0 %v1720_v18 }
 0x5a3   : > { %1723 = vmatpush3.bf16.msra.mxu0 %v1720_v18 }
 0x669   : > { %v1608_v23 = vpop.f32.mrb[6].mxu0 }
 0x66a   : > { %v870_v24 = vpop.f32.mrb[7].mxu0  ;;  %v880_v57 = vadd.f32 %v1608_v23, %v1494_v56 }
 0x66b   : > { %v879_v58 = vadd.f32 %v1494_v56, %v870_v24  ;;  %v1337_v56 = vld [vmem:[%s2135_s11 + $0x70] sm:$0xff] }
 0x671   : > { %v1615_v25 = vpop.f32.mrb[8].mxu0 }
 0x672   : > { %v973_v26 = vmul.f32 0.25, %v1615_v25  ;;  %v963_v27 = vpop.f32.mrb[9].mxu0 }
 0x673   : > { %v972_v28 = vmul.f32 0.25, %v963_v27 }
 0x674   : > { %v977_v29 = vsel %vm689_vm5, %v973_v26, -inf }
 0x675   : > { %978 = vmax.xlane.f32.xlu0 %v977_v29  ;;  %v974_v30 = vsel %vm685_vm4, %v972_v28, -inf }
 0x676   : > { %975 = vmax.xlane.f32.xlu1 %v974_v30 }
 0x687   : > { %1790 = vrot.lane.b32.xlu1 %v1958_v41, %s1835_s22 }
 0x702   : > { %v979_v31 = vpop.xlane.xlu0 %978 }
 0x703   : > { %v981_v32 = vsub.f32 %v973_v26, %v979_v31  ;;  %v976_v33 = vpop.xlane.xlu1 %975  ;;  %v1513_v26 = vld [vmem:[%s2131_s7] ss:$0 sm:$0xff] }
 0x704   : > { %v980_v34 = vsub.f32 %v972_v28, %v976_v33  ;;  %v1514_v28 = vld [vmem:[%s2132_s8] ss:$0 sm:$0xff] }
 0x705   : > { %v984_v35 = vmul.f32 1.442695, %v981_v32 }
 0x706   : > { %v982_v36 = vmul.f32 1.442695, %v980_v34 }
 0x707   : > { %v1791_v37 = vpop.permute.xlu1 %1790 }
 0x708   : > { %1806 = vpow2.f32 %v982_v36  ;;  %v1793_v38 = vunpack.i.h.bf16 %v1791_v37  ;;  %v1792_v39 = vunpack.i.l.bf16 %v1791_v37  ;;  %v1324_v36 = vld [vmem:[%s2135_s11 + $0x8] sm:$0xff] }
 0x709   : > { %1808 = vpow2.f32 %v984_v35  ;;  %v1323_v35 = vld [vmem:[%s2135_s11] sm:$0xff] }
 0x70a   : > { %v1706_v40 = vpack.c.bf16 %v1793_v38, %v1792_v39  ;;  %v1724_v37 = vpack.c.bf16 %v1324_v36, %v1323_v35  ;;  %v1325_v38 = vld [vmem:[%s2135_s11 + $0x10] sm:$0xff]  ;;  %v1326_v39 = vld [vmem:[%s2135_s11 + $0x18] sm:$0xff] }
 0x70c   : > { %1708 = vmatprep.subr.msk.bf16.mxu1 %vm1984_vm8, %v1706_v40 }
 0x70d   : > { %1711 = vmatpush3.bf16.msk.msra.mxu1 %vm1984_vm8, %v1706_v40  ;;  %v1728_v40 = vpack.c.bf16 %v1326_v39, %v1325_v38 }
 0x70e   : > { %1713 = vmatprep.subr.bf16.mxu1 %v1712_v47 }
 0x712   : > { %v1807_v42 = vpop.eup %1806 }
 0x713   : > { %v986_v41 = vsel %vm685_vm4, %v1807_v42, 0.0  ;;  %v1809_v43 = vpop.eup %1808 }
 0x714   : > { %987 = vadd.xlane.f32.xlu0 %v986_v41  ;;  %v989_v44 = vsel %vm689_vm5, %v1809_v43, 0.0  ;;  %v1328_v41 = vld [vmem:[%s2135_s11 + $0x28] sm:$0xff] }
 0x718   : > { %990 = vadd.xlane.f32.xlu0 %v989_v44  ;;  %v1329_v44 = vld [vmem:[%s2135_s11 + $0x30] sm:$0xff] }
 0x719   : > { %v1736_v46 = vpack.c.bf16 %v1330_v45, %v1329_v44 }
 0x7a1   : > { %v988_v48 = vpop.xlane.xlu0 %987 }
 0x7a2   : > { %1810 = vrcp.f32 %v988_v48  ;;  %v1332_v48 = vld [vmem:[%s2135_s11 + $0x48] sm:$0xff] }
 0x7a5   : > { %v991_v49 = vpop.xlane.xlu0 %990 }
 0x7a6   : > { %1812 = vrcp.f32 %v991_v49  ;;  %v1333_v49 = vld [vmem:[%s2135_s11 + $0x50] sm:$0xff] }
 0x7ac   : > { %v1811_v50 = vpop.eup %1810 }
 0x7ad   : > { %v994_v51 = vmul.f32 %v1811_v50, %v1807_v42  ;;  %v1327_v42 = vld [vmem:[%s2135_s11 + $0x20] sm:$0xff] }
 0x7af   : > { %1620 = vmatprep.mubr.msk.f32.mxu1 %vm685_vm4, %v994_v51  ;;  %v1334_v51 = vld [vmem:[%s2135_s11 + $0x58] sm:$0xff] }
 0x7b0   : > { %v1813_v52 = vpop.eup %1812 }
 0x7b1   : > { %v995_v53 = vmul.f32 %v1813_v52, %v1809_v43  ;;  %v1732_v43 = vpack.c.bf16 %v1328_v41, %v1327_v42  ;;  %v1744_v52 = vpack.c.bf16 %v1334_v51, %v1333_v49 }
 0x7b3   : > { %1621 = vmatmul.mubr.msk.f32.vlgmr.msra.gmra.mrb[0].mxu1 %vm685_vm4, %v995_v53  ;;  %v1335_v53 = vld [vmem:[%s2135_s11 + $0x60] sm:$0xff] }
 0x7b4   : > { %1715 = vmatpush3.bf16.msra.mxu1 %v1712_v47  ;;  %v1331_v47 = vld [vmem:[%s2135_s11 + $0x40] sm:$0xff] }
 0x7b5   : > { %1725 = vmatprep.subr.bf16.mxu1 %v1724_v37  ;;  %v1740_v50 = vpack.c.bf16 %v1332_v48, %v1331_v47 }
 0x886   : > { %v1622_v54 = vpop.f32.mrb[0].mxu1 }
 0x887   : > { %v1075_v55 = vpop.f32.mrb[1].mxu1 }
 0x888   : > { %1627 = vmatprep.mubr.msk.f32.mxu1 %vm599_vm2, %v1075_v55 }
 0x889   : > { %1628 = vmatmul.mubr.msk.f32.vlgmr.msra.gmra.mrb[2].mxu1 %vm599_vm2, %v1622_v54  ;;  %v1336_v54 = vld [vmem:[%s2135_s11 + $0x68] sm:$0xff] }
 0x88a   : > { %1727 = vmatpush3.bf16.msra.mxu1 %v1724_v37  ;;  %v1748_v55 = vpack.c.bf16 %v1336_v54, %v1335_v53 }
 0x88b   : > { %1729 = vmatprep.subr.bf16.mxu1 %v1728_v40 }
 0x88e   : > { %1731 = vmatpush3.bf16.msra.mxu1 %v1728_v40 }
 0x88f   : > { %1733 = vmatprep.subr.bf16.mxu1 %v1732_v43 }
 0x892   : > { %1735 = vmatpush3.bf16.msra.mxu1 %v1732_v43 }
 0x893   : > { %1737 = vmatprep.subr.bf16.mxu1 %v1736_v46 }
 0x896   : > { %1739 = vmatpush3.bf16.msra.mxu1 %v1736_v46 }
 0x897   : > { %1741 = vmatprep.subr.bf16.mxu1 %v1740_v50 }
 0x89a   : > { %1743 = vmatpush3.bf16.msra.mxu1 %v1740_v50 }
 0x89b   : > { %1745 = vmatprep.subr.bf16.mxu1 %v1744_v52 }
 0x89e   : > { %1747 = vmatpush3.bf16.msra.mxu1 %v1744_v52 }
 0x89f   : > { %1749 = vmatprep.subr.bf16.mxu1 %v1748_v55 }
 0x8a2   : > { %1751 = vmatpush3.bf16.msra.mxu1 %v1748_v55 }
 0x95c   : > { %v1629_v59 = vpop.f32.mrb[2].mxu1 }
 0x95d   : > { %v1166_v60 = vadd.f32 %v1629_v59, %v880_v57  ;;  %v1156_v61 = vpop.f32.mrb[3].mxu1  ;;  %v1338_v57 = vld [vmem:[%s2135_s11 + $0x78] sm:$0xff]  ;;  %v1515_v59 = vld [vmem:[%s2134_s10] ss:$0 sm:$0xff] }
 0x95e   : > { %v1165_v62 = vadd.f32 %v1156_v61, %v879_v58  ;;  %v1752_v58 = vpack.c.bf16 %v1338_v57, %v1337_v56 }
 0x95f   : > { %v2028_v2 = vadd.f32 %v1166_v60, %v1924_v1 }
 0x960   : > { %v2025_v63 = vadd.f32 %v1165_v62, %v1922_v0  ;;  %1753 = vmatprep.subr.bf16.mxu1 %v1752_v58 }
 0x961   : > { %v1174_v4 = vsel %vm449_vm1, %v2028_v2, 0.0  ;;  %1755 = vmatpush3.bf16.msra.mxu1 %v1752_v58 }
 0x962   : > { %v1171_v3 = vsel %vm445_vm0, %v2025_v63, 0.0 }
 0x963   : > { %1172 = vadd.xlane.f32.xlu0 %v1171_v3 }
 0x967   : > { %1175 = vadd.xlane.f32.xlu0 %v1174_v4 }
 0x9f0   : > { %v1173_v5 = vpop.xlane.xlu0 %1172 }
 0x9f1   : > { %v1177_v6 = vmul.f32 0.03125, %v1173_v5 }
 0x9f3   : > { %v1179_v7 = vsub.f32 %v2025_v63, %v1177_v6 }
 0x9f4   : > { %v1176_v8 = vpop.xlane.xlu0 %1175 }
 0x9f5   : > { %v1178_v9 = vmul.f32 0.03125, %v1176_v8  ;;  %v1181_v10 = vmul.f32 %v1179_v7, %v1179_v7 }
 0x9f7   : > { %v1180_v0 = vsub.f32 %v2028_v2, %v1178_v9  ;;  %v1183_v1 = vsel %vm445_vm0, %v1181_v10, 0.0 }
 0x9f8   : > { %1184 = vadd.xlane.f32.xlu0 %v1183_v1 }
 0x9f9   : > { %v1182_v11 = vmul.f32 %v1180_v0, %v1180_v0 }
 0x9fb   : > { %v1186_v12 = vsel %vm449_vm1, %v1182_v11, 0.0 }
 0x9fc   : > { %1187 = vadd.xlane.f32.xlu0 %v1186_v12 }
 0xa85   : > { %v1185_v19 = vpop.xlane.xlu0 %1184 }
 0xa86   : > { %v1189_v20 = vmul.f32 0.03125, %v1185_v19 }
 0xa88   : > { %v1191_v21 = vadd.f32 1e-05, %v1189_v20  ;;  %v1518_v20 = vld [vmem:[%s2136_s12] ss:$0 sm:$0xff] }
 0xa89   : > { %v1188_v22 = vpop.xlane.xlu0 %1187 }
 0xa8a   : > { %1814 = vrsqrt.f32 %v1191_v21  ;;  %v1190_v23 = vmul.f32 0.03125, %v1188_v22 }
 0xa8c   : > { %v1192_v24 = vadd.f32 1e-05, %v1190_v23 }
 0xa8e   : > { %1816 = vrsqrt.f32 %v1192_v24 }
 0xa94   : > { %v1815_v25 = vpop.eup %1814 }
 0xa95   : > { %v1195_v27 = vmul.f32 %v1815_v25, %v1179_v7 }
 0xa97   : > { %v1203_v29 = vmul.f32 %v1513_v26, %v1195_v27 }
 0xa98   : > { %v1817_v30 = vpop.eup %1816 }
 0xa99   : > { %v1196_v31 = vmul.f32 %v1817_v30, %v1180_v0  ;;  %v1211_v32 = vadd.f32 %v1514_v28, %v1203_v29 }
 0xa9b   : > { %v1204_v33 = vmul.f32 %v1513_v26, %v1196_v31  ;;  %1638 = vmatprep.mubr.msk.f32.mxu0 %vm445_vm0, %v1211_v32 }
 0xa9d   : > { %v1212_v34 = vadd.f32 %v1514_v28, %v1204_v33 }
 0xa9f   : > { %1639 = vmatmul.mubr.msk.f32.vlgmr.msra.gmra.mrb[10].mxu0 %vm445_vm0, %v1212_v34 }
 0xb72   : > { %v1640_v60 = vpop.f32.mrb[10].mxu0 }
 0xb73   : > { %v1302_v61 = vadd.f32 %v1640_v60, %v1515_v59  ;;  %v1296_v62 = vpop.f32.mrb[11].mxu0 }
 0xb74   : > { %v1297_v3 = vadd.f32 %v1515_v59, %v1296_v62 }
 0xb75   : > { %v1306_v4 = vmul.f32 %v1302_v61, %v1302_v61 }
 0xb76   : > { %v1305_v5 = vmul.f32 %v1297_v3, %v1297_v3 }
 0xb77   : > { %v1308_v6 = vmul.f32 %v1306_v4, %v1302_v61 }
 0xb78   : > { %v1307_v7 = vmul.f32 %v1305_v5, %v1297_v3 }
 0xb79   : > { %v1310_v8 = vmul.f32 0.044715, %v1308_v6 }
 0xb7a   : > { %v1309_v9 = vmul.f32 0.044715, %v1307_v7 }
 0xb7b   : > { %v1312_v10 = vadd.f32 %v1310_v8, %v1302_v61 }
 0xb7c   : > { %v1311_v0 = vadd.f32 %v1309_v9, %v1297_v3 }
 0xb7d   : > { %v1314_v1 = vmul.f32 0.7978846, %v1312_v10 }
 0xb7e   : > { %v1313_v11 = vmul.f32 0.7978846, %v1311_v0 }
 0xb7f   : > { %1818 = vtanh.f32 %v1314_v1 }
 0xb80   : > { %1820 = vtanh.f32 %v1313_v11 }
 0xb89   : > { %v1819_v12 = vpop.eup %1818 }
 0xb8a   : > { %v1821_v13 = vpop.eup %1820  ;;  %v1318_v14 = vadd.f32 1.0, %v1819_v12 }
 0xb8b   : > { %v1317_v15 = vadd.f32 1.0, %v1821_v13 }
 0xb8c   : > { %v1320_v16 = vmul.f32 0.5, %v1318_v14 }
 0xb8d   : > { %v1319_v17 = vmul.f32 0.5, %v1317_v15 }
 0xb8e   : > { %v1322_v19 = vmul.f32 %v1320_v16, %v1302_v61 }
 0xb8f   : > { %v1321_v18 = vmul.f32 %v1319_v17, %v1297_v3 }
 0xb91   : > { %1673 = vmatprep.mubr.f32.mxu1 %v1321_v18 }
 0xb92   : > { %1674 = vmatmul.mubr.f32.vlgmr.msra.gmra.mrb[4].mxu1 %v1322_v19 }
 0xc65   : > { %v1675_v21 = vpop.f32.mrb[4].mxu1 }
 0xc66   : > { %v1418_v22 = vadd.f32 %v1675_v21, %v1518_v20  ;;  %v1412_v23 = vpop.f32.mrb[5].mxu1 }
 0xc67   : > { %v1413_v24 = vadd.f32 %v1518_v20, %v1412_v23 }
 0xc68   : > { %v1422_v25 = vadd.f32 %v1418_v22, %v2028_v2 }
 0xc69   : > { %v1421_v26 = vadd.f32 %v1413_v24, %v2025_v63 }
 0xc6a   : > { %1424 = vst.msk [vmem:[%s440_s23 + $0x8] sm:$0x1f] %vm449_vm1, %v1422_v25 }
 0xc6b   : > { %1423 = vst.msk [vmem:[%s440_s23] sm:$0xff] %vm445_vm0, %v1421_v26 }
 0xc6c PF: > { %s23_s25 = sadd.s32 1, %s1828_s25  }
 0xc6d   : > { %p20_p4 = scmp.ge.s32.totalorder %s23_s25, 4  }
 0xc6f   :  { %22 = sbr.rel (!%p20_p4) target bundleno = 1 (0x1), region = 102 }

// kernel: segmenter_forward.12
= control target key start
LH: loop header
LB: loop body
LE: loop exit
PB: predicated region body
PF: predicated region fallthrough
CT: control target
= control target key end

     0   :  { %s831_s24 = smov 0   ;;  %s902_s0 = inlined_call_operand.vmem [shape: f32[2,13,32], index: 0, kind: input, shape index: {}]   ;;  %s903_s1 = inlined_call_operand.vmem [shape: f32[1,32], index: 1, kind: input, shape index: {}]   ;;  %s904_s2 = inlined_call_operand.vmem [shape: f32[1,32], index: 2, kind: input, shape index: {}]   ;;  %s905_s3 = inlined_call_operand.vmem [shape: f32[32,32], index: 3, kind: input, shape index: {}]   ;;  %s906_s4 = inlined_call_operand.vmem [shape: f32[32,32], index: 4, kind: input, shape index: {}]   ;;  %s907_s5 = inlined_call_operand.vmem [shape: f32[1,9], index: 5, kind: input, shape index: {}]   ;;  %s908_s6 = inlined_call_operand.vmem [shape: f32[1,9], index: 6, kind: input, shape index: {}]   ;;  %s909_s7 = inlined_call_operand.vmem [shape: f32[2,4,9], index: 7, kind: output, shape index: {}]  }
   0x1 LB: > { %s675_s25 = sadd.s32 4294967295, %s786_s24   ;;  %p679_p0 = scmp.ge.s32.totalorder %s786_s24, 1  ;;  %s786_s24 = sphi %s831_s24, %s17_s24  }
   0x2   : > { %p237_p1 = scmp.lt.s32.totalorder %s786_s24, 3 }
   0x4   : > { %p238_p2 = pnand %p679_p0, %p237_p1 }
   0x5   : > { %p268_p3 = scmp.lt.s32.totalorder (!%p238_p2), %s675_s25, 1  ;;  %vm281_vm0 = vcmask (!%p238_p2), 261120   ;;  %vm285_vm1 = vcmask (!%p238_p2), 258048   ;;  %v326_v14 = vld [vmem:[%s905_s3] sm:$0xff] (!%p238_p2)  ;;  %v327_v15 = vld [vmem:[%s905_s3 + $0x8] sm:$0xff] (!%p238_p2)  ;;  %v328_v16 = vld [vmem:[%s905_s3 + $0x10] sm:$0xff] (!%p238_p2) }
   0x6   : > { %241 = sbr.rel (%p238_p2) target bundleno = 1244 (0x4dc), region = 48  ;;  %v788_v17 = vmov (!%p238_p2), 0.0|0.0   ;;  %v740_v18 = vpack.c.bf16 (!%p238_p2), %v327_v15, %v326_v14  ;;  %v329_v19 = vld [vmem:[%s905_s3 + $0x18] sm:$0xff] (!%p238_p2)  ;;  %vm789_vm2 = vmmov (!%p238_p2), 0   ;;  %v790_v20 = vmov (!%p238_p2), 0.0   ;;  %v403_v22 = vld [vmem:[%s906_s4] sm:$0xff] (!%p238_p2)  ;;  %vm755_vm6 = vmpackc.low (!%p238_p2), %vm281_vm0, %vm281_vm0 }
   0x7   : > { %739 = vmatprep.subr.bf16.mxu0 (!%p238_p2), %v788_v17  ;;  %718 = vmatprep.mubr.msk.f32.mxu0 (!%p238_p2), %vm789_vm2, %v790_v20  ;;  %v743_v21 = vpack.c.bf16 (!%p238_p2), %v329_v19, %v328_v16  ;;  %v404_v23 = vld [vmem:[%s906_s4 + $0x8] sm:$0xff] (!%p238_p2)  ;;  %v405_v25 = vld [vmem:[%s906_s4 + $0x10] sm:$0xff] (!%p238_p2)  ;;  %v406_v26 = vld [vmem:[%s906_s4 + $0x18] sm:$0xff] (!%p238_p2)  ;;  %vm408_vm3 = vcmask (!%p238_p2), 1043456   ;;  %vm503_vm4 = vcmask (!%p238_p2), 253952   ;;  %vm492_vm5 = vcmask (!%p238_p2), 257024  }
   0x8   : > { %741 = vmatpush3.bf16.msra.mxu0 (!%p238_p2), %v740_v18  ;;  %v745_v24 = vpack.c.bf16 (!%p238_p2), %v404_v23, %v403_v22  ;;  %v749_v27 = vpack.c.bf16 (!%p238_p2), %v406_v26, %v405_v25  ;;  %v683_v35 = vld [vmem:[%s903_s1] ss:$0 sm:$0xff] (!%p238_p2)  ;;  %vm592_vm7 = vcmask (!%p238_p2), 68608  }
   0x9   : > { %742 = vmatprep.subr.bf16.mxu0 (!%p238_p2), %v788_v17  ;;  %v684_v37 = vld [vmem:[%s904_s2] ss:$0 sm:$0xff] (!%p238_p2) }
   0xa   : > { %746 = vmatprep.subr.bf16.mxu1 (!%p238_p2), %v745_v24  ;;  %v691_v15 = vld [vmem:[%s907_s5] ss:$0 sm:$0xff] (!%p238_p2) }
   0xb   : > { %748 = vmatpush3.bf16.msra.mxu1 (!%p238_p2), %v745_v24 }
   0xc   : > { %744 = vmatpush3.bf16.msra.mxu0 (!%p238_p2), %v743_v21  ;;  %750 = vmatprep.subr.bf16.mxu1 (!%p238_p2), %v749_v27 }
   0xd   : > { %s911_s25 = smov (!%p268_p3, %s675_s25), 1  ;;  %753 = vmatprep.subr.bf16.mxu0 %v788_v17  ;;  %v692_v17 = vld [vmem:[%s908_s6] ss:$0 sm:$0xff] }
   0xe   : > { %s695_s26 = sshll.u32 %s911_s25, 4  ;;  %s682_s8 = sshll.u32 %s911_s25, 2 }
   0xf   : > { %s272_s29 = scalar_lea.vmem %s902_s0, %s695_s26  ;;  %752 = vmatpush3.bf16.msra.mxu1 %v749_v27  ;;  %s276_s13 = scalar_lea.vmem %s909_s7, %s682_s8 }
  0x10   : > { %v277_v0 = vld [vmem:[%s272_s29] sm:$0xff]  ;;  %v278_v1 = vld [vmem:[%s272_s29 + $0x8] sm:$0x1f] }
  0x11   : > { %v282_v2 = vsel %vm281_vm0, %v277_v0, 0.0  ;;  %v286_v3 = vsel %vm285_vm1, %v278_v1, 0.0 }
  0x12   : > { %283 = vadd.xlane.f32.xlu0 %v282_v2 }
  0x16   : > { %287 = vadd.xlane.f32.xlu0 %v286_v3 }
  0x9f   : > { %v284_v4 = vpop.xlane.xlu0 %283 }
  0xa0   : > { %v290_v5 = vmul.f32 0.03125, %v284_v4 }
  0xa2   : > { %v292_v6 = vsub.f32 %v277_v0, %v290_v5 }
  0xa3   : > { %v288_v7 = vpop.xlane.xlu0 %287 }
  0xa4   : > { %v291_v8 = vmul.f32 0.03125, %v288_v7  ;;  %v294_v9 = vmul.f32 %v292_v6, %v292_v6 }
  0xa6   : > { %v293_v10 = vsub.f32 %v278_v1, %v291_v8  ;;  %v296_v11 = vsel %vm281_vm0, %v294_v9, 0.0 }
  0xa7   : > { %297 = vadd.xlane.f32.xlu1 %v296_v11 }
  0xa8   : > { %v295_v12 = vmul.f32 %v293_v10, %v293_v10 }
  0xaa   : > { %v299_v13 = vsel %vm285_vm1, %v295_v12, 0.0 }
  0xab   : > { %300 = vadd.xlane.f32.xlu1 %v299_v13 }
 0x134   : > { %v298_v28 = vpop.xlane.xlu1 %297 }
 0x135   : > { %v302_v29 = vmul.f32 0.03125, %v298_v28 }
 0x137   : > { %v304_v30 = vadd.f32 1e-05, %v302_v29 }
 0x138   : > { %v301_v31 = vpop.xlane.xlu1 %300 }
 0x139   : > { %768 = vrsqrt.f32 %v304_v30  ;;  %v303_v32 = vmul.f32 0.03125, %v301_v31 }
 0x13b   : > { %v305_v33 = vadd.f32 1e-05, %v303_v32 }
 0x13d   : > { %770 = vrsqrt.f32 %v305_v33 }
 0x143   : > { %v769_v34 = vpop.eup %768 }
 0x144   : > { %v308_v36 = vmul.f32 %v769_v34, %v292_v6 }
 0x146   : > { %v316_v38 = vmul.f32 %v683_v35, %v308_v36 }
 0x147   : > { %v771_v39 = vpop.eup %770 }
 0x148   : > { %v324_v40 = vadd.f32 %v684_v37, %v316_v38  ;;  %v309_v41 = vmul.f32 %v771_v39, %v293_v10 }
 0x14a   : > { %719 = vmatmul.mubr.msk.f32.vlgmr.msra.gmra.mrb[0].mxu0 %vm281_vm0, %v324_v40  ;;  %v317_v42 = vmul.f32 %v683_v35, %v309_v41  ;;  %v409_v44 = vrot.slane %v324_v40, 4 }
 0x14b   : > { %736 = vmatprep.mubr.msk.f32.mxu0 %vm789_vm2, %v790_v20 }
 0x14c   : > { %v325_v43 = vadd.f32 %v684_v37, %v317_v42 }
 0x14e   : > { %v410_v45 = vrot.slane %v325_v43, 4 }
 0x150   : > { %v411_v46 = vsel %vm408_vm3, %v409_v44, %v410_v45 }
 0x151   : > { %729 = vmatprep.mubr.msk.f32.mxu1 %vm281_vm0, %v411_v46 }
 0x152   : > { %730 = vmatmul.mubr.msk.f32.vlgmr.msra.gmra.mrb[0].mxu1 %vm281_vm0, %v410_v45 }
 0x21d   : > { %v399_v47 = vpop.f32.mrb[0].mxu0 }
 0x21e   : > { %v720_v48 = vpop.f32.mrb[1].mxu0  ;;  %v491_v54 = vmul.f32 %v399_v47, %v399_v47 }
 0x220   : > { %v493_v56 = vsel %vm492_vm5, %v491_v54, 0.0 }
 0x225   : > { %v731_v49 = vpop.f32.mrb[0].mxu1 }
 0x226   : > { %v499_v50 = vmul.f32 %v731_v49, %v731_v49  ;;  %v482_v51 = vpop.f32.mrb[1].mxu1 }
 0x227   : > { %v498_v52 = vmul.f32 %v482_v51, %v482_v51 }
 0x228   : > { %v504_v53 = vsel %vm503_vm4, %v499_v50, 0.0 }
 0x229   : > { %505 = vadd.xlane.f32.xlu1 %v504_v53  ;;  %v500_v55 = vsel %vm281_vm0, %v498_v52, 0.0 }
 0x22a   : > { %501 = vadd.xlane.f32.xlu0 %v500_v55 }
 0x22e   : > { %494 = vadd.xlane.f32.xlu0 %v493_v56 }
 0x2b6   : > { %v506_v57 = vpop.xlane.xlu1 %505 }
 0x2b7   : > { %772 = vrsqrt.f32 %v506_v57  ;;  %v502_v58 = vpop.xlane.xlu0 %501 }
 0x2b8   : > { %774 = vrsqrt.f32 %v502_v58 }
 0x2bb   : > { %v495_v59 = vpop.xlane.xlu0 %494 }
 0x2bc   : > { %776 = vrsqrt.f32 %v495_v59 }
 0x2c1   : > { %v773_v60 = vpop.eup %772 }
 0x2c2   : > { %v775_v61 = vpop.eup %774  ;;  %v510_v62 = vmul.f32 %v773_v60, %v731_v49 }
 0x2c3   : > { %v509_v63 = vmul.f32 %v775_v61, %v482_v51 }
 0x2c5   : > { %v754_v0 = vpack.c.bf16 %v510_v62, %v509_v63 }
 0x2c6   : > { %v777_v1 = vpop.eup %776 }
 0x2c7   : > { %756 = vmatpush3.bf16.xpose.msk.msra.mxu0 %vm755_vm6, %v754_v0  ;;  %v497_v2 = vmul.f32 %v777_v1, %v399_v47 }
 0x2ce   : > { %737 = vmatmul.mubr.msk.f32.vlgmr.msra.gmra.mrb[2].mxu0 %vm281_vm0, %v497_v2 }
 0x3a1   : > { %v586_v3 = vpop.f32.mrb[2].mxu0 }
 0x3a2   : > { %v738_v4 = vpop.f32.mrb[3].mxu0  ;;  %v593_v5 = vsel %vm592_vm7, %v586_v3, 0.0 }
 0x3a3   : > { %594 = vadd.xlane.f32.xlu1 %v593_v5 }
 0x430   : > { %v595_v6 = vpop.xlane.xlu1 %594 }
 0x431   : > { %v597_v7 = vmul.f32 0.11111111, %v595_v6 }
 0x433   : > { %v598_v8 = vsub.f32 %v586_v3, %v597_v7 }
 0x435   : > { %v599_v9 = vmul.f32 %v598_v8, %v598_v8 }
 0x437   : > { %v600_v10 = vsel %vm592_vm7, %v599_v9, 0.0 }
 0x438   : > { %601 = vadd.xlane.f32.xlu0 %v600_v10 }
 0x4c5   : > { %v602_v11 = vpop.xlane.xlu0 %601 }
 0x4c6   : > { %v603_v12 = vmul.f32 0.11111111, %v602_v11 }
 0x4c8   : > { %v604_v13 = vadd.f32 1e-05, %v603_v12 }
 0x4ca   : > { %778 = vrsqrt.f32 %v604_v13 }
 0x4d4   : > { %v779_v14 = vpop.eup %778 }
 0x4d5   : > { %v606_v16 = vmul.f32 %v779_v14, %v598_v8 }
 0x4d7   : > { %v613_v18 = vmul.f32 %v691_v15, %v606_v16 }
 0x4d9   : > { %v620_v19 = vadd.f32 %v692_v17, %v613_v18 }
 0x4db   : > { %621 = vst.msk [vmem:[%s276_s13] sm:$0xf] %vm592_vm7, %v620_v19 }
 0x4dc PF: > { %s17_s24 = sadd.s32 1, %s786_s24  }
 0x4dd   : > { %p14_p4 = scmp.ge.s32.totalorder %s17_s24, 4  }
 0x4df   :  { %16 = sbr.rel (!%p14_p4) target bundleno = 1 (0x1), region = 78 }

// kernel: segmenter_forward.13
= control target key start
LH: loop header
LB: loop body
LE: loop exit
PB: predicated region body
PF: predicated region fallthrough
CT: control target
= control target key end

     0   :  { %s2209_s12 = smov 0   ;;  %s2484_s0 = inlined_call_operand.vmem [shape: f32[2,9,2,2], index: 0, kind: input, shape index: {}]   ;;  %s2485_s1 = inlined_call_operand.vmem [shape: f32[32,2], index: 1, kind: input, shape index: {}]   ;;  %s2486_s2 = inlined_call_operand.vmem [shape: f32[2,32], index: 2, kind: input, shape index: {}]   ;;  %s2487_s3 = inlined_call_operand.vmem [shape: f32[2,9,32,32], index: 3, kind: output, shape index: {}]  }
   0x1 LB: > { %s1823_s13 = sadd.s32 4294967295, %s2185_s12   ;;  %p1827_p0 = scmp.ge.s32.totalorder %s2185_s12, 1  ;;  %s2185_s12 = sphi %s2209_s12, %s13_s12  }
   0x2   : > { %p137_p1 = scmp.lt.s32.totalorder %s2185_s12, 3 }
   0x4   : > { %p138_p2 = pnand %p1827_p0, %p137_p1 }
   0x5   : > { %v2220_v0 = vld [vmem:[%s2486_s2] sm:$0x3] (!%p138_p2)  ;;  %vm189_vm0 = vcmask (!%p138_p2), 1041408   ;;  %p161_p3 = scmp.lt.s32.totalorder (!%p138_p2), %s1823_s13, 1  ;;  %v2187_v1 = vmov (!%p138_p2), 0.0   ;;  %vm2188_vm1 = vmmov (!%p138_p2), 0  }
   0x6   : > { %141 = sbr.rel (%p138_p2) target bundleno = 1338 (0x53a), region = 32  ;;  %2002 = vmatprep.subr.mxu0 (!%p138_p2), %v2187_v1  ;;  %2004 = vmatprep.mubr.msk.f32.mxu0 (!%p138_p2), %vm2188_vm1, %v2187_v1  ;;  %vm185_vm2 = vcmask (!%p138_p2), 15360   ;;  %v2245_v3 = vld [vmem:[%s2485_s1] sm:$0xff] (!%p138_p2)  ;;  %v2256_v6 = vld [vmem:[%s2485_s1 + $0x8] sm:$0xff] (!%p138_p2)  ;;  %v2262_v8 = vld [vmem:[%s2485_s1 + $0x10] sm:$0xff] (!%p138_p2)  ;;  %vm387_vm3 = vcmask (!%p138_p2), 261120  }
   0x7   : > { %2003 = vmatpush3.msk.msra.mxu0 (!%p138_p2), %vm189_vm0, %v2220_v0  ;;  %2009 = vmatprep.mubr.msk.f32.mxu1 (!%p138_p2), %vm185_vm2, %v2245_v3  ;;  %v2275_v9 = vld [vmem:[%s2485_s1 + $0x18] sm:$0xff] (!%p138_p2) }
   0x8   : > { %2015 = vmatprep.subr.mxu0 (!%p138_p2), %v2187_v1 }
   0xd   : > { %s2489_s13 = smov (!%p161_p3, %s1823_s13), 1 }
   0xe   : > { %s2119_s16 = smul.u32 18, %s2489_s13 }
   0xf   : > { %s2120_s28 = smul.u32 288, %s2489_s13 }
  0x10   : > { %s2234_s19 = scalar_lea.vmem %s2484_s0, %s2119_s16 }
  0x11   : > { %v171_v2 = vld [vmem:[%s2234_s19] sm:$0x3]  ;;  %v172_v4 = vld [vmem:[%s2234_s19 + $0x2] sm:$0x3]  ;;  %v173_v10 = vld [vmem:[%s2234_s19 + $0x4] sm:$0x3]  ;;  %s2323_s4 = scalar_lea.vmem %s2487_s3, %s2120_s28 }
  0x12   : > { %2005 = vmatmul.mubr.msk.f32.vlgmr.msra.gmra.mrb[0].mxu0 %vm185_vm2, %v171_v2  ;;  %v174_v13 = vld [vmem:[%s2234_s19 + $0x6] sm:$0x3]  ;;  %v175_v28 = vld [vmem:[%s2234_s19 + $0x8] sm:$0x3]  ;;  %v176_v52 = vld [vmem:[%s2234_s19 + $0xa] sm:$0x3] }
  0x13   : > { %2016 = vmatpush3.msk.msra.mxu0 %vm189_vm0, %v2220_v0  ;;  %2017 = vmatprep.mubr.msk.f32.mxu0 %vm2188_vm1, %v2187_v1 }
  0x16   : > { %2018 = vmatmul.mubr.msk.f32.vlgmr.msra.gmra.mrb[2].mxu0 %vm185_vm2, %v172_v4 }
  0x17   : > { %2022 = vmatprep.mubr.msk.f32.mxu0 %vm185_vm2, %v2245_v3 }
  0xe5   : > { %v259_v5 = vpop.f32.mrb[0].mxu0 }
  0xe6   : > { %v2006_v7 = vpop.f32.mrb[1].mxu0  ;;  %2007 = vmatprep.subr.msk.mxu1 %vm189_vm0, %v259_v5 }
  0xe7   : > { %2008 = vmatpush3.msk.msra.mxu1 %vm189_vm0, %v259_v5 }
  0xe8   : > { %2010 = vmatmul.mubr.msk.f32.vlgmr.msra.gmra.mrb[0].mxu1 %vm185_vm2, %v2256_v6  ;;  %2028 = vmatprep.subr.mxu1 %v2187_v1 }
  0xe9   : > { %2012 = vmatprep.mubr.msk.f32.mxu1 %vm185_vm2, %v2262_v8  ;;  %2029 = vmatpush3.msk.msra.mxu1 %vm189_vm0, %v2220_v0  ;;  %v461_v11 = vpop.f32.mrb[2].mxu0 }
  0xea   : > { %v2019_v12 = vpop.f32.mrb[3].mxu0  ;;  %2020 = vmatprep.subr.msk.mxu0 %vm189_vm0, %v461_v11 }
  0xeb   : > { %2021 = vmatpush3.msk.msra.mxu0 %vm189_vm0, %v461_v11 }
  0xec   : > { %2013 = vmatmul.mubr.msk.f32.gmra.mrb[2].mxu1 %vm185_vm2, %v2275_v9  ;;  %2023 = vmatmul.mubr.msk.f32.vlgmr.msra.gmra.mrb[4].mxu0 %vm185_vm2, %v2256_v6 }
  0xed   : > { %2030 = vmatprep.mubr.msk.f32.mxu1 %vm2188_vm1, %v2187_v1  ;;  %2041 = vmatprep.subr.mxu0 %v2187_v1 }
  0xee   : > { %2025 = vmatprep.mubr.msk.f32.mxu0 %vm185_vm2, %v2262_v8  ;;  %2042 = vmatpush3.msk.msra.mxu0 %vm189_vm0, %v2220_v0 }
  0xf0   : > { %2031 = vmatmul.mubr.msk.f32.vlgmr.msra.gmra.mrb[4].mxu1 %vm185_vm2, %v173_v10  ;;  %2026 = vmatmul.mubr.msk.f32.gmra.mrb[6].mxu0 %vm185_vm2, %v2275_v9 }
  0xf1   : > { %2035 = vmatprep.mubr.msk.f32.mxu1 %vm185_vm2, %v2245_v3  ;;  %2043 = vmatprep.mubr.msk.f32.mxu0 %vm2188_vm1, %v2187_v1 }
  0xf4   : > { %2044 = vmatmul.mubr.msk.f32.vlgmr.msra.gmra.mrb[8].mxu0 %vm185_vm2, %v174_v13 }
  0xf5   : > { %2048 = vmatprep.mubr.msk.f32.mxu0 %vm185_vm2, %v2245_v3 }
 0x1bb   : > { %v2011_v14 = vpop.f32.mrb[0].mxu1 }
 0x1bc   : > { %v1838_v15 = vmul.f32 -1.442695, %v2011_v14  ;;  %v344_v16 = vpop.f32.mrb[1].mxu1 }
 0x1bd   : > { %v1837_v17 = vmul.f32 -1.442695, %v344_v16  ;;  %v177_v16 = vld [vmem:[%s2234_s19 + $0xc] sm:$0x3] }
 0x1be   : > { %2131 = vpow2.f32 %v1838_v15 }
 0x1bf   : > { %2133 = vpow2.f32 %v1837_v17  ;;  %v2014_v18 = vpop.f32.mrb[2].mxu1  ;;  %v2024_v37 = vpop.f32.mrb[4].mxu0 }
 0x1c0   : > { %v1840_v19 = vmul.f32 -1.442695, %v2014_v18  ;;  %v354_v20 = vpop.f32.mrb[3].mxu1  ;;  %v1849_v38 = vmul.f32 -1.442695, %v2024_v37  ;;  %v534_v39 = vpop.f32.mrb[5].mxu0 }
 0x1c1   : > { %v1839_v21 = vmul.f32 -1.442695, %v354_v20  ;;  %v1848_v40 = vmul.f32 -1.442695, %v534_v39 }
 0x1c2   : > { %2135 = vpow2.f32 %v1840_v19 }
 0x1c3   : > { %2137 = vpow2.f32 %v1839_v21  ;;  %v651_v22 = vpop.f32.mrb[4].mxu1  ;;  %v2027_v41 = vpop.f32.mrb[6].mxu0 }
 0x1c4   : > { %v2032_v23 = vpop.f32.mrb[5].mxu1  ;;  %2033 = vmatprep.subr.msk.mxu1 %vm189_vm0, %v651_v22  ;;  %v544_v42 = vpop.f32.mrb[7].mxu0  ;;  %v1851_v43 = vmul.f32 -1.442695, %v2027_v41 }
 0x1c5   : > { %2034 = vmatpush3.msk.msra.mxu1 %vm189_vm0, %v651_v22  ;;  %v1850_v44 = vmul.f32 -1.442695, %v544_v42 }
 0x1c6   : > { %2036 = vmatmul.mubr.msk.f32.vlgmr.msra.gmra.mrb[6].mxu1 %vm185_vm2, %v2256_v6  ;;  %2054 = vmatprep.subr.mxu1 %v2187_v1 }
 0x1c7   : > { %2038 = vmatprep.mubr.msk.f32.mxu1 %vm185_vm2, %v2262_v8  ;;  %2055 = vmatpush3.msk.msra.mxu1 %vm189_vm0, %v2220_v0  ;;  %v841_v45 = vpop.f32.mrb[8].mxu0 }
 0x1c8   : > { %v2132_v24 = vpop.eup %2131  ;;  %v2045_v46 = vpop.f32.mrb[9].mxu0  ;;  %2046 = vmatprep.subr.msk.mxu0 %vm189_vm0, %v841_v45 }
 0x1c9   : > { %v2134_v25 = vpop.eup %2133  ;;  %v376_v26 = vadd.f32 1.0, %v2132_v24  ;;  %2047 = vmatpush3.msk.msra.mxu0 %vm189_vm0, %v841_v45 }
 0x1ca   : > { %v375_v27 = vadd.f32 1.0, %v2134_v25  ;;  %2039 = vmatmul.mubr.msk.f32.gmra.mrb[8].mxu1 %vm185_vm2, %v2275_v9  ;;  %2049 = vmatmul.mubr.msk.f32.vlgmr.msra.gmra.mrb[10].mxu0 %vm185_vm2, %v2256_v6 }
 0x1cb   : > { %2139 = vrcp.f32 %v376_v26  ;;  %2056 = vmatprep.mubr.msk.f32.mxu1 %vm2188_vm1, %v2187_v1  ;;  %2067 = vmatprep.subr.mxu0 %v2187_v1 }
 0x1cc   : > { %v2136_v29 = vpop.eup %2135  ;;  %2141 = vrcp.f32 %v375_v27  ;;  %2051 = vmatprep.mubr.msk.f32.mxu0 %vm185_vm2, %v2262_v8  ;;  %2068 = vmatpush3.msk.msra.mxu0 %vm189_vm0, %v2220_v0 }
 0x1cd   : > { %v2138_v30 = vpop.eup %2137  ;;  %v378_v31 = vadd.f32 1.0, %v2136_v29 }
 0x1ce   : > { %v377_v32 = vadd.f32 1.0, %v2138_v30  ;;  %2057 = vmatmul.mubr.msk.f32.vlgmr.msra.gmra.mrb[10].mxu1 %vm185_vm2, %v175_v28  ;;  %2052 = vmatmul.mubr.msk.f32.gmra.mrb[12].mxu0 %vm185_vm2, %v2275_v9 }
 0x1cf   : > { %2143 = vrcp.f32 %v378_v31  ;;  %2061 = vmatprep.mubr.msk.f32.mxu1 %vm185_vm2, %v2245_v3  ;;  %2069 = vmatprep.mubr.msk.f32.mxu0 %vm2188_vm1, %v2187_v1  ;;  %v178_v31 = vld [vmem:[%s2234_s19 + $0xe] sm:$0x3] }
 0x1d0   : > { %2145 = vrcp.f32 %v377_v32 }
 0x1d1   : > { %2147 = vpow2.f32 %v1849_v38  ;;  %v179_v38 = vld [vmem:[%s2234_s19 + $0x10] sm:$0x3] }
 0x1d2   : > { %2149 = vpow2.f32 %v1848_v40  ;;  %2070 = vmatmul.mubr.msk.f32.vlgmr.msra.gmra.mrb[14].mxu0 %vm185_vm2, %v176_v52 }
 0x1d3   : > { %2151 = vpow2.f32 %v1851_v43  ;;  %2074 = vmatprep.mubr.msk.f32.mxu0 %vm185_vm2, %v2245_v3 }
 0x1d4   : > { %2153 = vpow2.f32 %v1850_v44 }
 0x1d5   : > { %v2140_v33 = vpop.eup %2139 }
 0x1d6   : > { %v2142_v34 = vpop.eup %2141  ;;  %389 = vst.msk [vmem:[%s2323_s4 + $0x8] sm:$0xff] %vm387_vm3, %v2140_v33 }
 0x1d7   : > { %388 = vst.msk [vmem:[%s2323_s4] sm:$0xff] %vm387_vm3, %v2142_v34 }
 0x1d9   : > { %v2144_v35 = vpop.eup %2143 }
 0x1da   : > { %v2146_v36 = vpop.eup %2145  ;;  %391 = vst.msk [vmem:[%s2323_s4 + $0x18] sm:$0xff] %vm387_vm3, %v2144_v35 }
 0x1db   : > { %390 = vst.msk [vmem:[%s2323_s4 + $0x10] sm:$0xff] %vm387_vm3, %v2146_v36  ;;  %v2148_v47 = vpop.eup %2147 }
 0x1dc   : > { %v2150_v48 = vpop.eup %2149  ;;  %v566_v49 = vadd.f32 1.0, %v2148_v47 }
 0x1dd   : > { %v565_v50 = vadd.f32 1.0, %v2150_v48  ;;  %v2152_v51 = vpop.eup %2151 }
 0x1de   : > { %2155 = vrcp.f32 %v566_v49  ;;  %v2154_v53 = vpop.eup %2153  ;;  %v568_v54 = vadd.f32 1.0, %v2152_v51 }
 0x1df   : > { %2157 = vrcp.f32 %v565_v50  ;;  %v567_v55 = vadd.f32 1.0, %v2154_v53 }
 0x1e0   : > { %2159 = vrcp.f32 %v568_v54 }
 0x1e1   : > { %2161 = vrcp.f32 %v567_v55 }
 0x1e8   : > { %v2156_v56 = vpop.eup %2155 }
 0x1e9   : > { %v2158_v57 = vpop.eup %2157  ;;  %1853 = vst.msk [vmem:[%s2323_s4 + $0x28] sm:$0xff] %vm387_vm3, %v2156_v56 }
 0x1ea   : > { %1852 = vst.msk [vmem:[%s2323_s4 + $0x20] sm:$0xff] %vm387_vm3, %v2158_v57  ;;  %v2160_v58 = vpop.eup %2159 }
 0x1eb   : > { %v2162_v59 = vpop.eup %2161  ;;  %1855 = vst.msk [vmem:[%s2323_s4 + $0x38] sm:$0xff] %vm387_vm3, %v2160_v58 }
 0x1ec   : > { %1854 = vst.msk [vmem:[%s2323_s4 + $0x30] sm:$0xff] %vm387_vm3, %v2162_v59 }
 0x299   : > { %v2037_v60 = vpop.f32.mrb[6].mxu1 }
 0x29a   : > { %v1864_v61 = vmul.f32 -1.442695, %v2037_v60  ;;  %v724_v62 = vpop.f32.mrb[7].mxu1 }
 0x29b   : > { %v1863_v63 = vmul.f32 -1.442695, %v724_v62 }
 0x29c   : > { %2163 = vpow2.f32 %v1864_v61 }
 0x29d   : > { %2165 = vpow2.f32 %v1863_v63  ;;  %v2040_v2 = vpop.f32.mrb[8].mxu1  ;;  %v2050_v25 = vpop.f32.mrb[10].mxu0 }
 0x29e   : > { %v1866_v4 = vmul.f32 -1.442695, %v2040_v2  ;;  %v734_v5 = vpop.f32.mrb[9].mxu1  ;;  %1879 = vst.msk [vmem:[%s2323_s4 + $0x68] sm:$0xff] %vm387_vm3, %v2050_v25  ;;  %v914_v26 = vpop.f32.mrb[11].mxu0 }
 0x29f   : > { %v1865_v7 = vmul.f32 -1.442695, %v734_v5  ;;  %1878 = vst.msk [vmem:[%s2323_s4 + $0x60] sm:$0xff] %vm387_vm3, %v914_v26 }
 0x2a0   : > { %2167 = vpow2.f32 %v1866_v4 }
 0x2a1   : > { %2169 = vpow2.f32 %v1865_v7  ;;  %v1007_v10 = vpop.f32.mrb[10].mxu1  ;;  %v2053_v27 = vpop.f32.mrb[12].mxu0 }
 0x2a2   : > { %v2058_v11 = vpop.f32.mrb[11].mxu1  ;;  %2059 = vmatprep.subr.msk.mxu1 %vm189_vm0, %v1007_v10  ;;  %1881 = vst.msk [vmem:[%s2323_s4 + $0x78] sm:$0xff] %vm387_vm3, %v2053_v27  ;;  %v924_v28 = vpop.f32.mrb[13].mxu0 }
 0x2a3   : > { %2060 = vmatpush3.msk.msra.mxu1 %vm189_vm0, %v1007_v10  ;;  %1880 = vst.msk [vmem:[%s2323_s4 + $0x70] sm:$0xff] %vm387_vm3, %v924_v28 }
 0x2a4   : > { %2062 = vmatmul.mubr.msk.f32.vlgmr.msra.gmra.mrb[12].mxu1 %vm185_vm2, %v2256_v6  ;;  %2080 = vmatprep.subr.mxu1 %v2187_v1 }
 0x2a5   : > { %2064 = vmatprep.mubr.msk.f32.mxu1 %vm185_vm2, %v2262_v8  ;;  %2081 = vmatpush3.msk.msra.mxu1 %vm189_vm0, %v2220_v0  ;;  %v1173_v29 = vpop.f32.mrb[14].mxu0 }
 0x2a6   : > { %v2164_v12 = vpop.eup %2163  ;;  %v2071_v30 = vpop.f32.mrb[15].mxu0  ;;  %2072 = vmatprep.subr.msk.mxu0 %vm189_vm0, %v1173_v29 }
 0x2a7   : > { %v2166_v13 = vpop.eup %2165  ;;  %v756_v14 = vadd.f32 1.0, %v2164_v12  ;;  %2073 = vmatpush3.msk.msra.mxu0 %vm189_vm0, %v1173_v29 }
 0x2a8   : > { %v755_v15 = vadd.f32 1.0, %v2166_v13  ;;  %2065 = vmatmul.mubr.msk.f32.gmra.mrb[14].mxu1 %vm185_vm2, %v2275_v9  ;;  %2075 = vmatmul.mubr.msk.f32.vlgmr.msra.gmra.mrb[16].mxu0 %vm185_vm2, %v2256_v6 }
 0x2a9   : > { %2171 = vrcp.f32 %v756_v14  ;;  %2082 = vmatprep.mubr.msk.f32.mxu1 %vm2188_vm1, %v2187_v1  ;;  %2093 = vmatprep.subr.mxu0 %v2187_v1 }
 0x2aa   : > { %v2168_v17 = vpop.eup %2167  ;;  %2173 = vrcp.f32 %v755_v15  ;;  %2077 = vmatprep.mubr.msk.f32.mxu0 %vm185_vm2, %v2262_v8  ;;  %2094 = vmatpush3.msk.msra.mxu0 %vm189_vm0, %v2220_v0 }
 0x2ab   : > { %v2170_v18 = vpop.eup %2169  ;;  %v758_v19 = vadd.f32 1.0, %v2168_v17 }
 0x2ac   : > { %v757_v20 = vadd.f32 1.0, %v2170_v18  ;;  %2083 = vmatmul.mubr.msk.f32.vlgmr.msra.gmra.mrb[16].mxu1 %vm185_vm2, %v177_v16  ;;  %2078 = vmatmul.mubr.msk.f32.gmra.mrb[18].mxu0 %vm185_vm2, %v2275_v9 }
 0x2ad   : > { %2175 = vrcp.f32 %v758_v19  ;;  %2087 = vmatprep.mubr.msk.f32.mxu1 %vm185_vm2, %v2245_v3  ;;  %2095 = vmatprep.mubr.msk.f32.mxu0 %vm2188_vm1, %v2187_v1 }
 0x2ae   : > { %2177 = vrcp.f32 %v757_v20 }
 0x2b0   : > { %2096 = vmatmul.mubr.msk.f32.vlgmr.msra.gmra.mrb[20].mxu0 %vm185_vm2, %v178_v31 }
 0x2b1   : > { %2100 = vmatprep.mubr.msk.f32.mxu0 %vm185_vm2, %v2245_v3 }
 0x2b3   : > { %v2172_v21 = vpop.eup %2171 }
 0x2b4   : > { %v2174_v22 = vpop.eup %2173  ;;  %1868 = vst.msk [vmem:[%s2323_s4 + $0x48] sm:$0xff] %vm387_vm3, %v2172_v21 }
 0x2b5   : > { %1867 = vst.msk [vmem:[%s2323_s4 + $0x40] sm:$0xff] %vm387_vm3, %v2174_v22 }
 0x2b7   : > { %v2176_v23 = vpop.eup %2175 }
 0x2b8   : > { %v2178_v24 = vpop.eup %2177  ;;  %1870 = vst.msk [vmem:[%s2323_s4 + $0x58] sm:$0xff] %vm387_vm3, %v2176_v23 }
 0x2b9   : > { %1869 = vst.msk [vmem:[%s2323_s4 + $0x50] sm:$0xff] %vm387_vm3, %v2178_v24 }
 0x377   : > { %v2063_v32 = vpop.f32.mrb[12].mxu1 }
 0x378   : > { %1890 = vst.msk [vmem:[%s2323_s4 + $0x88] sm:$0xff] %vm387_vm3, %v2063_v32  ;;  %v1080_v33 = vpop.f32.mrb[13].mxu1 }
 0x379   : > { %1889 = vst.msk [vmem:[%s2323_s4 + $0x80] sm:$0xff] %vm387_vm3, %v1080_v33 }
 0x37b   : > { %v2066_v34 = vpop.f32.mrb[14].mxu1  ;;  %v2076_v39 = vpop.f32.mrb[16].mxu0 }
 0x37c   : > { %1892 = vst.msk [vmem:[%s2323_s4 + $0x98] sm:$0xff] %vm387_vm3, %v2066_v34  ;;  %v1090_v35 = vpop.f32.mrb[15].mxu1  ;;  %1901 = vst.msk [vmem:[%s2323_s4 + $0xa8] sm:$0xff] %vm387_vm3, %v2076_v39  ;;  %v1246_v40 = vpop.f32.mrb[17].mxu0 }
 0x37d   : > { %1891 = vst.msk [vmem:[%s2323_s4 + $0x90] sm:$0xff] %vm387_vm3, %v1090_v35  ;;  %1900 = vst.msk [vmem:[%s2323_s4 + $0xa0] sm:$0xff] %vm387_vm3, %v1246_v40 }
 0x37f   : > { %v1339_v36 = vpop.f32.mrb[16].mxu1 }
 0x380   : > { %v2084_v37 = vpop.f32.mrb[17].mxu1  ;;  %2085 = vmatprep.subr.msk.mxu1 %vm189_vm0, %v1339_v36 }
 0x381   : > { %2086 = vmatpush3.msk.msra.mxu1 %vm189_vm0, %v1339_v36 }
 0x382   : > { %2088 = vmatmul.mubr.msk.f32.vlgmr.msra.gmra.mrb[18].mxu1 %vm185_vm2, %v2256_v6  ;;  %2106 = vmatprep.subr.mxu1 %v2187_v1 }
 0x383   : > { %2090 = vmatprep.mubr.msk.f32.mxu1 %vm185_vm2, %v2262_v8  ;;  %2107 = vmatpush3.msk.msra.mxu1 %vm189_vm0, %v2220_v0  ;;  %v2079_v0 = vpop.f32.mrb[18].mxu0 }
 0x384   : > { %1903 = vst.msk [vmem:[%s2323_s4 + $0xb8] sm:$0xff] %vm387_vm3, %v2079_v0  ;;  %v1256_v41 = vpop.f32.mrb[19].mxu0 }
 0x385   : > { %1902 = vst.msk [vmem:[%s2323_s4 + $0xb0] sm:$0xff] %vm387_vm3, %v1256_v41 }
 0x386   : > { %2091 = vmatmul.mubr.msk.f32.gmra.mrb[20].mxu1 %vm185_vm2, %v2275_v9 }
 0x387   : > { %2108 = vmatprep.mubr.msk.f32.mxu1 %vm2188_vm1, %v2187_v1  ;;  %v1505_v1 = vpop.f32.mrb[20].mxu0 }
 0x388   : > { %v2097_v42 = vpop.f32.mrb[21].mxu0  ;;  %2098 = vmatprep.subr.msk.mxu0 %vm189_vm0, %v1505_v1 }
 0x389   : > { %2099 = vmatpush3.msk.msra.mxu0 %vm189_vm0, %v1505_v1 }
 0x38a   : > { %2109 = vmatmul.mubr.msk.f32.vlgmr.msra.gmra.mrb[22].mxu1 %vm185_vm2, %v179_v38  ;;  %2101 = vmatmul.mubr.msk.f32.vlgmr.msra.gmra.mrb[22].mxu0 %vm185_vm2, %v2256_v6 }
 0x38b   : > { %2113 = vmatprep.mubr.msk.f32.mxu1 %vm185_vm2, %v2245_v3  ;;  %2103 = vmatprep.mubr.msk.f32.mxu0 %vm185_vm2, %v2262_v8 }
 0x38e   : > { %2104 = vmatmul.mubr.msk.f32.gmra.mrb[24].mxu0 %vm185_vm2, %v2275_v9 }
 0x455   : > { %v2089_v3 = vpop.f32.mrb[18].mxu1 }
 0x456   : > { %1912 = vst.msk [vmem:[%s2323_s4 + $0xc8] sm:$0xff] %vm387_vm3, %v2089_v3  ;;  %v1412_v43 = vpop.f32.mrb[19].mxu1 }
 0x457   : > { %1911 = vst.msk [vmem:[%s2323_s4 + $0xc0] sm:$0xff] %vm387_vm3, %v1412_v43 }
 0x459   : > { %v2092_v44 = vpop.f32.mrb[20].mxu1 }
 0x45a   : > { %1914 = vst.msk [vmem:[%s2323_s4 + $0xd8] sm:$0xff] %vm387_vm3, %v2092_v44  ;;  %v1422_v45 = vpop.f32.mrb[21].mxu1 }
 0x45b   : > { %1913 = vst.msk [vmem:[%s2323_s4 + $0xd0] sm:$0xff] %vm387_vm3, %v1422_v45 }
 0x45d   : > { %v1671_v46 = vpop.f32.mrb[22].mxu1  ;;  %v2102_v48 = vpop.f32.mrb[22].mxu0 }
 0x45e   : > { %v2110_v47 = vpop.f32.mrb[23].mxu1  ;;  %2111 = vmatprep.subr.msk.mxu1 %vm189_vm0, %v1671_v46  ;;  %1923 = vst.msk [vmem:[%s2323_s4 + $0xe8] sm:$0xff] %vm387_vm3, %v2102_v48  ;;  %v1578_v49 = vpop.f32.mrb[23].mxu0 }
 0x45f   : > { %2112 = vmatpush3.msk.msra.mxu1 %vm189_vm0, %v1671_v46  ;;  %1922 = vst.msk [vmem:[%s2323_s4 + $0xe0] sm:$0xff] %vm387_vm3, %v1578_v49 }
 0x460   : > { %2114 = vmatmul.mubr.msk.f32.vlgmr.msra.gmra.mrb[24].mxu1 %vm185_vm2, %v2256_v6 }
 0x461   : > { %2116 = vmatprep.mubr.msk.f32.mxu1 %vm185_vm2, %v2262_v8  ;;  %v2105_v50 = vpop.f32.mrb[24].mxu0 }
 0x462   : > { %1925 = vst.msk [vmem:[%s2323_s4 + $0xf8] sm:$0xff] %vm387_vm3, %v2105_v50  ;;  %v1588_v51 = vpop.f32.mrb[25].mxu0 }
 0x463   : > { %1924 = vst.msk [vmem:[%s2323_s4 + $0xf0] sm:$0xff] %vm387_vm3, %v1588_v51 }
 0x464   : > { %2117 = vmatmul.mubr.msk.f32.gmra.mrb[26].mxu1 %vm185_vm2, %v2275_v9 }
 0x533   : > { %v2115_v6 = vpop.f32.mrb[24].mxu1 }
 0x534   : > { %1934 = vst.msk [vmem:[%s2323_s4 + $0x108] sm:$0xff] %vm387_vm3, %v2115_v6  ;;  %v1744_v8 = vpop.f32.mrb[25].mxu1 }
 0x535   : > { %1933 = vst.msk [vmem:[%s2323_s4 + $0x100] sm:$0xff] %vm387_vm3, %v1744_v8 }
 0x537   : > { %v2118_v9 = vpop.f32.mrb[26].mxu1 }
 0x538   : > { %1936 = vst.msk [vmem:[%s2323_s4 + $0x118] sm:$0xff] %vm387_vm3, %v2118_v9  ;;  %v1754_v52 = vpop.f32.mrb[27].mxu1 }
 0x539   : > { %1935 = vst.msk [vmem:[%s2323_s4 + $0x110] sm:$0xff] %vm387_vm3, %v1754_v52 }
 0x53a PF: > { %s13_s12 = sadd.s32 1, %s2185_s12  }
 0x53b   : > { %p10_p4 = scmp.ge.s32.totalorder %s13_s12, 4  }
 0x53d   :  { %12 = sbr.rel (!%p10_p4) target bundleno = 1 (0x1), region = 70 }

</bundles_post_ra>
